<compile_context>
chip_gen: v7x
topology: tpu7x:2x2x1
jax: 0.10.0
libtpu: 0.0.40
codegen_flags: <defaults>
</compile_context>

<pallas_src>
import math
import functools

import jax
import jax.numpy as jnp
from jax import lax
from jax.experimental import pallas as pl
from jax.experimental.pallas import tpu as pltpu


def _round_up(x, m):
    return ((x + m - 1) // m) * m


def _hgat_kernel(nem_ref,                       # scalar prefetch: [GQ, GK] tile-nonempty flags (SMEM)
                 xq_ref, xk_ref, bias_ref,      # [TQ,Fin] bf16, [TK,Fin] bf16, [TQ,TK] bf16
                 wq_ref, bq_ref,                # [Fin,H*D] bf16 (scale folded in), [1,H*D] f32
                 wkv_ref, bkv_ref,              # [Fin,2*H*D] bf16, [1,2*H*D] f32
                 wo_ref, bo_ref,                # [H*D,Fo_pad] bf16, [1,Fo_pad] f32
                 out_ref,                       # [TQ,Fo_pad]
                 q_sc, m_sc, l_sc, acc_sc,      # scratch
                 *, num_heads, head_dim):
    i = pl.program_id(0)
    j = pl.program_id(1)
    hd = num_heads * head_dim

    # ---- init: once per query-row block (first key block) -----------------
    @pl.when(j == 0)
    def _init():
        q = jnp.dot(xq_ref[...], wq_ref[...],
                    preferred_element_type=jnp.float32) + bq_ref[...]
        q_sc[...] = q.astype(jnp.bfloat16)
        m_sc[...] = jnp.full(m_sc.shape, -1e30, jnp.float32)
        l_sc[...] = jnp.zeros(l_sc.shape, jnp.float32)
        acc_sc[...] = jnp.zeros(acc_sc.shape, jnp.float32)

    # ---- online-softmax update; skip compute for fully-masked tiles -------
    @pl.when(nem_ref[i, j] > 0)
    def _compute():
        # fused K/V projection of this key block: one MXU matmul
        kv = jnp.dot(xk_ref[...], wkv_ref[...],
                     preferred_element_type=jnp.float32) + bkv_ref[...]
        bias = bias_ref[...].astype(jnp.float32)        # additive edge mask
        q = q_sc[...]
        for h in range(num_heads):                      # static, small
            lo = h * head_dim
            qh = q[:, lo:lo + head_dim]
            kh = kv[:, lo:lo + head_dim].astype(jnp.bfloat16)
            vh = kv[:, hd + lo:hd + lo + head_dim].astype(jnp.bfloat16)
            # q @ k^T without materializing a transpose
            s = lax.dot_general(qh, kh, (((1,), (1,)), ((), ())),
                                preferred_element_type=jnp.float32) + bias
            m_prev = m_sc[h]
            m_new = jnp.maximum(m_prev, jnp.max(s, axis=-1, keepdims=True))
            alpha = jnp.exp(m_prev - m_new)
            p = jnp.exp(s - m_new)
            l_sc[h] = alpha * l_sc[h] + jnp.sum(p, axis=-1, keepdims=True)
            acc_sc[h] = alpha * acc_sc[h] + jnp.dot(
                p.astype(jnp.bfloat16), vh, preferred_element_type=jnp.float32)
            m_sc[h] = m_new

    # ---- finalize: normalize and fold heads straight into out-projection --
    @pl.when(j == pl.num_programs(1) - 1)
    def _finalize():
        tq, fo = out_ref.shape
        acc_out = jnp.zeros((tq, fo), jnp.float32) + bo_ref[...]
        for h in range(num_heads):
            inv_l = pl.reciprocal(l_sc[h], approx=True)          # EUP, ~free
            o_h = (acc_sc[h] * inv_l).astype(jnp.bfloat16)
            acc_out = acc_out + jnp.dot(
                o_h, wo_ref[h * head_dim:(h + 1) * head_dim, :],
                preferred_element_type=jnp.float32)
        out_ref[...] = acc_out.astype(out_ref.dtype)


def hyperbolic_gat_layer(x, edge_index, params, *, num_heads, out_features,
                         tile_q=128, tile_k=128):
    """Fused edge-masked multi-head attention + out_proj (concat=True branch)."""
    assert tile_q % 8 == 0 and tile_k % 128 == 0
    n, f_in = x.shape
    head_dim = out_features
    hd = num_heads * head_dim
    wq, bq, wk, bk, wv, bv, wo, bo = params

    # ---- padding so tiles divide evenly and satisfy the (8,128) rule ------
    step = math.lcm(tile_q, tile_k)
    n_pad = _round_up(max(n, step), step)
    gq, gk = n_pad // tile_q, n_pad // tile_k
    f_out_pad = _round_up(out_features, 128)            # lane-dense output slab

    # ---- dense additive attention bias from edge_index (+ self loops) -----
    # TODO(synk): for very large sparse graphs replace the dense [N,N] bias
    # with a per-row neighbour table (scalar prefetch) so only real neighbour
    # K/V rows are fetched; here fully-masked tiles are compute-skipped.
    src, dst = edge_index[0], edge_index[1]
    adj = jnp.zeros((n_pad, n_pad), jnp.float32)
    adj = adj.at[dst, src].set(1.0)
    adj = adj.at[jnp.arange(n_pad), jnp.arange(n_pad)].set(1.0)
    bias = jnp.where(adj > 0.0, 0.0, -1e9).astype(jnp.bfloat16)
    tile_nonempty = jnp.any(
        adj.reshape(gq, tile_q, gk, tile_k) > 0.0, axis=(1, 3)).astype(jnp.int32)

    # ---- operand packing: bf16 MXU inputs, scale folded into Wq -----------
    scale = 1.0 / math.sqrt(head_dim)
    x_pad = jnp.pad(x, ((0, n_pad - n), (0, 0))).astype(jnp.bfloat16)
    wq_s = (wq * scale).astype(jnp.bfloat16)
    bq_s = (bq * scale).astype(jnp.float32)
    wkv = jnp.concatenate([wk, wv], axis=1).astype(jnp.bfloat16)
    bkv = jnp.concatenate([bk, bv], axis=1).astype(jnp.float32)
    wo_p = jnp.pad(wo, ((0, 0), (0, f_out_pad - out_features))).astype(jnp.bfloat16)
    bo_p = jnp.pad(bo, ((0, 0), (0, f_out_pad - out_features))).astype(jnp.float32)

    kernel = functools.partial(_hgat_kernel, num_heads=num_heads, head_dim=head_dim)

    grid_spec = pltpu.PrefetchScalarGridSpec(
        num_scalar_prefetch=1,
        grid=(gq, gk),
        in_specs=[
            pl.BlockSpec((tile_q, f_in), lambda i, j, nem: (i, 0)),    # x (queries)
            pl.BlockSpec((tile_k, f_in), lambda i, j, nem: (j, 0)),    # x (keys)
            pl.BlockSpec((tile_q, tile_k), lambda i, j, nem: (i, j)),  # mask bias tile
            pl.BlockSpec((f_in, hd), lambda i, j, nem: (0, 0)),        # Wq (scaled)
            pl.BlockSpec((1, hd), lambda i, j, nem: (0, 0)),           # bq (scaled)
            pl.BlockSpec((f_in, 2 * hd), lambda i, j, nem: (0, 0)),    # Wkv
            pl.BlockSpec((1, 2 * hd), lambda i, j, nem: (0, 0)),       # bkv
            pl.BlockSpec((hd, f_out_pad), lambda i, j, nem: (0, 0)),   # Wo (padded)
            pl.BlockSpec((1, f_out_pad), lambda i, j, nem: (0, 0)),    # bo (padded)
        ],
        out_specs=pl.BlockSpec((tile_q, f_out_pad), lambda i, j, nem: (i, 0)),
        scratch_shapes=[
            pltpu.VMEM((tile_q, hd), jnp.bfloat16),                  # q block
            pltpu.VMEM((num_heads, tile_q, 1), jnp.float32),         # running max
            pltpu.VMEM((num_heads, tile_q, 1), jnp.float32),         # running sum
            pltpu.VMEM((num_heads, tile_q, head_dim), jnp.float32),  # acc per head
        ],
    )

    out = pl.pallas_call(
        kernel,
        out_shape=jax.ShapeDtypeStruct((n_pad, f_out_pad), x.dtype),
        grid_spec=grid_spec,
        compiler_params=pltpu.CompilerParams(
            dimension_semantics=("parallel", "arbitrary"),
            vmem_limit_bytes=32 * 1024 * 1024,
        ),
    )(tile_nonempty, x_pad, x_pad, bias,
      wq_s, bq_s, wkv, bkv, wo_p, bo_p)

    return out[:n, :out_features]


def _xavier_uniform(key, fan_in, fan_out, dtype=jnp.float32):
    bound = math.sqrt(6.0 / (fan_in + fan_out))
    return jax.random.uniform(key, (fan_in, fan_out), dtype,
                              minval=-bound, maxval=bound)


def init_params(key, in_features, out_features, num_heads, concat=True):
    hf = out_features * num_heads
    k1, k2, k3, k4 = jax.random.split(key, 4)
    wq = _xavier_uniform(k1, in_features, hf)
    wk = _xavier_uniform(k2, in_features, hf)
    wv = _xavier_uniform(k3, in_features, hf)
    proj_in = hf if concat else out_features
    wo = _xavier_uniform(k4, proj_in, out_features)
    bq = jnp.zeros((1, hf), jnp.float32)
    bk = jnp.zeros((1, hf), jnp.float32)
    bv = jnp.zeros((1, hf), jnp.float32)
    bo = jnp.zeros((1, out_features), jnp.float32)
    return (wq, bq, wk, bk, wv, bv, wo, bo)


if __name__ == "__main__":
    # Small shapes consistent with the module's forward.
    N = 8            # number of graph nodes
    IN_F = 16        # in_features
    OUT_F = 32       # out_features (== head_dim)
    HEADS = 2        # num_heads
    key = jax.random.PRNGKey(0)
    kx, kp = jax.random.split(key)

    x = jax.random.normal(kx, (N, IN_F), jnp.float32)

    # deterministic ring graph (bidirectional edges)
    src = jnp.arange(N, dtype=jnp.int32)
    dst = (src + 1) % N
    edge_index = jnp.stack([jnp.concatenate([src, dst]),
                            jnp.concatenate([dst, src])], axis=0)  # [2, 2N]

    params = init_params(kp, IN_F, OUT_F, HEADS, concat=True)

    out = hyperbolic_gat_layer(x, edge_index, params,
                               num_heads=HEADS, out_features=OUT_F)
    out = jax.block_until_ready(out)
    assert out.shape == (N, OUT_F)
    assert jnp.all(jnp.isfinite(out))
    print("KERNEL_OK")
</pallas_src>

<mosaic_0001>
module attributes {stable_mosaic.version = 11 : i64} {
  func.func @_hgat_kernel(%arg0: i32, %arg1: i32, %arg2: memref<1x1xi32, #tpu.memory_space<smem>>, %arg3: memref<128x16xbf16, #tpu.memory_space<vmem>>, %arg4: memref<128x16xbf16, #tpu.memory_space<vmem>>, %arg5: memref<128x128xbf16, #tpu.memory_space<vmem>>, %arg6: memref<16x64xbf16, #tpu.memory_space<vmem>>, %arg7: memref<1x64xf32, #tpu.memory_space<vmem>>, %arg8: memref<16x128xbf16, #tpu.memory_space<vmem>>, %arg9: memref<1x128xf32, #tpu.memory_space<vmem>>, %arg10: memref<64x128xbf16, #tpu.memory_space<vmem>>, %arg11: memref<1x128xf32, #tpu.memory_space<vmem>>, %arg12: memref<128x128xf32, #tpu.memory_space<vmem>>, %arg13: memref<128x64xbf16, #tpu.memory_space<vmem>>, %arg14: memref<2x128x1xf32, #tpu.memory_space<vmem>>, %arg15: memref<2x128x1xf32, #tpu.memory_space<vmem>>, %arg16: memref<2x128x32xf32, #tpu.memory_space<vmem>>) attributes {dimension_semantics = [#tpu.dimension_semantics<parallel>, #tpu.dimension_semantics<arbitrary>], iteration_bounds = array<i64: 1, 1>, scalar_prefetch = 1 : i64, scratch_operands = 4 : i64, tpu.core_type = #tpu.core_type<tc>, window_params = [{transform_indices = @transform_0, window_bounds = array<i64: 128, 16>}, {transform_indices = @transform_1, window_bounds = array<i64: 128, 16>}, {transform_indices = @transform_2, window_bounds = array<i64: 128, 128>}, {pipeline_mode = #tpu.pipeline_mode<synchronous>, transform_indices = @transform_3, window_bounds = array<i64: 16, 64>}, {pipeline_mode = #tpu.pipeline_mode<synchronous>, transform_indices = @transform_4, window_bounds = array<i64: 1, 64>}, {pipeline_mode = #tpu.pipeline_mode<synchronous>, transform_indices = @transform_5, window_bounds = array<i64: 16, 128>}, {pipeline_mode = #tpu.pipeline_mode<synchronous>, transform_indices = @transform_6, window_bounds = array<i64: 1, 128>}, {pipeline_mode = #tpu.pipeline_mode<synchronous>, transform_indices = @transform_7, window_bounds = array<i64: 64, 128>}, {pipeline_mode = #tpu.pipeline_mode<synchronous>, transform_indices = @transform_8, window_bounds = array<i64: 1, 128>}, {transform_indices = @transform_9, window_bounds = array<i64: 128, 128>}]} {
    %c0_i32 = arith.constant 0 : i32
    %0 = arith.cmpi eq, %arg1, %c0_i32 : i32
    %1 = arith.extui %0 : i1 to i32
    %c0_i32_0 = arith.constant 0 : i32
    %2 = arith.cmpi ne, %1, %c0_i32_0 : i32
    scf.if %2 {
      %c0 = arith.constant 0 : index
      %c0_5 = arith.constant 0 : index
      %12 = vector.load %arg3[%c0, %c0_5] : memref<128x16xbf16, #tpu.memory_space<vmem>>, vector<128x16xbf16>
      %c0_6 = arith.constant 0 : index
      %c0_7 = arith.constant 0 : index
      %13 = vector.load %arg6[%c0_6, %c0_7] : memref<16x64xbf16, #tpu.memory_space<vmem>>, vector<16x64xbf16>
      %cst = arith.constant dense<0.000000e+00> : vector<128x64xf32>
      %14 = tpu.matmul %12, %13, %cst {dimension_numbers = #tpu.dot_dimension_numbers<[1], [0], [0], [1], [0, 0, 1, 1], [], []>} : vector<128x16xbf16>, vector<16x64xbf16>, vector<128x64xf32> -> vector<128x64xf32>
      %c0_8 = arith.constant 0 : index
      %c0_9 = arith.constant 0 : index
      %15 = vector.load %arg7[%c0_8, %c0_9] : memref<1x64xf32, #tpu.memory_space<vmem>>, vector<1x64xf32>
      %16 = vector.broadcast %15 : vector<1x64xf32> to vector<128x64xf32>
      %17 = arith.addf %14, %16 : vector<128x64xf32>
      %18 = arith.truncf %17 : vector<128x64xf32> to vector<128x64xbf16>
      %c0_10 = arith.constant 0 : index
      %c0_11 = arith.constant 0 : index
      %19 = vector.load %arg13[%c0_10, %c0_11] : memref<128x64xbf16, #tpu.memory_space<vmem>>, vector<128x64xbf16>
      tpu.vector_store %arg13[%c0_10, %c0_11], %18 {strides = array<i32>} : memref<128x64xbf16, #tpu.memory_space<vmem>>, vector<128x64xbf16>,
      %cst_12 = arith.constant -1.000000e+30 : f32
      %20 = vector.broadcast %cst_12 : f32 to vector<2x128x1xf32>
      %c0_13 = arith.constant 0 : index
      %c0_14 = arith.constant 0 : index
      %c0_15 = arith.constant 0 : index
      %21 = vector.load %arg14[%c0_13, %c0_14, %c0_15] : memref<2x128x1xf32, #tpu.memory_space<vmem>>, vector<2x128x1xf32>
      tpu.vector_store %arg14[%c0_13, %c0_14, %c0_15], %20 {strides = array<i32>} : memref<2x128x1xf32, #tpu.memory_space<vmem>>, vector<2x128x1xf32>,
      %cst_16 = arith.constant 0.000000e+00 : f32
      %22 = vector.broadcast %cst_16 : f32 to vector<2x128x1xf32>
      %c0_17 = arith.constant 0 : index
      %c0_18 = arith.constant 0 : index
      %c0_19 = arith.constant 0 : index
      %23 = vector.load %arg15[%c0_17, %c0_18, %c0_19] : memref<2x128x1xf32, #tpu.memory_space<vmem>>, vector<2x128x1xf32>
      tpu.vector_store %arg15[%c0_17, %c0_18, %c0_19], %22 {strides = array<i32>} : memref<2x128x1xf32, #tpu.memory_space<vmem>>, vector<2x128x1xf32>,
      %cst_20 = arith.constant 0.000000e+00 : f32
      %24 = vector.broadcast %cst_20 : f32 to vector<2x128x32xf32>
      %c0_21 = arith.constant 0 : index
      %c0_22 = arith.constant 0 : index
      %c0_23 = arith.constant 0 : index
      %25 = vector.load %arg16[%c0_21, %c0_22, %c0_23] : memref<2x128x32xf32, #tpu.memory_space<vmem>>, vector<2x128x32xf32>
      tpu.vector_store %arg16[%c0_21, %c0_22, %c0_23], %24 {strides = array<i32>} : memref<2x128x32xf32, #tpu.memory_space<vmem>>, vector<2x128x32xf32>,
    } else {
    }
    %3 = arith.index_cast %arg0 : i32 to index
    %4 = arith.index_cast %arg1 : i32 to index
    %5 = memref.load %arg2[%3, %4] : memref<1x1xi32, #tpu.memory_space<smem>>
    %c0_i32_1 = arith.constant 0 : i32
    %6 = arith.cmpi sgt, %5, %c0_i32_1 : i32
    %7 = arith.extui %6 : i1 to i32
    %c0_i32_2 = arith.constant 0 : i32
    %8 = arith.cmpi ne, %7, %c0_i32_2 : i32
    scf.if %8 {
      %c0 = arith.constant 0 : index
      %c0_5 = arith.constant 0 : index
      %12 = vector.load %arg4[%c0, %c0_5] : memref<128x16xbf16, #tpu.memory_space<vmem>>, vector<128x16xbf16>
      %c0_6 = arith.constant 0 : index
      %c0_7 = arith.constant 0 : index
      %13 = vector.load %arg8[%c0_6, %c0_7] : memref<16x128xbf16, #tpu.memory_space<vmem>>, vector<16x128xbf16>
      %cst = arith.constant dense<0.000000e+00> : vector<128x128xf32>
      %14 = tpu.matmul %12, %13, %cst {dimension_numbers = #tpu.dot_dimension_numbers<[1], [0], [0], [1], [0, 0, 1, 1], [], []>} : vector<128x16xbf16>, vector<16x128xbf16>, vector<128x128xf32> -> vector<128x128xf32>
      %c0_8 = arith.constant 0 : index
      %c0_9 = arith.constant 0 : index
      %15 = vector.load %arg9[%c0_8, %c0_9] : memref<1x128xf32, #tpu.memory_space<vmem>>, vector<1x128xf32>
      %16 = vector.broadcast %15 : vector<1x128xf32> to vector<128x128xf32>
      %17 = arith.addf %14, %16 : vector<128x128xf32>
      %c0_10 = arith.constant 0 : index
      %c0_11 = arith.constant 0 : index
      %18 = vector.load %arg5[%c0_10, %c0_11] : memref<128x128xbf16, #tpu.memory_space<vmem>>, vector<128x128xbf16>
      %19 = arith.extf %18 : vector<128x128xbf16> to vector<128x128xf32>
      %c0_12 = arith.constant 0 : index
      %c0_13 = arith.constant 0 : index
      %20 = vector.load %arg13[%c0_12, %c0_13] : memref<128x64xbf16, #tpu.memory_space<vmem>>, vector<128x64xbf16>
      %21 = vector.extract_strided_slice %20 {offsets = [0, 0], sizes = [128, 32], strides = [1, 1]} : vector<128x64xbf16> to vector<128x32xbf16>
      %22 = vector.extract_strided_slice %17 {offsets = [0, 0], sizes = [128, 32], strides = [1, 1]} : vector<128x128xf32> to vector<128x32xf32>
      %23 = arith.truncf %22 : vector<128x32xf32> to vector<128x32xbf16>
      %24 = vector.extract_strided_slice %17 {offsets = [0, 64], sizes = [128, 32], strides = [1, 1]} : vector<128x128xf32> to vector<128x32xf32>
      %25 = arith.truncf %24 : vector<128x32xf32> to vector<128x32xbf16>
      %cst_14 = arith.constant dense<0.000000e+00> : vector<128x128xf32>
      %26 = tpu.matmul %21, %23, %cst_14 {dimension_numbers = #tpu.dot_dimension_numbers<[1], [1], [0], [0], [0, 0, 1, 0], [], []>} : vector<128x32xbf16>, vector<128x32xbf16>, vector<128x128xf32> -> vector<128x128xf32>
      %27 = arith.addf %26, %19 : vector<128x128xf32>
      %c0_15 = arith.constant 0 : index
      %c0_16 = arith.constant 0 : index
      %c0_17 = arith.constant 0 : index
      %28 = vector.load %arg14[%c0_15, %c0_16, %c0_17] : memref<2x128x1xf32, #tpu.memory_space<vmem>>, vector<1x128x1xf32>
      %29 = vector.shape_cast %28 : vector<1x128x1xf32> to vector<128x1xf32>
      %cst_18 = arith.constant dense<0xFF800000> : vector<128xf32>
      %30 = vector.multi_reduction <maximumf>, %27, %cst_18 [1] : vector<128x128xf32> to vector<128xf32>
      %31 = vector.shape_cast %30 : vector<128xf32> to vector<128x1xf32>
      %32 = arith.maximumf %29, %31 : vector<128x1xf32>
      %33 = arith.subf %29, %32 : vector<128x1xf32>
      %34 = math.exp %33 : vector<128x1xf32>
      %35 = vector.broadcast %32 : vector<128x1xf32> to vector<128x128xf32>
      %36 = arith.subf %27, %35 : vector<128x128xf32>
      %37 = math.exp %36 : vector<128x128xf32>
      %c0_19 = arith.constant 0 : index
      %c0_20 = arith.constant 0 : index
      %c0_21 = arith.constant 0 : index
      %38 = vector.load %arg15[%c0_19, %c0_20, %c0_21] : memref<2x128x1xf32, #tpu.memory_space<vmem>>, vector<1x128x1xf32>
      %39 = vector.shape_cast %38 : vector<1x128x1xf32> to vector<128x1xf32>
      %40 = arith.mulf %34, %39 : vector<128x1xf32>
      %cst_22 = arith.constant dense<0.000000e+00> : vector<128xf32>
      %41 = vector.multi_reduction <add>, %37, %cst_22 [1] : vector<128x128xf32> to vector<128xf32>
      %42 = vector.shape_cast %41 : vector<128xf32> to vector<128x1xf32>
      %43 = arith.addf %40, %42 : vector<128x1xf32>
      %c0_23 = arith.constant 0 : index
      %c0_24 = arith.constant 0 : index
      %c0_25 = arith.constant 0 : index
      %44 = vector.load %arg15[%c0_23, %c0_24, %c0_25] : memref<2x128x1xf32, #tpu.memory_space<vmem>>, vector<1x128x1xf32>
      %45 = vector.shape_cast %44 : vector<1x128x1xf32> to vector<128x1xf32>
      %46 = vector.shape_cast %43 : vector<128x1xf32> to vector<1x128x1xf32>
      tpu.vector_store %arg15[%c0_23, %c0_24, %c0_25], %46 {strides = array<i32>} : memref<2x128x1xf32, #tpu.memory_space<vmem>>, vector<1x128x1xf32>,
      %c0_26 = arith.constant 0 : index
      %c0_27 = arith.constant 0 : index
      %c0_28 = arith.constant 0 : index
      %47 = vector.load %arg16[%c0_26, %c0_27, %c0_28] : memref<2x128x32xf32, #tpu.memory_space<vmem>>, vector<1x128x32xf32>
      %48 = vector.shape_cast %47 : vector<1x128x32xf32> to vector<128x32xf32>
      %49 = vector.broadcast %34 : vector<128x1xf32> to vector<128x32xf32>
      %50 = arith.mulf %49, %48 : vector<128x32xf32>
      %51 = arith.truncf %37 : vector<128x128xf32> to vector<128x128xbf16>
      %cst_29 = arith.constant dense<0.000000e+00> : vector<128x32xf32>
      %52 = tpu.matmul %51, %25, %cst_29 {dimension_numbers = #tpu.dot_dimension_numbers<[1], [0], [0], [1], [0, 0, 1, 1], [], []>} : vector<128x128xbf16>, vector<128x32xbf16>, vector<128x32xf32> -> vector<128x32xf32>
      %53 = arith.addf %50, %52 : vector<128x32xf32>
      %c0_30 = arith.constant 0 : index
      %c0_31 = arith.constant 0 : index
      %c0_32 = arith.constant 0 : index
      %54 = vector.load %arg16[%c0_30, %c0_31, %c0_32] : memref<2x128x32xf32, #tpu.memory_space<vmem>>, vector<1x128x32xf32>
      %55 = vector.shape_cast %54 : vector<1x128x32xf32> to vector<128x32xf32>
      %56 = vector.shape_cast %53 : vector<128x32xf32> to vector<1x128x32xf32>
      tpu.vector_store %arg16[%c0_30, %c0_31, %c0_32], %56 {strides = array<i32>} : memref<2x128x32xf32, #tpu.memory_space<vmem>>, vector<1x128x32xf32>,
      %c0_33 = arith.constant 0 : index
      %c0_34 = arith.constant 0 : index
      %c0_35 = arith.constant 0 : index
      %57 = vector.load %arg14[%c0_33, %c0_34, %c0_35] : memref<2x128x1xf32, #tpu.memory_space<vmem>>, vector<1x128x1xf32>
      %58 = vector.shape_cast %57 : vector<1x128x1xf32> to vector<128x1xf32>
      %59 = vector.shape_cast %32 : vector<128x1xf32> to vector<1x128x1xf32>
      tpu.vector_store %arg14[%c0_33, %c0_34, %c0_35], %59 {strides = array<i32>} : memref<2x128x1xf32, #tpu.memory_space<vmem>>, vector<1x128x1xf32>,
      %60 = vector.extract_strided_slice %20 {offsets = [0, 32], sizes = [128, 32], strides = [1, 1]} : vector<128x64xbf16> to vector<128x32xbf16>
      %61 = vector.extract_strided_slice %17 {offsets = [0, 32], sizes = [128, 32], strides = [1, 1]} : vector<128x128xf32> to vector<128x32xf32>
      %62 = arith.truncf %61 : vector<128x32xf32> to vector<128x32xbf16>
      %63 = vector.extract_strided_slice %17 {offsets = [0, 96], sizes = [128, 32], strides = [1, 1]} : vector<128x128xf32> to vector<128x32xf32>
      %64 = arith.truncf %63 : vector<128x32xf32> to vector<128x32xbf16>
      %cst_36 = arith.constant dense<0.000000e+00> : vector<128x128xf32>
      %65 = tpu.matmul %60, %62, %cst_36 {dimension_numbers = #tpu.dot_dimension_numbers<[1], [1], [0], [0], [0, 0, 1, 0], [], []>} : vector<128x32xbf16>, vector<128x32xbf16>, vector<128x128xf32> -> vector<128x128xf32>
      %66 = arith.addf %65, %19 : vector<128x128xf32>
      %c1 = arith.constant 1 : index
      %c0_37 = arith.constant 0 : index
      %c0_38 = arith.constant 0 : index
      %67 = vector.load %arg14[%c1, %c0_37, %c0_38] : memref<2x128x1xf32, #tpu.memory_space<vmem>>, vector<1x128x1xf32>
      %68 = vector.shape_cast %67 : vector<1x128x1xf32> to vector<128x1xf32>
      %cst_39 = arith.constant dense<0xFF800000> : vector<128xf32>
      %69 = vector.multi_reduction <maximumf>, %66, %cst_39 [1] : vector<128x128xf32> to vector<128xf32>
      %70 = vector.shape_cast %69 : vector<128xf32> to vector<128x1xf32>
      %71 = arith.maximumf %68, %70 : vector<128x1xf32>
      %72 = arith.subf %68, %71 : vector<128x1xf32>
      %73 = math.exp %72 : vector<128x1xf32>
      %74 = vector.broadcast %71 : vector<128x1xf32> to vector<128x128xf32>
      %75 = arith.subf %66, %74 : vector<128x128xf32>
      %76 = math.exp %75 : vector<128x128xf32>
      %c1_40 = arith.constant 1 : index
      %c0_41 = arith.constant 0 : index
      %c0_42 = arith.constant 0 : index
      %77 = vector.load %arg15[%c1_40, %c0_41, %c0_42] : memref<2x128x1xf32, #tpu.memory_space<vmem>>, vector<1x128x1xf32>
      %78 = vector.shape_cast %77 : vector<1x128x1xf32> to vector<128x1xf32>
      %79 = arith.mulf %73, %78 : vector<128x1xf32>
      %cst_43 = arith.constant dense<0.000000e+00> : vector<128xf32>
      %80 = vector.multi_reduction <add>, %76, %cst_43 [1] : vector<128x128xf32> to vector<128xf32>
      %81 = vector.shape_cast %80 : vector<128xf32> to vector<128x1xf32>
      %82 = arith.addf %79, %81 : vector<128x1xf32>
      %c1_44 = arith.constant 1 : index
      %c0_45 = arith.constant 0 : index
      %c0_46 = arith.constant 0 : index
      %83 = vector.load %arg15[%c1_44, %c0_45, %c0_46] : memref<2x128x1xf32, #tpu.memory_space<vmem>>, vector<1x128x1xf32>
      %84 = vector.shape_cast %83 : vector<1x128x1xf32> to vector<128x1xf32>
      %85 = vector.shape_cast %82 : vector<128x1xf32> to vector<1x128x1xf32>
      tpu.vector_store %arg15[%c1_44, %c0_45, %c0_46], %85 {strides = array<i32>} : memref<2x128x1xf32, #tpu.memory_space<vmem>>, vector<1x128x1xf32>,
      %c1_47 = arith.constant 1 : index
      %c0_48 = arith.constant 0 : index
      %c0_49 = arith.constant 0 : index
      %86 = vector.load %arg16[%c1_47, %c0_48, %c0_49] : memref<2x128x32xf32, #tpu.memory_space<vmem>>, vector<1x128x32xf32>
      %87 = vector.shape_cast %86 : vector<1x128x32xf32> to vector<128x32xf32>
      %88 = vector.broadcast %73 : vector<128x1xf32> to vector<128x32xf32>
      %89 = arith.mulf %88, %87 : vector<128x32xf32>
      %90 = arith.truncf %76 : vector<128x128xf32> to vector<128x128xbf16>
      %cst_50 = arith.constant dense<0.000000e+00> : vector<128x32xf32>
      %91 = tpu.matmul %90, %64, %cst_50 {dimension_numbers = #tpu.dot_dimension_numbers<[1], [0], [0], [1], [0, 0, 1, 1], [], []>} : vector<128x128xbf16>, vector<128x32xbf16>, vector<128x32xf32> -> vector<128x32xf32>
      %92 = arith.addf %89, %91 : vector<128x32xf32>
      %c1_51 = arith.constant 1 : index
      %c0_52 = arith.constant 0 : index
      %c0_53 = arith.constant 0 : index
      %93 = vector.load %arg16[%c1_51, %c0_52, %c0_53] : memref<2x128x32xf32, #tpu.memory_space<vmem>>, vector<1x128x32xf32>
      %94 = vector.shape_cast %93 : vector<1x128x32xf32> to vector<128x32xf32>
      %95 = vector.shape_cast %92 : vector<128x32xf32> to vector<1x128x32xf32>
      tpu.vector_store %arg16[%c1_51, %c0_52, %c0_53], %95 {strides = array<i32>} : memref<2x128x32xf32, #tpu.memory_space<vmem>>, vector<1x128x32xf32>,
      %c1_54 = arith.constant 1 : index
      %c0_55 = arith.constant 0 : index
      %c0_56 = arith.constant 0 : index
      %96 = vector.load %arg14[%c1_54, %c0_55, %c0_56] : memref<2x128x1xf32, #tpu.memory_space<vmem>>, vector<1x128x1xf32>
      %97 = vector.shape_cast %96 : vector<1x128x1xf32> to vector<128x1xf32>
      %98 = vector.shape_cast %71 : vector<128x1xf32> to vector<1x128x1xf32>
      tpu.vector_store %arg14[%c1_54, %c0_55, %c0_56], %98 {strides = array<i32>} : memref<2x128x1xf32, #tpu.memory_space<vmem>>, vector<1x128x1xf32>,
    } else {
    }
    %c0_i32_3 = arith.constant 0 : i32
    %9 = arith.cmpi eq, %arg1, %c0_i32_3 : i32
    %10 = arith.extui %9 : i1 to i32
    %c0_i32_4 = arith.constant 0 : i32
    %11 = arith.cmpi ne, %10, %c0_i32_4 : i32
    scf.if %11 {
      %cst = arith.constant 0.000000e+00 : f32
      %12 = vector.broadcast %cst : f32 to vector<128x128xf32>
      %c0 = arith.constant 0 : index
      %c0_5 = arith.constant 0 : index
      %13 = vector.load %arg11[%c0, %c0_5] : memref<1x128xf32, #tpu.memory_space<vmem>>, vector<1x128xf32>
      %14 = vector.broadcast %13 : vector<1x128xf32> to vector<128x128xf32>
      %15 = arith.addf %12, %14 : vector<128x128xf32>
      %c0_6 = arith.constant 0 : index
      %c0_7 = arith.constant 0 : index
      %c0_8 = arith.constant 0 : index
      %16 = vector.load %arg15[%c0_6, %c0_7, %c0_8] : memref<2x128x1xf32, #tpu.memory_space<vmem>>, vector<1x128x1xf32>
      %17 = vector.shape_cast %16 : vector<1x128x1xf32> to vector<128x1xf32>
      %18 = tpu.reciprocal %17 {approx = true} : vector<128x1xf32> -> vector<128x1xf32>
      %c0_9 = arith.constant 0 : index
      %c0_10 = arith.constant 0 : index
      %c0_11 = arith.constant 0 : index
      %19 = vector.load %arg16[%c0_9, %c0_10, %c0_11] : memref<2x128x32xf32, #tpu.memory_space<vmem>>, vector<1x128x32xf32>
      %20 = vector.shape_cast %19 : vector<1x128x32xf32> to vector<128x32xf32>
      %21 = vector.broadcast %18 : vector<128x1xf32> to vector<128x32xf32>
      %22 = arith.mulf %20, %21 : vector<128x32xf32>
      %23 = arith.truncf %22 : vector<128x32xf32> to vector<128x32xbf16>
      %c0_12 = arith.constant 0 : index
      %c0_13 = arith.constant 0 : index
      %24 = vector.load %arg10[%c0_12, %c0_13] : memref<64x128xbf16, #tpu.memory_space<vmem>>, vector<32x128xbf16>
      %cst_14 = arith.constant dense<0.000000e+00> : vector<128x128xf32>
      %25 = tpu.matmul %23, %24, %cst_14 {dimension_numbers = #tpu.dot_dimension_numbers<[1], [0], [0], [1], [0, 0, 1, 1], [], []>} : vector<128x32xbf16>, vector<32x128xbf16>, vector<128x128xf32> -> vector<128x128xf32>
      %26 = arith.addf %15, %25 : vector<128x128xf32>
      %c1 = arith.constant 1 : index
      %c0_15 = arith.constant 0 : index
      %c0_16 = arith.constant 0 : index
      %27 = vector.load %arg15[%c1, %c0_15, %c0_16] : memref<2x128x1xf32, #tpu.memory_space<vmem>>, vector<1x128x1xf32>
      %28 = vector.shape_cast %27 : vector<1x128x1xf32> to vector<128x1xf32>
      %29 = tpu.reciprocal %28 {approx = true} : vector<128x1xf32> -> vector<128x1xf32>
      %c1_17 = arith.constant 1 : index
      %c0_18 = arith.constant 0 : index
      %c0_19 = arith.constant 0 : index
      %30 = vector.load %arg16[%c1_17, %c0_18, %c0_19] : memref<2x128x32xf32, #tpu.memory_space<vmem>>, vector<1x128x32xf32>
      %31 = vector.shape_cast %30 : vector<1x128x32xf32> to vector<128x32xf32>
      %32 = vector.broadcast %29 : vector<128x1xf32> to vector<128x32xf32>
      %33 = arith.mulf %31, %32 : vector<128x32xf32>
      %34 = arith.truncf %33 : vector<128x32xf32> to vector<128x32xbf16>
      %c32 = arith.constant 32 : index
      %c0_20 = arith.constant 0 : index
      %35 = vector.load %arg10[%c32, %c0_20] : memref<64x128xbf16, #tpu.memory_space<vmem>>, vector<32x128xbf16>
      %cst_21 = arith.constant dense<0.000000e+00> : vector<128x128xf32>
      %36 = tpu.matmul %34, %35, %cst_21 {dimension_numbers = #tpu.dot_dimension_numbers<[1], [0], [0], [1], [0, 0, 1, 1], [], []>} : vector<128x32xbf16>, vector<32x128xbf16>, vector<128x128xf32> -> vector<128x128xf32>
      %37 = arith.addf %26, %36 : vector<128x128xf32>
      %c0_22 = arith.constant 0 : index
      %c0_23 = arith.constant 0 : index
      %38 = vector.load %arg12[%c0_22, %c0_23] : memref<128x128xf32, #tpu.memory_space<vmem>>, vector<128x128xf32>
      tpu.vector_store %arg12[%c0_22, %c0_23], %37 {strides = array<i32>} : memref<128x128xf32, #tpu.memory_space<vmem>>, vector<128x128xf32>,
    } else {
    }
    return
  }
  func.func @transform_0(%arg0: i32, %arg1: i32, %arg2: memref<1x1xi32, #tpu.memory_space<smem>>) -> (i32, i32) {
    %c0_i32 = arith.constant 0 : i32
    %c0_i32_0 = arith.constant 0 : i32
    return %arg0, %c0_i32 : i32, i32
  }
  func.func @transform_1(%arg0: i32, %arg1: i32, %arg2: memref<1x1xi32, #tpu.memory_space<smem>>) -> (i32, i32) {
    %c0_i32 = arith.constant 0 : i32
    %c0_i32_0 = arith.constant 0 : i32
    return %arg1, %c0_i32 : i32, i32
  }
  func.func @transform_2(%arg0: i32, %arg1: i32, %arg2: memref<1x1xi32, #tpu.memory_space<smem>>) -> (i32, i32) {
    %c0_i32 = arith.constant 0 : i32
    return %arg0, %arg1 : i32, i32
  }
  func.func @transform_3(%arg0: i32, %arg1: i32, %arg2: memref<1x1xi32, #tpu.memory_space<smem>>) -> (i32, i32) {
    %c0_i32 = arith.constant 0 : i32
    %c0_i32_0 = arith.constant 0 : i32
    %c0_i32_1 = arith.constant 0 : i32
    return %c0_i32, %c0_i32_0 : i32, i32
  }
  func.func @transform_4(%arg0: i32, %arg1: i32, %arg2: memref<1x1xi32, #tpu.memory_space<smem>>) -> (i32, i32) {
    %c0_i32 = arith.constant 0 : i32
    %c0_i32_0 = arith.constant 0 : i32
    %c0_i32_1 = arith.constant 0 : i32
    return %c0_i32, %c0_i32_0 : i32, i32
  }
  func.func @transform_5(%arg0: i32, %arg1: i32, %arg2: memref<1x1xi32, #tpu.memory_space<smem>>) -> (i32, i32) {
    %c0_i32 = arith.constant 0 : i32
    %c0_i32_0 = arith.constant 0 : i32
    %c0_i32_1 = arith.constant 0 : i32
    return %c0_i32, %c0_i32_0 : i32, i32
  }
  func.func @transform_6(%arg0: i32, %arg1: i32, %arg2: memref<1x1xi32, #tpu.memory_space<smem>>) -> (i32, i32) {
    %c0_i32 = arith.constant 0 : i32
    %c0_i32_0 = arith.constant 0 : i32
    %c0_i32_1 = arith.constant 0 : i32
    return %c0_i32, %c0_i32_0 : i32, i32
  }
  func.func @transform_7(%arg0: i32, %arg1: i32, %arg2: memref<1x1xi32, #tpu.memory_space<smem>>) -> (i32, i32) {
    %c0_i32 = arith.constant 0 : i32
    %c0_i32_0 = arith.constant 0 : i32
    %c0_i32_1 = arith.constant 0 : i32
    return %c0_i32, %c0_i32_0 : i32, i32
  }
  func.func @transform_8(%arg0: i32, %arg1: i32, %arg2: memref<1x1xi32, #tpu.memory_space<smem>>) -> (i32, i32) {
    %c0_i32 = arith.constant 0 : i32
    %c0_i32_0 = arith.constant 0 : i32
    %c0_i32_1 = arith.constant 0 : i32
    return %c0_i32, %c0_i32_0 : i32, i32
  }
  func.func @transform_9(%arg0: i32, %arg1: i32, %arg2: memref<1x1xi32, #tpu.memory_space<smem>>) -> (i32, i32) {
    %c0_i32 = arith.constant 0 : i32
    %c0_i32_0 = arith.constant 0 : i32
    return %arg0, %c0_i32 : i32, i32
  }
}

</mosaic_0001>

<bundles_post_ra>
// kernel: tpu_custom_call.1
= control target key start
LH: loop header
LB: loop body
LE: loop exit
PB: predicated region body
PF: predicated region fallthrough
CT: control target
= control target key end

     0   :  { %16 = vsyncpa [#allocation9], 0  ;;  %vm111_vm0 = vcmask 130048   ;;  %vm250_vm1 = vcmask 7168   ;;  %vm315_vm2 = vcmask 261120   ;;  %v3568_v10 = vmov 0.0   ;;  %s5037_s0 = inlined_call_operand.<no memory space> [shape: s32[1,1], index: 0, kind: input, shape index: {}]   ;;  %s5038_s1 = inlined_call_operand.vmem [shape: bf16[128,16], index: 1, kind: input, shape index: {}]   ;;  %s5039_s2 = inlined_call_operand.vmem [shape: bf16[128,16], index: 2, kind: input, shape index: {}]   ;;  %s5040_s3 = inlined_call_operand.vmem [shape: bf16[128,128], index: 3, kind: input, shape index: {}]   ;;  %s5041_s4 = inlined_call_operand.vmem [shape: bf16[16,64], index: 4, kind: input, shape index: {}]   ;;  %s5042_s5 = inlined_call_operand.vmem [shape: f32[1,64], index: 5, kind: input, shape index: {}]   ;;  %s5043_s6 = inlined_call_operand.vmem [shape: bf16[16,128], index: 6, kind: input, shape index: {}]   ;;  %s5044_s7 = inlined_call_operand.vmem [shape: f32[1,128], index: 7, kind: input, shape index: {}]   ;;  %s5045_s8 = inlined_call_operand.vmem [shape: bf16[64,128], index: 8, kind: input, shape index: {}]   ;;  %s5046_s9 = inlined_call_operand.vmem [shape: f32[1,128], index: 9, kind: input, shape index: {}]   ;;  %s5047_s10 = inlined_call_operand.hbm [shape: f32[128,128], index: 10, kind: output, shape index: {}]  }
   0x1   :  { %v3325_v0 = vld [vmem:[%s5041_s4] sm:$0xff]   ;;  %v3328_v3 = vld [vmem:[%s5038_s1 + $0x8] sm:$0xff]   ;;  %v3330_v5 = vld [vmem:[%s5038_s1 + $0x10] sm:$0xff]   ;;  %v3567_v9 = vmov -1e+30   ;;  %283 = vst.msk [vmem:[#allocation4] sm:$0xff] %vm250_vm1, %v3568_v10 }
   0x2   :  { %v3326_v1 = vld [vmem:[%s5038_s1] sm:$0xff]   ;;  %3061 = vmatprep.subr.bf16.mxu0 %v3325_v0  ;;  %3265 = vmatprep.subr.bf16.mxu1 %v3325_v0  ;;  %v3329_v4 = vld [vmem:[%s5038_s1 + $0x28] sm:$0xff]   ;;  %v3331_v6 = vld [vmem:[%s5038_s1 + $0x30] sm:$0xff]   ;;  %251 = vst.msk [vmem:[#allocation3] sm:$0xff] %vm250_vm1, %v3567_v9  ;;  %vm241_vm3 = vcmask 523264   ;;  %p2864_p0 = scmp.le.s32.totalorder %s5037_s0, 0 }
   0x3   :  { %v3327_v2 = vld [vmem:[%s5038_s1 + $0x20] sm:$0xff]   ;;  %3062 = vmatpush3.bf16.msra.mxu0 %v3325_v0  ;;  %3266 = vmatpush3.bf16.msra.mxu1 %v3325_v0  ;;  %v3332_v7 = vld [vmem:[%s5038_s1 + $0x18] sm:$0xff]   ;;  %252 = vst.msk [vmem:[#allocation3 + $0x8] sm:$0xff] %vm250_vm1, %v3567_v9  ;;  %253 = vst.msk [vmem:[#allocation3 + $0x10] sm:$0xff] %vm250_vm1, %v3567_v9 }
   0x4   :  { %3063 = vmatprep.mubr.msk.bf16.mxu0 %vm111_vm0, %v3326_v1  ;;  %3071 = vmatprep.mubr.msk.bf16.mxu1 %vm111_vm0, %v3327_v2  ;;  %v3333_v8 = vld [vmem:[%s5038_s1 + $0x38] sm:$0xff]   ;;  %254 = vst.msk [vmem:[#allocation3 + $0x18] sm:$0xff] %vm250_vm1, %v3567_v9  ;;  %255 = vst.msk [vmem:[#allocation3 + $0x20] sm:$0xff] %vm250_vm1, %v3567_v9  ;;  %v2846_v12 = vld [vmem:[%s5042_s5] ss:$0 sm:$0xff] }
   0x5   :  { %256 = vst.msk [vmem:[#allocation3 + $0x28] sm:$0xff] %vm250_vm1, %v3567_v9  ;;  %257 = vst.msk [vmem:[#allocation3 + $0x30] sm:$0xff] %vm250_vm1, %v3567_v9 }
   0x6   :  { %3064 = vmatmul.mubr.msk.bf16.vlgmr.msra.gmra.mrb[0].mxu0 %vm111_vm0, %v3328_v3  ;;  %3072 = vmatmul.mubr.msk.bf16.vlgmr.msra.gmra.mrb[0].mxu1 %vm111_vm0, %v3329_v4  ;;  %258 = vst.msk [vmem:[#allocation3 + $0x38] sm:$0xff] %vm250_vm1, %v3567_v9  ;;  %259 = vst.msk [vmem:[#allocation3 + $0x40] sm:$0xff] %vm250_vm1, %v3567_v9 }
   0x7   :  { %3067 = vmatprep.mubr.msk.bf16.mxu0 %vm111_vm0, %v3330_v5  ;;  %3075 = vmatprep.mubr.msk.bf16.mxu1 %vm111_vm0, %v3331_v6  ;;  %260 = vst.msk [vmem:[#allocation3 + $0x48] sm:$0xff] %vm250_vm1, %v3567_v9  ;;  %261 = vst.msk [vmem:[#allocation3 + $0x50] sm:$0xff] %vm250_vm1, %v3567_v9 }
   0x8   :  { %262 = vst.msk [vmem:[#allocation3 + $0x58] sm:$0xff] %vm250_vm1, %v3567_v9  ;;  %263 = vst.msk [vmem:[#allocation3 + $0x60] sm:$0xff] %vm250_vm1, %v3567_v9 }
   0x9   :  { %264 = vst.msk [vmem:[#allocation3 + $0x68] sm:$0xff] %vm250_vm1, %v3567_v9  ;;  %265 = vst.msk [vmem:[#allocation3 + $0x70] sm:$0xff] %vm250_vm1, %v3567_v9 }
   0xa   :  { %266 = vst.msk [vmem:[#allocation3 + $0x78] sm:$0xff] %vm250_vm1, %v3567_v9  ;;  %267 = vst.msk [vmem:[#allocation3 + $0x80] sm:$0xff] %vm250_vm1, %v3567_v9 }
   0xb   :  { %268 = vst.msk [vmem:[#allocation3 + $0x88] sm:$0xff] %vm250_vm1, %v3567_v9  ;;  %269 = vst.msk [vmem:[#allocation3 + $0x90] sm:$0xff] %vm250_vm1, %v3567_v9 }
   0xc   :  { %270 = vst.msk [vmem:[#allocation3 + $0x98] sm:$0xff] %vm250_vm1, %v3567_v9  ;;  %271 = vst.msk [vmem:[#allocation3 + $0xa0] sm:$0xff] %vm250_vm1, %v3567_v9 }
   0xd   :  { %272 = vst.msk [vmem:[#allocation3 + $0xa8] sm:$0xff] %vm250_vm1, %v3567_v9  ;;  %273 = vst.msk [vmem:[#allocation3 + $0xb0] sm:$0xff] %vm250_vm1, %v3567_v9 }
   0xe   :  { %3068 = vmatmul.mubr.msk.bf16.gmra.mrb[4].mxu0 %vm111_vm0, %v3332_v7  ;;  %3076 = vmatmul.mubr.msk.bf16.gmra.mrb[4].mxu1 %vm111_vm0, %v3333_v8  ;;  %274 = vst.msk [vmem:[#allocation3 + $0xb8] sm:$0xff] %vm250_vm1, %v3567_v9  ;;  %275 = vst.msk [vmem:[#allocation3 + $0xc0] sm:$0xff] %vm250_vm1, %v3567_v9 }
   0xf   :  { %276 = vst.msk [vmem:[#allocation3 + $0xc8] sm:$0xff] %vm250_vm1, %v3567_v9  ;;  %277 = vst.msk [vmem:[#allocation3 + $0xd0] sm:$0xff] %vm250_vm1, %v3567_v9 }
  0x10   :  { %278 = vst.msk [vmem:[#allocation3 + $0xd8] sm:$0xff] %vm250_vm1, %v3567_v9  ;;  %279 = vst.msk [vmem:[#allocation3 + $0xe0] sm:$0xff] %vm250_vm1, %v3567_v9 }
  0x11   :  { %280 = vst.msk [vmem:[#allocation3 + $0xe8] sm:$0xff] %vm250_vm1, %v3567_v9  ;;  %281 = vst.msk [vmem:[#allocation3 + $0xf0] sm:$0xff] %vm250_vm1, %v3567_v9 }
  0x12   :  { %282 = vst.msk [vmem:[#allocation3 + $0xf8] sm:$0xff] %vm250_vm1, %v3567_v9  ;;  %284 = vst.msk [vmem:[#allocation4 + $0x8] sm:$0xff] %vm250_vm1, %v3568_v10 }
  0x13   :  { %285 = vst.msk [vmem:[#allocation4 + $0x10] sm:$0xff] %vm250_vm1, %v3568_v10  ;;  %286 = vst.msk [vmem:[#allocation4 + $0x18] sm:$0xff] %vm250_vm1, %v3568_v10 }
  0x14   :  { %287 = vst.msk [vmem:[#allocation4 + $0x20] sm:$0xff] %vm250_vm1, %v3568_v10  ;;  %288 = vst.msk [vmem:[#allocation4 + $0x28] sm:$0xff] %vm250_vm1, %v3568_v10 }
  0x15   :  { %289 = vst.msk [vmem:[#allocation4 + $0x30] sm:$0xff] %vm250_vm1, %v3568_v10  ;;  %290 = vst.msk [vmem:[#allocation4 + $0x38] sm:$0xff] %vm250_vm1, %v3568_v10 }
  0x16   :  { %291 = vst.msk [vmem:[#allocation4 + $0x40] sm:$0xff] %vm250_vm1, %v3568_v10  ;;  %292 = vst.msk [vmem:[#allocation4 + $0x48] sm:$0xff] %vm250_vm1, %v3568_v10 }
  0x17   :  { %293 = vst.msk [vmem:[#allocation4 + $0x50] sm:$0xff] %vm250_vm1, %v3568_v10  ;;  %294 = vst.msk [vmem:[#allocation4 + $0x58] sm:$0xff] %vm250_vm1, %v3568_v10 }
  0x18   :  { %295 = vst.msk [vmem:[#allocation4 + $0x60] sm:$0xff] %vm250_vm1, %v3568_v10  ;;  %296 = vst.msk [vmem:[#allocation4 + $0x68] sm:$0xff] %vm250_vm1, %v3568_v10 }
  0x19   :  { %297 = vst.msk [vmem:[#allocation4 + $0x70] sm:$0xff] %vm250_vm1, %v3568_v10  ;;  %298 = vst.msk [vmem:[#allocation4 + $0x78] sm:$0xff] %vm250_vm1, %v3568_v10 }
  0x1a   :  { %299 = vst.msk [vmem:[#allocation4 + $0x80] sm:$0xff] %vm250_vm1, %v3568_v10  ;;  %300 = vst.msk [vmem:[#allocation4 + $0x88] sm:$0xff] %vm250_vm1, %v3568_v10 }
  0x1b   :  { %301 = vst.msk [vmem:[#allocation4 + $0x90] sm:$0xff] %vm250_vm1, %v3568_v10  ;;  %302 = vst.msk [vmem:[#allocation4 + $0x98] sm:$0xff] %vm250_vm1, %v3568_v10 }
  0x1c   :  { %303 = vst.msk [vmem:[#allocation4 + $0xa0] sm:$0xff] %vm250_vm1, %v3568_v10  ;;  %304 = vst.msk [vmem:[#allocation4 + $0xa8] sm:$0xff] %vm250_vm1, %v3568_v10 }
  0x1d   :  { %305 = vst.msk [vmem:[#allocation4 + $0xb0] sm:$0xff] %vm250_vm1, %v3568_v10  ;;  %306 = vst.msk [vmem:[#allocation4 + $0xb8] sm:$0xff] %vm250_vm1, %v3568_v10 }
  0x1e   :  { %307 = vst.msk [vmem:[#allocation4 + $0xc0] sm:$0xff] %vm250_vm1, %v3568_v10  ;;  %308 = vst.msk [vmem:[#allocation4 + $0xc8] sm:$0xff] %vm250_vm1, %v3568_v10 }
  0x1f   :  { %309 = vst.msk [vmem:[#allocation4 + $0xd0] sm:$0xff] %vm250_vm1, %v3568_v10  ;;  %310 = vst.msk [vmem:[#allocation4 + $0xd8] sm:$0xff] %vm250_vm1, %v3568_v10 }
  0x20   :  { %311 = vst.msk [vmem:[#allocation4 + $0xe0] sm:$0xff] %vm250_vm1, %v3568_v10  ;;  %312 = vst.msk [vmem:[#allocation4 + $0xe8] sm:$0xff] %vm250_vm1, %v3568_v10 }
  0x21   :  { %313 = vst.msk [vmem:[#allocation4 + $0xf0] sm:$0xff] %vm250_vm1, %v3568_v10  ;;  %314 = vst.msk [vmem:[#allocation4 + $0xf8] sm:$0xff] %vm250_vm1, %v3568_v10 }
  0x22   :  { %316 = vst.msk [vmem:[#allocation5] sm:$0xff] %vm315_vm2, %v3568_v10  ;;  %317 = vst.msk [vmem:[#allocation5 + $0x8] sm:$0xff] %vm315_vm2, %v3568_v10 }
  0x23   :  { %318 = vst.msk [vmem:[#allocation5 + $0x10] sm:$0xff] %vm315_vm2, %v3568_v10  ;;  %319 = vst.msk [vmem:[#allocation5 + $0x18] sm:$0xff] %vm315_vm2, %v3568_v10 }
  0x24   :  { %320 = vst.msk [vmem:[#allocation5 + $0x20] sm:$0xff] %vm315_vm2, %v3568_v10  ;;  %321 = vst.msk [vmem:[#allocation5 + $0x28] sm:$0xff] %vm315_vm2, %v3568_v10 }
  0x25   :  { %322 = vst.msk [vmem:[#allocation5 + $0x30] sm:$0xff] %vm315_vm2, %v3568_v10  ;;  %323 = vst.msk [vmem:[#allocation5 + $0x38] sm:$0xff] %vm315_vm2, %v3568_v10 }
  0x26   :  { %324 = vst.msk [vmem:[#allocation5 + $0x40] sm:$0xff] %vm315_vm2, %v3568_v10  ;;  %325 = vst.msk [vmem:[#allocation5 + $0x48] sm:$0xff] %vm315_vm2, %v3568_v10 }
  0x27   :  { %326 = vst.msk [vmem:[#allocation5 + $0x50] sm:$0xff] %vm315_vm2, %v3568_v10  ;;  %327 = vst.msk [vmem:[#allocation5 + $0x58] sm:$0xff] %vm315_vm2, %v3568_v10 }
  0x28   :  { %328 = vst.msk [vmem:[#allocation5 + $0x60] sm:$0xff] %vm315_vm2, %v3568_v10  ;;  %329 = vst.msk [vmem:[#allocation5 + $0x68] sm:$0xff] %vm315_vm2, %v3568_v10 }
  0x29   :  { %330 = vst.msk [vmem:[#allocation5 + $0x70] sm:$0xff] %vm315_vm2, %v3568_v10  ;;  %331 = vst.msk [vmem:[#allocation5 + $0x78] sm:$0xff] %vm315_vm2, %v3568_v10 }
  0x2a   :  { %332 = vst.msk [vmem:[#allocation5 + $0x80] sm:$0xff] %vm315_vm2, %v3568_v10  ;;  %333 = vst.msk [vmem:[#allocation5 + $0x88] sm:$0xff] %vm315_vm2, %v3568_v10 }
  0x2b   :  { %334 = vst.msk [vmem:[#allocation5 + $0x90] sm:$0xff] %vm315_vm2, %v3568_v10  ;;  %335 = vst.msk [vmem:[#allocation5 + $0x98] sm:$0xff] %vm315_vm2, %v3568_v10 }
  0x2c   :  { %336 = vst.msk [vmem:[#allocation5 + $0xa0] sm:$0xff] %vm315_vm2, %v3568_v10  ;;  %337 = vst.msk [vmem:[#allocation5 + $0xa8] sm:$0xff] %vm315_vm2, %v3568_v10 }
  0x2d   :  { %338 = vst.msk [vmem:[#allocation5 + $0xb0] sm:$0xff] %vm315_vm2, %v3568_v10  ;;  %339 = vst.msk [vmem:[#allocation5 + $0xb8] sm:$0xff] %vm315_vm2, %v3568_v10 }
  0x2e   :  { %340 = vst.msk [vmem:[#allocation5 + $0xc0] sm:$0xff] %vm315_vm2, %v3568_v10  ;;  %341 = vst.msk [vmem:[#allocation5 + $0xc8] sm:$0xff] %vm315_vm2, %v3568_v10 }
  0x2f   :  { %342 = vst.msk [vmem:[#allocation5 + $0xd0] sm:$0xff] %vm315_vm2, %v3568_v10  ;;  %343 = vst.msk [vmem:[#allocation5 + $0xd8] sm:$0xff] %vm315_vm2, %v3568_v10 }
  0x30   :  { %344 = vst.msk [vmem:[#allocation5 + $0xe0] sm:$0xff] %vm315_vm2, %v3568_v10  ;;  %345 = vst.msk [vmem:[#allocation5 + $0xe8] sm:$0xff] %vm315_vm2, %v3568_v10 }
  0x31   :  { %346 = vst.msk [vmem:[#allocation5 + $0xf0] sm:$0xff] %vm315_vm2, %v3568_v10  ;;  %347 = vst.msk [vmem:[#allocation5 + $0xf8] sm:$0xff] %vm315_vm2, %v3568_v10 }
  0xd9   :  { %v3065_v11 = vpop.f32.mrb[0].mxu0  ;;  %v3073_v13 = vpop.f32.mrb[0].mxu1 }
  0xda   :  { %v170_v14 = vpop.f32.mrb[1].mxu0  ;;  %v202_v15 = vpop.f32.mrb[1].mxu1  ;;  %v179_v18 = vadd.f32 %v3065_v11, %v2846_v12  ;;  %v211_v19 = vadd.f32 %v3073_v13, %v2846_v12 }
  0xdb   :  { %v3066_v16 = vpop.f32.mrb[2].mxu0  ;;  %v3074_v17 = vpop.f32.mrb[2].mxu1  ;;  %v171_v24 = vadd.f32 %v2846_v12, %v170_v14  ;;  %v203_v25 = vadd.f32 %v2846_v12, %v202_v15 }
  0xdc   :  { %v182_v20 = vadd.f32 %v3066_v16, %v2846_v12  ;;  %v214_v21 = vadd.f32 %v3074_v17, %v2846_v12  ;;  %v173_v22 = vpop.f32.mrb[3].mxu0  ;;  %v205_v23 = vpop.f32.mrb[3].mxu1 }
  0xdd   :  { %v174_v26 = vadd.f32 %v2846_v12, %v173_v22  ;;  %v206_v27 = vadd.f32 %v2846_v12, %v205_v23 }
  0xde   :  { %v234_v28 = vpack.c.bf16 %v182_v20, %v179_v18  ;;  %v238_v29 = vpack.c.bf16 %v214_v21, %v211_v19 }
  0xdf   :  { %v233_v30 = vpack.c.bf16 %v174_v26, %v171_v24  ;;  %v237_v31 = vpack.c.bf16 %v206_v27, %v203_v25 }
  0xe0   :  { %243 = vst.msk [vmem:[#allocation2 + $0x8] sm:$0xff] %vm241_vm3, %v234_v28  ;;  %247 = vst.msk [vmem:[#allocation2 + $0x28] sm:$0xff] %vm241_vm3, %v238_v29 }
  0xe1   :  { %242 = vst.msk [vmem:[#allocation2] sm:$0xff] %vm241_vm3, %v233_v30  ;;  %246 = vst.msk [vmem:[#allocation2 + $0x20] sm:$0xff] %vm241_vm3, %v237_v31  ;;  %v3069_v32 = vpop.f32.mrb[4].mxu0  ;;  %v3077_v33 = vpop.f32.mrb[4].mxu1 }
  0xe2   :  { %v186_v34 = vpop.f32.mrb[5].mxu0  ;;  %v218_v35 = vpop.f32.mrb[5].mxu1  ;;  %v195_v38 = vadd.f32 %v3069_v32, %v2846_v12  ;;  %v227_v39 = vadd.f32 %v3077_v33, %v2846_v12 }
  0xe3   :  { %v3070_v36 = vpop.f32.mrb[6].mxu0  ;;  %v3078_v37 = vpop.f32.mrb[6].mxu1  ;;  %v187_v44 = vadd.f32 %v2846_v12, %v186_v34  ;;  %v219_v45 = vadd.f32 %v2846_v12, %v218_v35  ;;  %355 = sbr.rel (%p2864_p0) target bundleno = 1939 (0x793), region = 45 }
  0xe4   :  { %v198_v40 = vadd.f32 %v3070_v36, %v2846_v12  ;;  %v230_v41 = vadd.f32 %v3078_v37, %v2846_v12  ;;  %v189_v42 = vpop.f32.mrb[7].mxu0  ;;  %v221_v43 = vpop.f32.mrb[7].mxu1 }
  0xe5   :  { %v190_v46 = vadd.f32 %v2846_v12, %v189_v42  ;;  %v222_v47 = vadd.f32 %v2846_v12, %v221_v43 }
  0xe6   :  { %v236_v48 = vpack.c.bf16 %v198_v40, %v195_v38  ;;  %v240_v49 = vpack.c.bf16 %v230_v41, %v227_v39 }
  0xe7   :  { %v235_v50 = vpack.c.bf16 %v190_v46, %v187_v44  ;;  %v239_v51 = vpack.c.bf16 %v222_v47, %v219_v45 }
  0xe8   :  { %245 = vst.msk [vmem:[#allocation2 + $0x18] sm:$0xff] %vm241_vm3, %v236_v48  ;;  %249 = vst.msk [vmem:[#allocation2 + $0x38] sm:$0xff] %vm241_vm3, %v240_v49 }
  0xe9   :  { %244 = vst.msk [vmem:[#allocation2 + $0x10] sm:$0xff] %vm241_vm3, %v235_v50  ;;  %248 = vst.msk [vmem:[#allocation2 + $0x30] sm:$0xff] %vm241_vm3, %v239_v51 }
  0xea   :  { %v3336_v52 = vld [vmem:[%s5043_s6] sm:$0xff]   ;;  %v3338_v54 = vld [vmem:[%s5039_s2 + $0x8] sm:$0xff]   ;;  %v3339_v55 = vld [vmem:[%s5039_s2 + $0x10] sm:$0xff]   ;;  %s3570_s30 = smov 64   ;;  %s3572_s20 = smov 32  }
  0xeb   :  { %v3337_v53 = vld [vmem:[%s5039_s2] sm:$0xff]   ;;  %3079 = vmatprep.subr.bf16.mxu0 %v3336_v52  ;;  %v3340_v56 = vld [vmem:[%s5039_s2 + $0x18] sm:$0xff]   ;;  %v3342_v58 = vld [vmem:[%s5039_s2 + $0x28] sm:$0xff]  }
  0xec   :  { %3080 = vmatpush3.bf16.msra.mxu0 %v3336_v52  ;;  %3081 = vmatprep.mubr.msk.bf16.mxu0 %vm111_vm0, %v3337_v53  ;;  %v3341_v57 = vld [vmem:[%s5039_s2 + $0x20] sm:$0xff]   ;;  %v3343_v59 = vld [vmem:[%s5039_s2 + $0x30] sm:$0xff]   ;;  %v3344_v60 = vld [vmem:[%s5039_s2 + $0x38] sm:$0xff]  }
  0xed   :  { %v3876_v61 = vld [vmem:[#allocation2] sm:$0xff]  ;;  %v3931_v47 = vld [vmem:[#allocation2 + $0x8] sm:$0xff] }
  0xee   :  { %3113 = vmatprep.mubr.msk.bf16.mxu1 %vm315_vm2, %v3876_v61  ;;  %v2865_v63 = vld [vmem:[%s5044_s7] ss:$0 sm:$0xff]  ;;  %v3947_v51 = vld [vmem:[#allocation2 + $0x28] sm:$0xff] }
  0xef   :  { %3082 = vmatmul.mubr.msk.bf16.vlgmr.msra.gmra.mrb[0].mxu0 %vm111_vm0, %v3338_v54  ;;  %v3939_v49 = vld [vmem:[#allocation2 + $0x18] sm:$0xff]  ;;  %v3941_v50 = vld [vmem:[#allocation2 + $0x20] sm:$0xff]  ;;  %v3962_v54 = vld [vmem:[%s5040_s3 + $0x8] sm:$0xff]  }
  0xf0   :  { %3085 = vmatprep.mubr.msk.bf16.mxu0 %vm111_vm0, %v3339_v55  ;;  %v3933_v48 = vld [vmem:[#allocation2 + $0x10] sm:$0xff]  ;;  %v3955_v53 = vld [vmem:[#allocation2 + $0x38] sm:$0xff]  ;;  %5094 = vst [vmem:[#allocation16_spill] sm:$0xff] %v3962_v54  ;;  %v3967_v55 = vld [vmem:[%s5040_s3] sm:$0xff]  }
  0xf1   :  { %v3949_v52 = vld [vmem:[#allocation2 + $0x30] sm:$0xff]  ;;  %5095 = vst [vmem:[#allocation17_spill] sm:$0xff] %v3967_v55 }
  0xf7   :  { %3086 = vmatmul.mubr.msk.bf16.gmra.mrb[4].mxu0 %vm111_vm0, %v3340_v56  ;;  %v5063_v56 = vunpack.c.l.bf16 %v3962_v54 }
  0xf8   :  { %3089 = vmatprep.mubr.msk.bf16.mxu0 %vm111_vm0, %v3341_v57  ;;  %v5061_v57 = vunpack.c.l.bf16 %v3967_v55 }
  0xff   :  { %3090 = vmatmul.mubr.msk.bf16.gmra.mrb[8].mxu0 %vm111_vm0, %v3342_v58 }
 0x100   :  { %3093 = vmatprep.mubr.msk.bf16.mxu0 %vm111_vm0, %v3343_v59 }
 0x107   :  { %3094 = vmatmul.mubr.msk.bf16.gmra.mrb[12].mxu0 %vm111_vm0, %v3344_v60 }
 0x1c2   :  { %v3083_v62 = vpop.f32.mrb[0].mxu0 }
 0x1c3   :  { %v486_v0 = vpop.f32.mrb[1].mxu0  ;;  %v495_v2 = vadd.f32 %v3083_v62, %v2865_v63  ;;  %v5062_v62 = vunpack.c.h.bf16 %v3962_v54 }
 0x1c4   :  { %v3084_v1 = vpop.f32.mrb[2].mxu0  ;;  %v487_v5 = vadd.f32 %v2865_v63, %v486_v0 }
 0x1c5   :  { %v498_v3 = vadd.f32 %v3084_v1, %v2865_v63  ;;  %v489_v4 = vpop.f32.mrb[3].mxu0  ;;  %v5060_v1 = vunpack.c.h.bf16 %v3967_v55  ;;  %v4260_v55 = vld [vmem:[#allocation3 + $0x68] sm:$0xff] }
 0x1c6   :  { %v490_v6 = vadd.f32 %v2865_v63, %v489_v4 }
 0x1c7   :  { %v3883_v7 = vpack.c.bf16 %v498_v3, %v495_v2 }
 0x1c8   :  { %v3885_v8 = vpack.c.bf16 %v490_v6, %v487_v5 }
 0x1c9   :  { %5089 = vst [vmem:[#allocation11_spill] sm:$0xff] %v3883_v7  ;;  %v626_v20 = vsel %vm315_vm2, %v3883_v7, 0 }
 0x1ca   :  { %5090 = vst [vmem:[#allocation12_spill] sm:$0xff] %v3885_v8  ;;  %3299 = vmatprep.subr.msk.bf16.mxu1 %vm315_vm2, %v3885_v8  ;;  %v623_v9 = vsel %vm315_vm2, %v3885_v8, 0  ;;  %v3087_v10 = vpop.f32.mrb[4].mxu0 }
 0x1cb   :  { %3098 = vmatpush3.bf16.xpose.msra.mxu1 %v623_v9  ;;  %v511_v11 = vadd.f32 %v3087_v10, %v2865_v63  ;;  %v502_v12 = vpop.f32.mrb[5].mxu0 }
 0x1cc   :  { %3300 = vmatprep.subr.msk.bf16.mxu1 %vm315_vm2, %v3883_v7  ;;  %v503_v13 = vadd.f32 %v2865_v63, %v502_v12  ;;  %v3088_v14 = vpop.f32.mrb[6].mxu0 }
 0x1cd   :  { %v514_v15 = vadd.f32 %v3088_v14, %v2865_v63  ;;  %v505_v16 = vpop.f32.mrb[7].mxu0  ;;  %v3569_v14 = vmov 0  }
 0x1ce   :  { %v506_v17 = vadd.f32 %v2865_v63, %v505_v16  ;;  %3334 = vset.pattern.permute.xlu1 %v3569_v14  ;;  %3335 = vset.pattern.permute.xlu0 %v3569_v14 }
 0x1cf   :  { %v3893_v18 = vpack.c.bf16 %v514_v15, %v511_v11 }
 0x1d0   :  { %v3895_v19 = vpack.c.bf16 %v506_v17, %v503_v13 }
 0x1d1   :  { %v632_v42 = vsel %vm315_vm2, %v3893_v18, 0 }
 0x1d2   :  { %5091 = vst [vmem:[#allocation13_spill] sm:$0xff] %v3895_v19  ;;  %v3091_v21 = vpop.f32.mrb[8].mxu0  ;;  %v629_v31 = vsel %vm315_vm2, %v3895_v19, 0 }
 0x1d3   :  { %3100 = vmatpush3.bf16.xpose.msra.mxu1 %v626_v20  ;;  %v527_v22 = vadd.f32 %v3091_v21, %v2865_v63  ;;  %v518_v23 = vpop.f32.mrb[9].mxu0 }
 0x1d4   :  { %3301 = vmatprep.subr.msk.bf16.mxu1 %vm315_vm2, %v3895_v19  ;;  %v519_v24 = vadd.f32 %v2865_v63, %v518_v23  ;;  %v3092_v25 = vpop.f32.mrb[10].mxu0 }
 0x1d5   :  { %v530_v26 = vadd.f32 %v3092_v25, %v2865_v63  ;;  %v521_v27 = vpop.f32.mrb[11].mxu0 }
 0x1d6   :  { %v522_v28 = vadd.f32 %v2865_v63, %v521_v27  ;;  %v4020_v27 = vld [vmem:[%s5040_s3 + $0x28] sm:$0xff]  }
 0x1d7   :  { %v3901_v29 = vpack.c.bf16 %v530_v26, %v527_v22  ;;  %v4004_v22 = vld [vmem:[%s5040_s3 + $0x18] sm:$0xff]   ;;  %5098 = vst [vmem:[#allocation20_spill] sm:$0xff] %v4020_v27 }
 0x1d8   :  { %v3903_v30 = vpack.c.bf16 %v522_v28, %v519_v24  ;;  %5096 = vst [vmem:[#allocation18_spill] sm:$0xff] %v4004_v22  ;;  %v5058_v23 = vunpack.c.l.bf16 %v4004_v22  ;;  %v4010_v24 = vld [vmem:[%s5040_s3 + $0x10] sm:$0xff]  }
 0x1d9   :  { %v638_v44 = vsel %vm315_vm2, %v3901_v29, 0  ;;  %5097 = vst [vmem:[#allocation19_spill] sm:$0xff] %v4010_v24  ;;  %v5056_v26 = vunpack.c.l.bf16 %v4010_v24 }
 0x1da   :  { %v3095_v32 = vpop.f32.mrb[12].mxu0  ;;  %v635_v43 = vsel %vm315_vm2, %v3903_v30, 0 }
 0x1db   :  { %3102 = vmatpush3.bf16.xpose.msra.mxu1 %v629_v31  ;;  %v543_v33 = vadd.f32 %v3095_v32, %v2865_v63  ;;  %v534_v34 = vpop.f32.mrb[13].mxu0  ;;  %v5054_v31 = vunpack.c.l.bf16 %v4020_v27  ;;  %v5059_v32 = vunpack.c.h.bf16 %v4004_v22 }
 0x1dc   :  { %3302 = vmatprep.subr.msk.bf16.mxu1 %vm315_vm2, %v3893_v18  ;;  %v535_v35 = vadd.f32 %v2865_v63, %v534_v34  ;;  %v3096_v36 = vpop.f32.mrb[14].mxu0 }
 0x1dd   :  { %v546_v37 = vadd.f32 %v3096_v36, %v2865_v63  ;;  %v537_v38 = vpop.f32.mrb[15].mxu0 }
 0x1de   :  { %v538_v39 = vadd.f32 %v2865_v63, %v537_v38  ;;  %v4048_v38 = vld [vmem:[%s5040_s3 + $0x38] sm:$0xff]  }
 0x1df   :  { %v3909_v40 = vpack.c.bf16 %v546_v37, %v543_v33  ;;  %v4032_v33 = vld [vmem:[%s5040_s3 + $0x20] sm:$0xff]   ;;  %v5057_v37 = vunpack.c.h.bf16 %v4010_v24  ;;  %5100 = vst [vmem:[#allocation22_spill] sm:$0xff] %v4048_v38 }
 0x1e0   :  { %v3911_v41 = vpack.c.bf16 %v538_v39, %v535_v35  ;;  %5099 = vst [vmem:[#allocation21_spill] sm:$0xff] %v4032_v33  ;;  %v5052_v35 = vunpack.c.l.bf16 %v4032_v33 }
 0x1e1   :  { %5092 = vst [vmem:[#allocation14_spill] sm:$0xff] %v3909_v40  ;;  %v644_v46 = vsel %vm315_vm2, %v3909_v40, 0 }
 0x1e2   :  { %5093 = vst [vmem:[#allocation15_spill] sm:$0xff] %v3911_v41  ;;  %v641_v45 = vsel %vm315_vm2, %v3911_v41, 0 }
 0x1e3   :  { %3104 = vmatpush3.bf16.xpose.msra.mxu1 %v632_v42  ;;  %v5051_v42 = vunpack.c.l.bf16 %v4048_v38 }
 0x1e4   :  { %3303 = vmatprep.subr.msk.bf16.mxu1 %vm315_vm2, %v3903_v30 }
 0x1eb   :  { %3106 = vmatpush3.bf16.xpose.msra.mxu1 %v635_v43 }
 0x1ec   :  { %3304 = vmatprep.subr.msk.bf16.mxu1 %vm315_vm2, %v3901_v29 }
 0x1f3   :  { %3108 = vmatpush3.bf16.xpose.msra.mxu1 %v638_v44  ;;  %v5055_v44 = vunpack.c.h.bf16 %v4020_v27  ;;  %v4242_v27 = vld [vmem:[#allocation3 + $0x78] sm:$0xff] }
 0x1f4   :  { %3305 = vmatprep.subr.msk.bf16.mxu1 %vm315_vm2, %v3911_v41 }
 0x1fb   :  { %3110 = vmatpush3.bf16.xpose.msra.mxu1 %v641_v45  ;;  %v4065_v45 = vld [vmem:[%s5040_s3 + $0x30] sm:$0xff]   ;;  %s3571_s3 = smov 96  }
 0x1fc   :  { %3306 = vmatprep.subr.msk.bf16.mxu1 %vm315_vm2, %v3909_v40  ;;  %5101 = vst [vmem:[#allocation23_spill] sm:$0xff] %v4065_v45 }
 0x203   :  { %3112 = vmatpush3.bf16.xpose.msra.mxu1 %v644_v46 }
 0x20a   :  { %3114 = vmatmul.mubr.msk.bf16.vlgmr.msra.gmra.mrb[0].mxu1 %vm315_vm2, %v3931_v47 }
 0x20b   :  { %3117 = vmatprep.mubr.msk.bf16.mxu1 %vm315_vm2, %v3933_v48 }
 0x212   :  { %3118 = vmatmul.mubr.msk.bf16.gmra.mrb[4].mxu1 %vm315_vm2, %v3939_v49 }
 0x213   :  { %3121 = vmatprep.mubr.msk.bf16.mxu1 %vm315_vm2, %v3941_v50 }
 0x21a   :  { %3122 = vmatmul.mubr.msk.bf16.gmra.mrb[8].mxu1 %vm315_vm2, %v3947_v51 }
 0x21b   :  { %3125 = vmatprep.mubr.msk.bf16.mxu1 %vm315_vm2, %v3949_v52 }
 0x222   :  { %3126 = vmatmul.mubr.msk.bf16.gmra.mrb[12].mxu1 %vm315_vm2, %v3955_v53 }
 0x2dd   :  { %v3115_v58 = vpop.f32.mrb[0].mxu1 }
 0x2de   :  { %v3973_v59 = vadd.f32 %v3115_v58, %v5063_v56  ;;  %v680_v60 = vpop.f32.mrb[1].mxu1  ;;  %v5050_v58 = vunpack.c.l.bf16 %v4065_v45 }
 0x2df   :  { %v3978_v63 = vadd.f32 %v5061_v57, %v680_v60  ;;  %v3116_v0 = vpop.f32.mrb[2].mxu1 }
 0x2e0   :  { %763 = vmax.xlane.f32.xlu1 %v3973_v59  ;;  %v683_v2 = vpop.f32.mrb[3].mxu1  ;;  %v3985_v3 = vadd.f32 %v3116_v0, %v5062_v62  ;;  %v5053_v0 = vunpack.c.h.bf16 %v4032_v33 }
 0x2e1   :  { %759 = vmax.xlane.f32.xlu0 %v3978_v63  ;;  %v3989_v4 = vadd.f32 %v5060_v1, %v683_v2  ;;  %v5049_v2 = vunpack.c.h.bf16 %v4048_v38  ;;  %v4174_v1 = vld [vmem:[#allocation3 + $0x50] sm:$0xff] }
 0x2e4   :  { %765 = vmax.xlane.f32.xlu1 %v3985_v3 }
 0x2e5   :  { %761 = vmax.xlane.f32.xlu0 %v3989_v4  ;;  %v3119_v5 = vpop.f32.mrb[4].mxu1 }
 0x2e6   :  { %v696_v6 = vpop.f32.mrb[5].mxu1  ;;  %v4014_v25 = vadd.f32 %v3119_v5, %v5058_v23 }
 0x2e7   :  { %v3120_v9 = vpop.f32.mrb[6].mxu1  ;;  %v4024_v28 = vadd.f32 %v5056_v26, %v696_v6 }
 0x2e8   :  { %v699_v10 = vpop.f32.mrb[7].mxu1  ;;  %v4042_v36 = vadd.f32 %v3120_v9, %v5059_v32  ;;  %v4172_v32 = vld [vmem:[#allocation3 + $0x38] sm:$0xff] }
 0x2e9   :  { %v4059_v43 = vadd.f32 %v5057_v37, %v699_v10  ;;  %v5048_v10 = vunpack.c.h.bf16 %v4065_v45  ;;  %v4187_v37 = vld [vmem:[#allocation3 + $0x28] sm:$0xff] }
 0x2ea   :  { %v4222_v45 = vld [vmem:[#allocation3 + $0x48] sm:$0xff] }
 0x2ed   :  { %v3123_v11 = vpop.f32.mrb[8].mxu1 }
 0x2ee   :  { %v712_v12 = vpop.f32.mrb[9].mxu1  ;;  %v4037_v34 = vadd.f32 %v3123_v11, %v5054_v31 }
 0x2ef   :  { %v3124_v13 = vpop.f32.mrb[10].mxu1  ;;  %v4053_v39 = vadd.f32 %v5052_v35, %v712_v12  ;;  %v4103_v12 = vld [vmem:[#allocation3 + $0x10] sm:$0xff] }
 0x2f0   :  { %v715_v15 = vpop.f32.mrb[11].mxu1  ;;  %v4076_v60 = vadd.f32 %v3124_v13, %v5055_v44  ;;  %v4105_v13 = vld [vmem:[#allocation3] sm:$0xff] }
 0x2f1   :  { %v4088_v6 = vadd.f32 %v5053_v0, %v715_v15 }
 0x2f5   :  { %1210 = vrot.lane.b32.xlu1 %v3883_v7, %s3570_s30  ;;  %v3127_v16 = vpop.f32.mrb[12].mxu1 }
 0x2f6   :  { %v728_v17 = vpop.f32.mrb[13].mxu1  ;;  %v4071_v46 = vadd.f32 %v3127_v16, %v5051_v42 }
 0x2f7   :  { %v3128_v20 = vpop.f32.mrb[14].mxu1  ;;  %v4083_v5 = vadd.f32 %v5050_v58, %v728_v17 }
 0x2f8   :  { %v731_v21 = vpop.f32.mrb[15].mxu1  ;;  %v4092_v9 = vadd.f32 %v3128_v20, %v5049_v2  ;;  %v4113_v20 = vld [vmem:[#allocation3 + $0x18] sm:$0xff] }
 0x2f9   :  { %1212 = vrot.lane.b32.xlu1 %v3895_v19, %s3570_s30  ;;  %v4100_v11 = vadd.f32 %v5048_v10, %v731_v21  ;;  %v4120_v10 = vld [vmem:[#allocation3 + $0x8] sm:$0xff]  ;;  %v4206_v21 = vld [vmem:[#allocation3 + $0x58] sm:$0xff] }
 0x2fb   :  { %1208 = vrot.lane.b32.xlu0 %v3885_v8, %s3570_s30 }
 0x2fd   :  { %1214 = vrot.lane.b32.xlu1 %v3893_v18, %s3570_s30 }
 0x31a   :  { %771 = vmax.xlane.f32.xlu0 %v4014_v25 }
 0x31e   :  { %767 = vmax.xlane.f32.xlu0 %v4024_v28 }
 0x321   :  { %773 = vmax.xlane.f32.xlu1 %v4042_v36 }
 0x322   :  { %779 = vmax.xlane.f32.xlu0 %v4037_v34 }
 0x325   :  { %769 = vmax.xlane.f32.xlu1 %v4059_v43 }
 0x326   :  { %775 = vmax.xlane.f32.xlu0 %v4053_v39 }
 0x329   :  { %781 = vmax.xlane.f32.xlu1 %v4076_v60 }
 0x32a   :  { %787 = vmax.xlane.f32.xlu0 %v4071_v46 }
 0x32d   :  { %777 = vmax.xlane.f32.xlu1 %v4088_v6 }
 0x32e   :  { %783 = vmax.xlane.f32.xlu0 %v4083_v5 }
 0x331   :  { %789 = vmax.xlane.f32.xlu1 %v4092_v9 }
 0x335   :  { %785 = vmax.xlane.f32.xlu1 %v4100_v11 }
 0x36d   :  { %v764_v14 = vpop.xlane.xlu1 %763 }
 0x36e   :  { %v4108_v15 = vmax.f32 %v4103_v12, %v764_v14  ;;  %v760_v16 = vpop.xlane.xlu0 %759 }
 0x36f   :  { %v4111_v17 = vmax.f32 %v4105_v13, %v760_v16 }
 0x370   :  { %1363 = vst.msk [vmem:[#allocation3 + $0x10] sm:$0xff] %vm250_vm1, %v4108_v15  ;;  %867 = vperm.xlu1 %3334, %v4108_v15  }
 0x371   :  { %1361 = vst.msk [vmem:[#allocation3] sm:$0xff] %vm250_vm1, %v4111_v17  ;;  %v766_v16 = vpop.xlane.xlu1 %765  ;;  %857 = vperm.xlu0 %3335, %v4111_v17  }
 0x372   :  { %v4128_v2 = vmax.f32 %v4113_v20, %v766_v16  ;;  %v762_v58 = vpop.xlane.xlu0 %761 }
 0x373   :  { %v4131_v42 = vmax.f32 %v4120_v10, %v762_v58 }
 0x374   :  { %1364 = vst.msk [vmem:[#allocation3 + $0x18] sm:$0xff] %vm250_vm1, %v4128_v2 }
 0x375   :  { %1362 = vst.msk [vmem:[#allocation3 + $0x8] sm:$0xff] %vm250_vm1, %v4131_v42  ;;  %v1211_v31 = vpop.permute.xlu1 %1210  ;;  %872 = vperm.xlu0 %3335, %v4128_v2   ;;  %862 = vperm.xlu1 %3334, %v4131_v42  }
 0x376   :  { %v1209_v16 = vpop.permute.xlu0 %1208 }
 0x377   :  { %3129 = vmatprep.subr.bf16.mxu0 %v1209_v16 }
 0x378   :  { %3130 = vmatpush3.bf16.msra.mxu0 %v1209_v16 }
 0x379   :  { %1218 = vrot.lane.b32.xlu0 %v3901_v29, %s3570_s30  ;;  %1216 = vrot.lane.b32.xlu1 %v3903_v30, %s3570_s30  ;;  %v1213_v58 = vpop.permute.xlu1 %1212 }
 0x37a   :  { %3131 = vmatprep.subr.bf16.mxu0 %v1211_v31 }
 0x37c   :  { %3132 = vmatpush3.bf16.msra.mxu0 %v1211_v31  ;;  %v4157_v31 = vld [vmem:[#allocation3 + $0x30] sm:$0xff] }
 0x37d   :  { %1222 = vrot.lane.b32.xlu0 %v3909_v40, %s3570_s30  ;;  %1220 = vrot.lane.b32.xlu1 %v3911_v41, %s3570_s30  ;;  %v1215_v44 = vpop.permute.xlu1 %1214 }
 0x37e   :  { %3133 = vmatprep.subr.bf16.mxu0 %v1213_v58 }
 0x380   :  { %3134 = vmatpush3.bf16.msra.mxu0 %v1213_v58  ;;  %v4162_v58 = vld [vmem:[#allocation3 + $0x20] sm:$0xff] }
 0x381   :  { %1403 = vrot.lane.b32.xlu0 %v3883_v7, %s3571_s3  ;;  %1401 = vrot.lane.b32.xlu1 %v3885_v8, %s3571_s3 }
 0x382   :  { %3135 = vmatprep.subr.bf16.mxu0 %v1215_v44 }
 0x384   :  { %3136 = vmatpush3.bf16.msra.mxu0 %v1215_v44 }
 0x385   :  { %1405 = vrot.lane.b32.xlu1 %v3895_v19, %s3571_s3 }
 0x3a7   :  { %v772_v16 = vpop.xlane.xlu0 %771 }
 0x3a8   :  { %v4160_v26 = vmax.f32 %v4157_v31, %v772_v16  ;;  %v4194_v16 = vld [vmem:[#allocation3 + $0x40] sm:$0xff] }
 0x3aa   :  { %1367 = vst.msk [vmem:[#allocation3 + $0x30] sm:$0xff] %vm250_vm1, %v4160_v26  ;;  %887 = vperm.xlu1 %3334, %v4160_v26  }
 0x3ab   :  { %v768_v44 = vpop.xlane.xlu0 %767 }
 0x3ac   :  { %v4170_v23 = vmax.f32 %v4162_v58, %v768_v44 }
 0x3ae   :  { %1365 = vst.msk [vmem:[#allocation3 + $0x20] sm:$0xff] %vm250_vm1, %v4170_v23  ;;  %v774_v57 = vpop.xlane.xlu1 %773  ;;  %877 = vperm.xlu1 %3334, %v4170_v23  }
 0x3af   :  { %v4182_v62 = vmax.f32 %v4172_v32, %v774_v57  ;;  %v780_v56 = vpop.xlane.xlu0 %779  ;;  %v4213_v57 = vld [vmem:[#allocation3 + $0x70] sm:$0xff] }
 0x3b0   :  { %v4185_v44 = vmax.f32 %v4174_v1, %v780_v56 }
 0x3b1   :  { %1368 = vst.msk [vmem:[#allocation3 + $0x38] sm:$0xff] %vm250_vm1, %v4182_v62  ;;  %892 = vperm.xlu0 %3335, %v4182_v62  }
 0x3b2   :  { %1371 = vst.msk [vmem:[#allocation3 + $0x50] sm:$0xff] %vm250_vm1, %v4185_v44  ;;  %v770_v56 = vpop.xlane.xlu1 %769 }
 0x3b3   :  { %v4201_v35 = vmax.f32 %v4187_v37, %v770_v56  ;;  %v776_v14 = vpop.xlane.xlu0 %775  ;;  %v4233_v56 = vld [vmem:[#allocation3 + $0x60] sm:$0xff] }
 0x3b4   :  { %v4204_v0 = vmax.f32 %v4194_v16, %v776_v14 }
 0x3b5   :  { %1366 = vst.msk [vmem:[#allocation3 + $0x28] sm:$0xff] %vm250_vm1, %v4201_v35  ;;  %882 = vperm.xlu0 %3335, %v4201_v35  }
 0x3b6   :  { %1369 = vst.msk [vmem:[#allocation3 + $0x40] sm:$0xff] %vm250_vm1, %v4204_v0  ;;  %v782_v14 = vpop.xlane.xlu1 %781 }
 0x3b7   :  { %v4220_v19 = vmax.f32 %v4206_v21, %v782_v14  ;;  %v788_v8 = vpop.xlane.xlu0 %787 }
 0x3b8   :  { %v4225_v7 = vmax.f32 %v4213_v57, %v788_v8 }
 0x3b9   :  { %1372 = vst.msk [vmem:[#allocation3 + $0x58] sm:$0xff] %vm250_vm1, %v4220_v19  ;;  %912 = vperm.xlu1 %3334, %v4220_v19   ;;  %907 = vperm.xlu0 %3335, %v4185_v44  }
 0x3ba   :  { %v778_v14 = vpop.xlane.xlu1 %777  ;;  %1375 = vst.msk [vmem:[#allocation3 + $0x70] sm:$0xff] %vm250_vm1, %v4225_v7 }
 0x3bb   :  { %v4240_v8 = vmax.f32 %v4222_v45, %v778_v14  ;;  %v784_v38 = vpop.xlane.xlu0 %783 }
 0x3bc   :  { %v4245_v24 = vmax.f32 %v4233_v56, %v784_v38 }
 0x3bd   :  { %1370 = vst.msk [vmem:[#allocation3 + $0x48] sm:$0xff] %vm250_vm1, %v4240_v8  ;;  %902 = vperm.xlu1 %3334, %v4240_v8   ;;  %897 = vperm.xlu0 %3335, %v4204_v0  }
 0x3be   :  { %v790_v33 = vpop.xlane.xlu1 %789  ;;  %1373 = vst.msk [vmem:[#allocation3 + $0x60] sm:$0xff] %vm250_vm1, %v4245_v24 }
 0x3bf   :  { %v4258_v38 = vmax.f32 %v4242_v27, %v790_v33 }
 0x3c1   :  { %5102 = vst [vmem:[#allocation24_spill] sm:$0xff] %v4258_v38  ;;  %1376 = vst.msk [vmem:[#allocation3 + $0x78] sm:$0xff] %vm250_vm1, %v4258_v38  ;;  %1407 = vrot.lane.b32.xlu0 %v3893_v18, %s3571_s3  ;;  %927 = vperm.xlu1 %3334, %v4225_v7  }
 0x3c2   :  { %v786_v14 = vpop.xlane.xlu1 %785 }
 0x3c3   :  { %v4270_v54 = vmax.f32 %v4260_v55, %v786_v14 }
 0x3c5   :  { %1374 = vst.msk [vmem:[#allocation3 + $0x68] sm:$0xff] %vm250_vm1, %v4270_v54  ;;  %922 = vperm.xlu0 %3335, %v4270_v54   ;;  %917 = vperm.xlu1 %3334, %v4245_v24  }
 0x3c9   :  { %932 = vperm.xlu0 %3335, %v4258_v38   ;;  %1409 = vrot.lane.b32.xlu1 %v3903_v30, %s3571_s3 }
 0x3cd   :  { %1411 = vrot.lane.b32.xlu0 %v3901_v29, %s3571_s3  ;;  %1413 = vrot.lane.b32.xlu1 %v3911_v41, %s3571_s3 }
 0x3d1   :  { %1415 = vrot.lane.b32.xlu0 %v3909_v40, %s3571_s3  ;;  %1385 = vrot.lane.b32.xlu1 %v3876_v61, %s3571_s3 }
 0x3d5   :  { %1389 = vrot.lane.b32.xlu1 %v3933_v48, %s3571_s3  ;;  %1387 = vrot.lane.b32.xlu0 %v3931_v47, %s3571_s3 }
 0x3d9   :  { %1393 = vrot.lane.b32.xlu1 %v3941_v50, %s3571_s3  ;;  %1391 = vrot.lane.b32.xlu0 %v3939_v49, %s3571_s3 }
 0x3dd   :  { %1397 = vrot.lane.b32.xlu1 %v3949_v52, %s3571_s3  ;;  %1395 = vrot.lane.b32.xlu0 %v3947_v51, %s3571_s3 }
 0x3e1   :  { %1399 = vrot.lane.b32.xlu0 %v3955_v53, %s3571_s3 }
 0x3ef   :  { %v868_v61 = vpop.permute.xlu1 %867 }
 0x3f0   :  { %v937_v48 = vsub.f32 %v3973_v59, %v868_v61  ;;  %v858_v14 = vpop.permute.xlu0 %857 }
 0x3f1   :  { %v935_v47 = vsub.f32 %v3978_v63, %v858_v14 }
 0x3f2   :  { %v955_v22 = vmul.f32 1.442695, %v937_v48 }
 0x3f3   :  { %v951_v50 = vmul.f32 1.442695, %v935_v47 }
 0x3f4   :  { %v863_v33 = vpop.permute.xlu1 %862  ;;  %v873_v41 = vpop.permute.xlu0 %872  ;;  %3345 = vpow2.f32 %v955_v22 }
 0x3f5   :  { %v936_v49 = vsub.f32 %v3989_v4, %v863_v33  ;;  %v938_v52 = vsub.f32 %v3985_v3, %v873_v41  ;;  %3347 = vpow2.f32 %v951_v50 }
 0x3f7   :  { %v953_v40 = vmul.f32 1.442695, %v936_v49  ;;  %v957_v51 = vmul.f32 1.442695, %v938_v52 }
 0x3f8   :  { %v1217_v38 = vpop.permute.xlu1 %1216  ;;  %v1219_v53 = vpop.permute.xlu0 %1218 }
 0x3f9   :  { %3349 = vpow2.f32 %v953_v40  ;;  %3137 = vmatprep.subr.bf16.mxu0 %v1217_v38 }
 0x3fa   :  { %3351 = vpow2.f32 %v957_v51  ;;  %3138 = vmatpush3.bf16.msra.mxu0 %v1217_v38 }
 0x3fb   :  { %3139 = vmatprep.subr.bf16.mxu0 %v1219_v53 }
 0x3fc   :  { %v1221_v59 = vpop.permute.xlu1 %1220  ;;  %v1223_v4 = vpop.permute.xlu0 %1222 }
 0x3fe   :  { %3140 = vmatpush3.bf16.msra.mxu0 %v1219_v53  ;;  %v3346_v63 = vpop.eup %3345 }
 0x3ff   :  { %3141 = vmatprep.subr.bf16.mxu0 %v1221_v59  ;;  %v3348_v61 = vpop.eup %3347 }
 0x400   :  { %v1402_v40 = vpop.permute.xlu1 %1401  ;;  %v1404_v48 = vpop.permute.xlu0 %1403 }
 0x401   :  { %1019 = vadd.xlane.f32.xlu1 %v3346_v63  ;;  %v1442_v33 = vsel %vm315_vm2, %v1402_v40, 0  ;;  %v1445_v14 = vsel %vm315_vm2, %v1404_v48, 0 }
 0x402   :  { %3142 = vmatpush3.bf16.msra.mxu0 %v1221_v59 }
 0x403   :  { %v3350_v41 = vpop.eup %3349  ;;  %3143 = vmatprep.subr.bf16.mxu0 %v1223_v4 }
 0x404   :  { %v3352_v3 = vpop.eup %3351  ;;  %v1192_v22 = vpack.c.bf16 %v3350_v41, %v3348_v61  ;;  %v1406_v47 = vpop.permute.xlu1 %1405 }
 0x405   :  { %1021 = vadd.xlane.f32.xlu0 %v3352_v3  ;;  %1015 = vadd.xlane.f32.xlu1 %v3348_v61  ;;  %v1193_v38 = vpack.c.bf16 %v3352_v3, %v3346_v63  ;;  %v1448_v50 = vsel %vm315_vm2, %v1406_v47, 0 }
 0x406   :  { %3144 = vmatpush3.bf16.msra.mxu0 %v1223_v4  ;;  %3145 = vmatprep.mubr.bf16.mxu0 %v1192_v22 }
 0x407   :  { %3307 = vmatprep.subr.msk.bf16.mxu0 %vm315_vm2, %v1402_v40 }
 0x409   :  { %1017 = vadd.xlane.f32.xlu0 %v3350_v41  ;;  %3146 = vmatmul.mubr.bf16.vlgmr.msra.gmra.mrb[16].mxu0 %v1193_v38 }
 0x40f   :  { %3162 = vmatpush3.bf16.xpose.msra.mxu0 %v1442_v33 }
 0x410   :  { %3308 = vmatprep.subr.msk.bf16.mxu0 %vm315_vm2, %v1404_v48 }
 0x417   :  { %3164 = vmatpush3.bf16.xpose.msra.mxu0 %v1445_v14 }
 0x418   :  { %3309 = vmatprep.subr.msk.bf16.mxu0 %vm315_vm2, %v1406_v47 }
 0x41f   :  { %3166 = vmatpush3.bf16.xpose.msra.mxu0 %v1448_v50 }
 0x429   :  { %v888_v49 = vpop.permute.xlu1 %887 }
 0x42a   :  { %v941_v52 = vsub.f32 %v4014_v25, %v888_v49 }
 0x42c   :  { %v963_v51 = vmul.f32 1.442695, %v941_v52 }
 0x42d   :  { %v878_v53 = vpop.permute.xlu1 %877 }
 0x42e   :  { %3353 = vpow2.f32 %v963_v51  ;;  %v939_v59 = vsub.f32 %v4024_v28, %v878_v53 }
 0x430   :  { %v959_v63 = vmul.f32 1.442695, %v939_v59  ;;  %v893_v61 = vpop.permute.xlu0 %892 }
 0x431   :  { %v942_v4 = vsub.f32 %v4042_v36, %v893_v61 }
 0x432   :  { %3355 = vpow2.f32 %v959_v63 }
 0x433   :  { %v965_v41 = vmul.f32 1.442695, %v942_v4 }
 0x434   :  { %v883_v3 = vpop.permute.xlu0 %882 }
 0x435   :  { %3357 = vpow2.f32 %v965_v41  ;;  %v940_v22 = vsub.f32 %v4059_v43, %v883_v3 }
 0x437   :  { %v961_v40 = vmul.f32 1.442695, %v940_v22 }
 0x438   :  { %v3354_v38 = vpop.eup %3353  ;;  %v913_v33 = vpop.permute.xlu1 %912 }
 0x439   :  { %v908_v48 = vpop.permute.xlu0 %907  ;;  %3359 = vpow2.f32 %v961_v40  ;;  %v946_v25 = vsub.f32 %v4076_v60, %v913_v33  ;;  %1027 = vadd.xlane.f32.xlu1 %v3354_v38 }
 0x43a   :  { %v945_v14 = vsub.f32 %v4037_v34, %v908_v48 }
 0x43b   :  { %v973_v28 = vmul.f32 1.442695, %v946_v25 }
 0x43c   :  { %v971_v47 = vmul.f32 1.442695, %v945_v14  ;;  %v3356_v50 = vpop.eup %3355  ;;  %v903_v36 = vpop.permute.xlu1 %902 }
 0x43d   :  { %v898_v49 = vpop.permute.xlu0 %897  ;;  %3361 = vpow2.f32 %v973_v28  ;;  %v944_v52 = vsub.f32 %v4088_v6, %v903_v36  ;;  %1023 = vadd.xlane.f32.xlu1 %v3356_v50 }
 0x43e   :  { %v943_v43 = vsub.f32 %v4053_v39, %v898_v49  ;;  %3363 = vpow2.f32 %v971_v47 }
 0x43f   :  { %v3358_v51 = vpop.eup %3357  ;;  %v969_v53 = vmul.f32 1.442695, %v944_v52 }
 0x440   :  { %v967_v59 = vmul.f32 1.442695, %v943_v43  ;;  %v928_v63 = vpop.permute.xlu1 %927  ;;  %1029 = vadd.xlane.f32.xlu0 %v3358_v51  ;;  %v1195_v33 = vpack.c.bf16 %v3358_v51, %v3354_v38 }
 0x441   :  { %v1408_v60 = vpop.permute.xlu0 %1407  ;;  %3365 = vpow2.f32 %v969_v53  ;;  %v949_v34 = vsub.f32 %v4071_v46, %v928_v63 }
 0x442   :  { %3310 = vmatprep.subr.msk.bf16.mxu0 %vm315_vm2, %v1408_v60  ;;  %v1451_v61 = vsel %vm315_vm2, %v1408_v60, 0  ;;  %3367 = vpow2.f32 %v967_v59 }
 0x443   :  { %3168 = vmatpush3.bf16.xpose.msra.mxu0 %v1451_v61  ;;  %v3360_v6 = vpop.eup %3359  ;;  %v979_v4 = vmul.f32 1.442695, %v949_v34 }
 0x444   :  { %v918_v39 = vpop.permute.xlu1 %917  ;;  %1025 = vadd.xlane.f32.xlu0 %v3360_v6  ;;  %v1194_v3 = vpack.c.bf16 %v3360_v6, %v3356_v50 }
 0x445   :  { %v923_v41 = vpop.permute.xlu0 %922  ;;  %3369 = vpow2.f32 %v979_v4  ;;  %v947_v22 = vsub.f32 %v4083_v5, %v918_v39 }
 0x446   :  { %v948_v40 = vsub.f32 %v4100_v11, %v923_v41  ;;  %3149 = vmatprep.mubr.bf16.mxu0 %v1194_v3 }
 0x447   :  { %v3362_v46 = vpop.eup %3361  ;;  %v975_v48 = vmul.f32 1.442695, %v947_v22  ;;  %3150 = vmatmul.mubr.bf16.gmra.mrb[20].mxu0 %v1195_v33 }
 0x448   :  { %v977_v25 = vmul.f32 1.442695, %v948_v40  ;;  %v3364_v14 = vpop.eup %3363  ;;  %v1410_v28 = vpop.permute.xlu1 %1409  ;;  %1037 = vadd.xlane.f32.xlu0 %v3362_v46 }
 0x449   :  { %v933_v47 = vpop.permute.xlu0 %932  ;;  %3371 = vpow2.f32 %v975_v48  ;;  %1035 = vadd.xlane.f32.xlu1 %v3364_v14  ;;  %3311 = vmatprep.subr.msk.bf16.mxu0 %vm315_vm2, %v1410_v28  ;;  %v1454_v5 = vsel %vm315_vm2, %v1410_v28, 0  ;;  %v1197_v43 = vpack.c.bf16 %v3362_v46, %v3364_v14  ;;  %v5104_v28 = vsub.f32 %v4105_v13, %v4111_v17 }
 0x44a   :  { %v950_v36 = vsub.f32 %v4092_v9, %v933_v47  ;;  %3373 = vpow2.f32 %v977_v25  ;;  %v5103_v25 = vsub.f32 %v4103_v12, %v4108_v15  ;;  %v985_v15 = vld [vmem:[#allocation4 + $0x10] sm:$0xff] }
 0x44b   :  { %3170 = vmatpush3.bf16.xpose.msra.mxu0 %v1454_v5  ;;  %v3366_v11 = vpop.eup %3365  ;;  %v823_v47 = vmul.f32 1.442695, %v5104_v28  ;;  %v5105_v5 = vsub.f32 %v4113_v20, %v4128_v2  ;;  %v986_v20 = vld [vmem:[#allocation4 + $0x18] sm:$0xff] }
 0x44c   :  { %v981_v38 = vmul.f32 1.442695, %v950_v36  ;;  %v3368_v50 = vpop.eup %3367  ;;  %1033 = vadd.xlane.f32.xlu0 %v3366_v11  ;;  %v1414_v53 = vpop.permute.xlu1 %1413  ;;  %v827_v14 = vmul.f32 1.442695, %v5103_v25 }
 0x44d   :  { %v1412_v49 = vpop.permute.xlu0 %1411  ;;  %1031 = vadd.xlane.f32.xlu1 %v3368_v50  ;;  %v1196_v52 = vpack.c.bf16 %v3366_v11, %v3368_v50  ;;  %v1460_v4 = vsel %vm315_vm2, %v1414_v53, 0  ;;  %v829_v11 = vmul.f32 1.442695, %v5105_v5 }
 0x44e   :  { %3375 = vpow2.f32 %v981_v38  ;;  %3312 = vmatprep.subr.msk.bf16.mxu0 %vm315_vm2, %v1412_v49  ;;  %v1457_v9 = vsel %vm315_vm2, %v1412_v49, 0  ;;  %v5106_v38 = vsub.f32 %v4120_v10, %v4131_v42 }
 0x44f   :  { %v3370_v51 = vpop.eup %3369  ;;  %3153 = vmatprep.mubr.bf16.mxu0 %v1196_v52  ;;  %3377 = vpow2.f32 %v827_v14  ;;  %v983_v52 = vld [vmem:[#allocation4] sm:$0xff]  ;;  %v989_v14 = vld [vmem:[#allocation4 + $0x30] sm:$0xff] }
 0x450   :  { %3154 = vmatmul.mubr.bf16.gmra.mrb[24].mxu0 %v1197_v43  ;;  %v1386_v6 = vpop.permute.xlu1 %1385  ;;  %3379 = vpow2.f32 %v823_v47  ;;  %v825_v50 = vmul.f32 1.442695, %v5106_v38  ;;  %v987_v47 = vld [vmem:[#allocation4 + $0x20] sm:$0xff] }
 0x451   :  { %1043 = vadd.xlane.f32.xlu1 %v3370_v51  ;;  %v1416_v39 = vpop.permute.xlu0 %1415  ;;  %3381 = vpow2.f32 %v829_v11 }
 0x452   :  { %v1463_v41 = vsel %vm315_vm2, %v1416_v39, 0  ;;  %3383 = vpow2.f32 %v825_v50 }
 0x453   :  { %3172 = vmatpush3.bf16.xpose.msra.mxu0 %v1457_v9  ;;  %v3372_v59 = vpop.eup %3371 }
 0x454   :  { %3313 = vmatprep.subr.msk.bf16.mxu0 %vm315_vm2, %v1414_v53  ;;  %v3374_v63 = vpop.eup %3373  ;;  %v1390_v22 = vpop.permute.xlu1 %1389 }
 0x455   :  { %1039 = vadd.xlane.f32.xlu1 %v3372_v59  ;;  %1041 = vadd.xlane.f32.xlu0 %v3374_v63  ;;  %v1198_v60 = vpack.c.bf16 %v3374_v63, %v3372_v59  ;;  %v1388_v3 = vpop.permute.xlu0 %1387  ;;  %v984_v59 = vld [vmem:[#allocation4 + $0x8] sm:$0xff] }
 0x457   :  { %3157 = vmatprep.mubr.bf16.mxu0 %v1198_v60 }
 0x458   :  { %v4332_v34 = vpop.eup %3375  ;;  %v1394_v33 = vpop.permute.xlu1 %1393 }
 0x459   :  { %v1199_v61 = vpack.c.bf16 %v4332_v34, %v3370_v51  ;;  %v1392_v40 = vpop.permute.xlu0 %1391  ;;  %v4358_v12 = vpop.eup %3377 }
 0x45a   :  { %v4360_v13 = vpop.eup %3379  ;;  %v1001_v17 = vmul.f32 %v4358_v12, %v985_v15 }
 0x45b   :  { %3158 = vmatmul.mubr.bf16.gmra.mrb[28].mxu0 %v1199_v61  ;;  %v4363_v49 = vpop.eup %3381  ;;  %v999_v42 = vmul.f32 %v4360_v13, %v983_v52  ;;  %v5117_v52 = vsub.f32 %v4260_v55, %v4270_v54 }
 0x45c   :  { %3174 = vmatpush3.bf16.xpose.msra.mxu0 %v1460_v4  ;;  %3177 = vmatprep.mubr.msk.bf16.mxu0 %vm315_vm2, %v1386_v6  ;;  %v1398_v48 = vpop.permute.xlu1 %1397  ;;  %v1002_v51 = vmul.f32 %v4363_v49, %v986_v20  ;;  %v4368_v10 = vpop.eup %3383 }
 0x45d   :  { %3314 = vmatprep.subr.msk.bf16.mxu0 %vm315_vm2, %v1416_v39  ;;  %v1396_v46 = vpop.permute.xlu0 %1395  ;;  %v1000_v61 = vmul.f32 %v4368_v10, %v984_v59  ;;  %v5107_v39 = vsub.f32 %v4157_v31, %v4160_v26  ;;  %v5111_v26 = vsub.f32 %v4206_v21, %v4220_v19  ;;  %v5114_v19 = vsub.f32 %v4194_v16, %v4204_v0  ;;  %v988_v16 = vld [vmem:[#allocation4 + $0x28] sm:$0xff]  ;;  %v993_v59 = vld [vmem:[#allocation4 + $0x50] sm:$0xff] }
 0x45f   :  { %v845_v31 = vmul.f32 1.442695, %v5111_v26  ;;  %v839_v21 = vmul.f32 1.442695, %v5114_v19 }
 0x461   :  { %v1400_v36 = vpop.permute.xlu0 %1399 }
 0x464   :  { %3176 = vmatpush3.bf16.xpose.msra.mxu0 %v1463_v41  ;;  %v835_v41 = vmul.f32 1.442695, %v5107_v39 }
 0x466   :  { %3385 = vpow2.f32 %v835_v41 }
 0x46b   :  { %3178 = vmatmul.mubr.msk.bf16.vlgmr.msra.gmra.mrb[32].mxu0 %vm315_vm2, %v1388_v3  ;;  %v5108_v3 = vsub.f32 %v4162_v58, %v4170_v23  ;;  %v5112_v23 = vsub.f32 %v4174_v1, %v4185_v44  ;;  %v990_v44 = vld [vmem:[#allocation4 + $0x38] sm:$0xff] }
 0x46c   :  { %3181 = vmatprep.mubr.msk.bf16.mxu0 %vm315_vm2, %v1390_v22 }
 0x46d   :  { %v831_v22 = vmul.f32 1.442695, %v5108_v3  ;;  %v843_v58 = vmul.f32 1.442695, %v5112_v23 }
 0x46f   :  { %3387 = vpow2.f32 %v831_v22 }
 0x470   :  { %v4386_v25 = vpop.eup %3385 }
 0x473   :  { %3182 = vmatmul.mubr.msk.bf16.gmra.mrb[36].mxu0 %vm315_vm2, %v1392_v40  ;;  %v5109_v40 = vsub.f32 %v4172_v32, %v4182_v62  ;;  %v1005_v62 = vmul.f32 %v4386_v25, %v989_v14 }
 0x474   :  { %3185 = vmatprep.mubr.msk.bf16.mxu0 %vm315_vm2, %v1394_v33 }
 0x475   :  { %v837_v33 = vmul.f32 1.442695, %v5109_v40 }
 0x477   :  { %3389 = vpow2.f32 %v837_v33 }
 0x479   :  { %v4395_v32 = vpop.eup %3387 }
 0x47a   :  { %v1003_v1 = vmul.f32 %v4395_v32, %v987_v47 }
 0x47b   :  { %3186 = vmatmul.mubr.msk.bf16.gmra.mrb[40].mxu0 %vm315_vm2, %v1396_v46  ;;  %v5110_v46 = vsub.f32 %v4187_v37, %v4201_v35  ;;  %v5113_v35 = vsub.f32 %v4222_v45, %v4240_v8  ;;  %v5115_v45 = vsub.f32 %v4213_v57, %v4225_v7 }
 0x47c   :  { %3189 = vmatprep.mubr.msk.bf16.mxu0 %vm315_vm2, %v1398_v48 }
 0x47d   :  { %v833_v48 = vmul.f32 1.442695, %v5110_v46  ;;  %v841_v37 = vmul.f32 1.442695, %v5113_v35  ;;  %v851_v8 = vmul.f32 1.442695, %v5115_v45 }
 0x47e   :  { %v995_v35 = vld [vmem:[#allocation4 + $0x60] sm:$0xff] }
 0x47f   :  { %3391 = vpow2.f32 %v833_v48  ;;  %v997_v48 = vld [vmem:[#allocation4 + $0x70] sm:$0xff] }
 0x480   :  { %3393 = vpow2.f32 %v845_v31 }
 0x481   :  { %3395 = vpow2.f32 %v843_v58  ;;  %v4403_v5 = vpop.eup %3389 }
 0x482   :  { %3397 = vpow2.f32 %v841_v37  ;;  %v1006_v50 = vmul.f32 %v4403_v5, %v990_v44  ;;  %v996_v37 = vld [vmem:[#allocation4 + $0x68] sm:$0xff] }
 0x483   :  { %3190 = vmatmul.mubr.msk.bf16.gmra.mrb[44].mxu0 %vm315_vm2, %v1400_v36  ;;  %3399 = vpow2.f32 %v839_v21 }
 0x484   :  { %3401 = vpow2.f32 %v851_v8 }
 0x489   :  { %v4411_v15 = vpop.eup %3391 }
 0x48a   :  { %v1004_v7 = vmul.f32 %v4411_v15, %v988_v16  ;;  %v4422_v57 = vpop.eup %3393 }
 0x48e   :  { %v1020_v2 = vpop.xlane.xlu1 %1019 }
 0x48f   :  { %v1049_v43 = vadd.f32 %v1020_v2, %v1001_v17  ;;  %v5116_v2 = vsub.f32 %v4233_v56, %v4245_v24 }
 0x491   :  { %1066 = vst.msk [vmem:[#allocation4 + $0x10] sm:$0xff] %vm250_vm1, %v1049_v43  ;;  %v847_v20 = vmul.f32 1.442695, %v5116_v2  ;;  %v849_v43 = vmul.f32 1.442695, %v5117_v52 }
 0x492   :  { %v1022_v9 = vpop.xlane.xlu0 %1021  ;;  %v1016_v53 = vpop.xlane.xlu1 %1015 }
 0x493   :  { %v1050_v63 = vadd.f32 %v1022_v9, %v1002_v51  ;;  %v1047_v60 = vadd.f32 %v1016_v53, %v999_v42  ;;  %v994_v42 = vld [vmem:[#allocation4 + $0x58] sm:$0xff]  ;;  %v4424_v9 = vpop.eup %3395  ;;  %3403 = vpow2.f32 %v847_v20 }
 0x494   :  { %3405 = vpow2.f32 %v849_v43  ;;  %v1010_v24 = vmul.f32 %v4422_v57, %v994_v42  ;;  %v4428_v54 = vpop.eup %3397  ;;  %v1009_v55 = vmul.f32 %v4424_v9, %v993_v59  ;;  %v5134_v59 = vld [vmem:[#allocation16_spill] sm:$0xff] }
 0x495   :  { %1067 = vst.msk [vmem:[#allocation4 + $0x18] sm:$0xff] %vm250_vm1, %v1050_v63  ;;  %1064 = vst.msk [vmem:[#allocation4] sm:$0xff] %vm250_vm1, %v1047_v60  ;;  %v992_v63 = vld [vmem:[#allocation4 + $0x48] sm:$0xff]  ;;  %v4431_v60 = vpop.eup %3399 }
 0x496   :  { %v1018_v6 = vpop.xlane.xlu0 %1017  ;;  %v1008_v41 = vmul.f32 %v4428_v54, %v992_v63  ;;  %v4437_v40 = vpop.eup %3401 }
 0x497   :  { %v1048_v4 = vadd.f32 %v1018_v6, %v1000_v61  ;;  %v1013_v58 = vmul.f32 %v4437_v40, %v997_v48 }
 0x499   :  { %1065 = vst.msk [vmem:[#allocation4 + $0x8] sm:$0xff] %vm250_vm1, %v1048_v4  ;;  %v991_v4 = vld [vmem:[#allocation4 + $0x40] sm:$0xff] }
 0x49a   :  { %v1007_v3 = vmul.f32 %v4431_v60, %v991_v4 }
 0x49d   :  { %v4442_v31 = vpop.eup %3403 }
 0x49e   :  { %v1011_v21 = vmul.f32 %v4442_v31, %v995_v35 }
 0x4c6   :  { %v1028_v28 = vpop.xlane.xlu1 %1027 }
 0x4c7   :  { %v1053_v36 = vadd.f32 %v1028_v28, %v1005_v62  ;;  %v4448_v62 = vpop.eup %3405 }
 0x4c9   :  { %1070 = vst.msk [vmem:[#allocation4 + $0x30] sm:$0xff] %vm250_vm1, %v1053_v36 }
 0x4ca   :  { %v1024_v11 = vpop.xlane.xlu1 %1023 }
 0x4cb   :  { %v1051_v38 = vadd.f32 %v1024_v11, %v1003_v1  ;;  %v1012_v1 = vmul.f32 %v4448_v62, %v996_v37 }
 0x4cd   :  { %1068 = vst.msk [vmem:[#allocation4 + $0x20] sm:$0xff] %vm250_vm1, %v1051_v38  ;;  %v1030_v0 = vpop.xlane.xlu0 %1029 }
 0x4ce   :  { %v1054_v17 = vadd.f32 %v1030_v0, %v1006_v50 }
 0x4d0   :  { %1071 = vst.msk [vmem:[#allocation4 + $0x38] sm:$0xff] %vm250_vm1, %v1054_v17 }
 0x4d1   :  { %v1026_v51 = vpop.xlane.xlu0 %1025 }
 0x4d2   :  { %v1052_v53 = vadd.f32 %v1026_v51, %v1004_v7 }
 0x4d4   :  { %1069 = vst.msk [vmem:[#allocation4 + $0x28] sm:$0xff] %vm250_vm1, %v1052_v53 }
 0x4d5   :  { %v1038_v56 = vpop.xlane.xlu0 %1037 }
 0x4d6   :  { %v1036_v61 = vpop.xlane.xlu1 %1035  ;;  %v1058_v6 = vadd.f32 %v1038_v56, %v1010_v24  ;;  %v5135_v24 = vunpack.c.l.bf16 %v5134_v59 }
 0x4d7   :  { %v1057_v39 = vadd.f32 %v1036_v61, %v1009_v55  ;;  %v5136_v61 = vunpack.c.h.bf16 %v5134_v59 }
 0x4d8   :  { %1075 = vst.msk [vmem:[#allocation4 + $0x58] sm:$0xff] %vm250_vm1, %v1058_v6 }
 0x4d9   :  { %1074 = vst.msk [vmem:[#allocation4 + $0x50] sm:$0xff] %vm250_vm1, %v1057_v39  ;;  %v1034_v22 = vpop.xlane.xlu0 %1033  ;;  %v5137_v39 = vld [vmem:[#allocation17_spill] sm:$0xff] }
 0x4da   :  { %v1032_v33 = vpop.xlane.xlu1 %1031  ;;  %v1056_v46 = vadd.f32 %v1034_v22, %v1008_v41  ;;  %v5138_v41 = vunpack.c.l.bf16 %v5137_v39 }
 0x4db   :  { %v1055_v14 = vadd.f32 %v1032_v33, %v1007_v3  ;;  %v5139_v33 = vunpack.c.h.bf16 %v5137_v39 }
 0x4dc   :  { %1073 = vst.msk [vmem:[#allocation4 + $0x48] sm:$0xff] %vm250_vm1, %v1056_v46  ;;  %v4440_v26 = vpop.f32.mrb[16].mxu0 }
 0x4dd   :  { %5118 = vst [vmem:[#allocation25_spill] sm:$0xff] %v4440_v26  ;;  %1072 = vst.msk [vmem:[#allocation4 + $0x40] sm:$0xff] %vm250_vm1, %v1055_v14  ;;  %v4445_v23 = vpop.f32.mrb[17].mxu0  ;;  %v998_v26 = vld [vmem:[#allocation4 + $0x78] sm:$0xff] }
 0x4de   :  { %5119 = vst [vmem:[#allocation26_spill] sm:$0xff] %v4445_v23  ;;  %v1044_v28 = vpop.xlane.xlu1 %1043  ;;  %v4450_v47 = vpop.f32.mrb[18].mxu0 }
 0x4df   :  { %5120 = vst [vmem:[#allocation27_spill] sm:$0xff] %v4450_v47  ;;  %v1061_v36 = vadd.f32 %v1044_v28, %v1013_v58  ;;  %v4452_v19 = vpop.f32.mrb[19].mxu0  ;;  %v5140_v58 = vld [vmem:[#allocation18_spill] sm:$0xff] }
 0x4e0   :  { %5121 = vst [vmem:[#allocation28_spill] sm:$0xff] %v4452_v19  ;;  %v5141_v28 = vunpack.c.h.bf16 %v5140_v58  ;;  %v4650_v19 = vld [vmem:[#allocation3 + $0xd0] sm:$0xff] }
 0x4e1   :  { %1078 = vst.msk [vmem:[#allocation4 + $0x70] sm:$0xff] %vm250_vm1, %v1061_v36  ;;  %v5142_v36 = vunpack.c.l.bf16 %v5140_v58 }
 0x4e2   :  { %v1040_v44 = vpop.xlane.xlu1 %1039  ;;  %v1042_v11 = vpop.xlane.xlu0 %1041 }
 0x4e3   :  { %v1059_v38 = vadd.f32 %v1040_v44, %v1011_v21  ;;  %v1060_v45 = vadd.f32 %v1042_v11, %v1012_v1  ;;  %v5143_v1 = vld [vmem:[#allocation19_spill] sm:$0xff] }
 0x4e4   :  { %v5144_v44 = vunpack.c.h.bf16 %v5143_v1 }
 0x4e5   :  { %1076 = vst.msk [vmem:[#allocation4 + $0x60] sm:$0xff] %vm250_vm1, %v1059_v38  ;;  %1077 = vst.msk [vmem:[#allocation4 + $0x68] sm:$0xff] %vm250_vm1, %v1060_v45  ;;  %v5145_v45 = vunpack.c.l.bf16 %v5143_v1  ;;  %v5152_v1 = vld [vmem:[#allocation22_spill] sm:$0xff] }
 0x51a   :  { %v4459_v8 = vpop.f32.mrb[20].mxu0 }
 0x51b   :  { %5122 = vst [vmem:[#allocation29_spill] sm:$0xff] %v4459_v8  ;;  %v4461_v50 = vpop.f32.mrb[21].mxu0  ;;  %v5167_v8 = vld [vmem:[#allocation15_spill] sm:$0xff] }
 0x51c   :  { %5123 = vst [vmem:[#allocation30_spill] sm:$0xff] %v4461_v50  ;;  %v4463_v0 = vpop.f32.mrb[22].mxu0 }
 0x51d   :  { %5124 = vst [vmem:[#allocation31_spill] sm:$0xff] %v4463_v0  ;;  %v4465_v16 = vpop.f32.mrb[23].mxu0  ;;  %v5163_v0 = vld [vmem:[#allocation24_spill] sm:$0xff] }
 0x51e   :  { %5125 = vst [vmem:[#allocation32_spill] sm:$0xff] %v4465_v16 }
 0x523   :  { %v4467_v17 = vpop.f32.mrb[24].mxu0 }
 0x524   :  { %5126 = vst [vmem:[#allocation33_spill] sm:$0xff] %v4467_v17  ;;  %v4469_v2 = vpop.f32.mrb[25].mxu0  ;;  %v5166_v17 = vld [vmem:[#allocation14_spill] sm:$0xff] }
 0x525   :  { %5127 = vst [vmem:[#allocation34_spill] sm:$0xff] %v4469_v2  ;;  %v4471_v20 = vpop.f32.mrb[26].mxu0 }
 0x526   :  { %5128 = vst [vmem:[#allocation35_spill] sm:$0xff] %v4471_v20  ;;  %v4473_v52 = vpop.f32.mrb[27].mxu0  ;;  %v4637_v20 = vld [vmem:[#allocation3 + $0xd8] sm:$0xff] }
 0x527   :  { %5129 = vst [vmem:[#allocation36_spill] sm:$0xff] %v4473_v52 }
 0x52e   :  { %v4475_v43 = vpop.f32.mrb[28].mxu0 }
 0x52f   :  { %5130 = vst [vmem:[#allocation37_spill] sm:$0xff] %v4475_v43  ;;  %v4477_v7 = vpop.f32.mrb[29].mxu0 }
 0x530   :  { %5131 = vst [vmem:[#allocation38_spill] sm:$0xff] %v4477_v7  ;;  %v4479_v51 = vpop.f32.mrb[30].mxu0  ;;  %v4684_v7 = vld [vmem:[#allocation3 + $0xf0] sm:$0xff] }
 0x531   :  { %5132 = vst [vmem:[#allocation39_spill] sm:$0xff] %v4479_v51  ;;  %v4481_v42 = vpop.f32.mrb[31].mxu0  ;;  %5165 = vst [vmem:[#allocation18_spill] sm:$0xff] %v4684_v7 }
 0x532   :  { %5133 = vst [vmem:[#allocation40_spill] sm:$0xff] %v4481_v42  ;;  %v4629_v42 = vld [vmem:[#allocation3 + $0xa0] sm:$0xff] }
 0x53e   :  { %v3179_v53 = vpop.f32.mrb[32].mxu0 }
 0x53f   :  { %v4485_v55 = vadd.f32 %v3179_v53, %v5135_v24  ;;  %v1499_v56 = vpop.f32.mrb[33].mxu0 }
 0x540   :  { %v3180_v63 = vpop.f32.mrb[34].mxu0  ;;  %v4494_v3 = vadd.f32 %v5138_v41, %v1499_v56  ;;  %v5146_v56 = vld [vmem:[#allocation20_spill] sm:$0xff] }
 0x541   :  { %v4489_v6 = vadd.f32 %v3180_v63, %v5136_v61  ;;  %1583 = vmax.xlane.f32.xlu0 %v4485_v55  ;;  %v1502_v4 = vpop.f32.mrb[35].mxu0  ;;  %v5147_v63 = vunpack.c.h.bf16 %v5146_v56  ;;  %v5148_v39 = vunpack.c.l.bf16 %v5146_v56 }
 0x542   :  { %v4500_v46 = vadd.f32 %v5139_v33, %v1502_v4 }
 0x543   :  { %1585 = vmax.xlane.f32.xlu1 %v4489_v6 }
 0x545   :  { %1579 = vmax.xlane.f32.xlu0 %v4494_v3 }
 0x546   :  { %v3183_v22 = vpop.f32.mrb[36].mxu0 }
 0x547   :  { %v1515_v48 = vpop.f32.mrb[37].mxu0  ;;  %v4509_v21 = vadd.f32 %v3183_v22, %v5142_v36  ;;  %v5149_v22 = vld [vmem:[#allocation21_spill] sm:$0xff] }
 0x548   :  { %v3184_v14 = vpop.f32.mrb[38].mxu0  ;;  %v4519_v53 = vadd.f32 %v5145_v45, %v1515_v48  ;;  %v5150_v33 = vunpack.c.h.bf16 %v5149_v22  ;;  %v5151_v58 = vunpack.c.l.bf16 %v5149_v22  ;;  %v5159_v22 = vunpack.c.h.bf16 %v5152_v1 }
 0x549   :  { %v4504_v35 = vadd.f32 %v3184_v14, %v5141_v28  ;;  %1581 = vmax.xlane.f32.xlu0 %v4500_v46  ;;  %v1518_v37 = vpop.f32.mrb[39].mxu0 }
 0x54a   :  { %v4514_v11 = vadd.f32 %v5144_v44, %v1518_v37  ;;  %v5153_v44 = vunpack.c.l.bf16 %v5152_v1  ;;  %v4583_v1 = vld [vmem:[#allocation3 + $0x80] sm:$0xff] }
 0x54b   :  { %1593 = vmax.xlane.f32.xlu1 %v4504_v35 }
 0x54d   :  { %1591 = vmax.xlane.f32.xlu0 %v4509_v21 }
 0x54e   :  { %v3187_v38 = vpop.f32.mrb[40].mxu0 }
 0x54f   :  { %1589 = vmax.xlane.f32.xlu1 %v4514_v11  ;;  %v1531_v59 = vpop.f32.mrb[41].mxu0  ;;  %v4529_v41 = vadd.f32 %v3187_v38, %v5148_v39  ;;  %v5158_v39 = vld [vmem:[#allocation11_spill] sm:$0xff] }
 0x550   :  { %v3188_v24 = vpop.f32.mrb[42].mxu0  ;;  %v4539_v28 = vadd.f32 %v5151_v58, %v1531_v59  ;;  %v5156_v59 = vld [vmem:[#allocation12_spill] sm:$0xff]  ;;  %v4576_v58 = vld [vmem:[#allocation3 + $0x90] sm:$0xff] }
 0x551   :  { %v4524_v61 = vadd.f32 %v3188_v24, %v5147_v63  ;;  %1587 = vmax.xlane.f32.xlu0 %v4519_v53  ;;  %v1534_v4 = vpop.f32.mrb[43].mxu0  ;;  %v5154_v24 = vld [vmem:[#allocation23_spill] sm:$0xff] }
 0x552   :  { %v4534_v48 = vadd.f32 %v5150_v33, %v1534_v4  ;;  %v5155_v56 = vunpack.c.l.bf16 %v5154_v24  ;;  %v5157_v4 = vld [vmem:[#allocation13_spill] sm:$0xff] }
 0x553   :  { %1601 = vmax.xlane.f32.xlu1 %v4524_v61 }
 0x555   :  { %1599 = vmax.xlane.f32.xlu0 %v4529_v41 }
 0x556   :  { %v3191_v14 = vpop.f32.mrb[44].mxu0 }
 0x557   :  { %1597 = vmax.xlane.f32.xlu1 %v4534_v48  ;;  %v1547_v37 = vpop.f32.mrb[45].mxu0  ;;  %v4545_v38 = vadd.f32 %v3191_v14, %v5153_v44 }
 0x558   :  { %v3192_v36 = vpop.f32.mrb[46].mxu0  ;;  %v4550_v63 = vadd.f32 %v5155_v56, %v1547_v37  ;;  %v4578_v37 = vld [vmem:[#allocation3 + $0x98] sm:$0xff]  ;;  %v4599_v56 = vld [vmem:[#allocation3 + $0x88] sm:$0xff] }
 0x559   :  { %1595 = vmax.xlane.f32.xlu0 %v4539_v28  ;;  %v1550_v45 = vpop.f32.mrb[47].mxu0  ;;  %v4566_v33 = vadd.f32 %v3192_v36, %v5159_v22 }
 0x55b   :  { %5160 = vst [vmem:[#allocation16_spill] sm:$0xff] %v4566_v33 }
 0x55d   :  { %1607 = vmax.xlane.f32.xlu0 %v4545_v38 }
 0x561   :  { %1603 = vmax.xlane.f32.xlu0 %v4550_v63 }
 0x565   :  { %1045 = vadd.xlane.f32.xlu0 %v4332_v34  ;;  %v5161_v34 = vunpack.c.h.bf16 %v5154_v24 }
 0x567   :  { %v4571_v14 = vadd.f32 %v5161_v34, %v1550_v45  ;;  %v4609_v34 = vld [vmem:[#allocation3 + $0xb0] sm:$0xff]  ;;  %v4619_v45 = vld [vmem:[#allocation3 + $0xa8] sm:$0xff] }
 0x568   :  { %2021 = vrot.lane.b32.xlu1 %v5156_v59, %s3572_s20 }
 0x569   :  { %5162 = vst [vmem:[#allocation17_spill] sm:$0xff] %v4571_v14 }
 0x56c   :  { %2025 = vrot.lane.b32.xlu1 %v5157_v4, %s3572_s20  ;;  %v4604_v4 = vld [vmem:[#allocation3 + $0xb8] sm:$0xff] }
 0x57b   :  { %2023 = vrot.lane.b32.xlu0 %v5158_v39, %s3572_s20 }
 0x57f   :  { %2027 = vrot.lane.b32.xlu0 %v3893_v18, %s3572_s20 }
 0x583   :  { %2031 = vrot.lane.b32.xlu0 %v3901_v29, %s3572_s20 }
 0x590   :  { %1609 = vmax.xlane.f32.xlu1 %v4566_v33 }
 0x594   :  { %1605 = vmax.xlane.f32.xlu1 %v4571_v14 }
 0x5a5   :  { %2029 = vrot.lane.b32.xlu1 %v3903_v30, %s3572_s20 }
 0x5ce   :  { %v1584_v18 = vpop.xlane.xlu0 %1583 }
 0x5cf   :  { %v4581_v29 = vmax.f32 %v4576_v58, %v1584_v18 }
 0x5d0   :  { %v1586_v36 = vpop.xlane.xlu1 %1585 }
 0x5d1   :  { %2176 = vst.msk [vmem:[#allocation3 + $0x90] sm:$0xff] %vm250_vm1, %v4581_v29  ;;  %v4588_v44 = vmax.f32 %v4578_v37, %v1586_v36  ;;  %1687 = vperm.xlu1 %3334, %v4581_v29  }
 0x5d2   :  { %v1580_v30 = vpop.xlane.xlu0 %1579 }
 0x5d3   :  { %2177 = vst.msk [vmem:[#allocation3 + $0x98] sm:$0xff] %vm250_vm1, %v4588_v44  ;;  %v4596_v24 = vmax.f32 %v4583_v1, %v1580_v30  ;;  %1692 = vperm.xlu0 %3335, %v4588_v44  }
 0x5d5   :  { %2174 = vst.msk [vmem:[#allocation3 + $0x80] sm:$0xff] %vm250_vm1, %v4596_v24  ;;  %1677 = vperm.xlu1 %3334, %v4596_v24  }
 0x5d6   :  { %v1582_v59 = vpop.xlane.xlu0 %1581 }
 0x5d7   :  { %v4607_v39 = vmax.f32 %v4599_v56, %v1582_v59 }
 0x5d8   :  { %v1594_v22 = vpop.xlane.xlu1 %1593 }
 0x5d9   :  { %2175 = vst.msk [vmem:[#allocation3 + $0x88] sm:$0xff] %vm250_vm1, %v4607_v39  ;;  %v4616_v36 = vmax.f32 %v4604_v4, %v1594_v22  ;;  %1682 = vperm.xlu1 %3334, %v4607_v39  }
 0x5da   :  { %v1592_v30 = vpop.xlane.xlu0 %1591 }
 0x5db   :  { %2181 = vst.msk [vmem:[#allocation3 + $0xb8] sm:$0xff] %vm250_vm1, %v4616_v36  ;;  %v4626_v51 = vmax.f32 %v4609_v34, %v1592_v30  ;;  %1712 = vperm.xlu0 %3335, %v4616_v36  }
 0x5dc   :  { %v1590_v18 = vpop.xlane.xlu1 %1589 }
 0x5dd   :  { %2180 = vst.msk [vmem:[#allocation3 + $0xb0] sm:$0xff] %vm250_vm1, %v4626_v51  ;;  %v4634_v22 = vmax.f32 %v4619_v45, %v1590_v18  ;;  %1707 = vperm.xlu1 %3334, %v4626_v51   ;;  %v5164_v18 = vsub.f32 %v4242_v27, %v5163_v0 }
 0x5de   :  { %v1588_v59 = vpop.xlane.xlu0 %1587 }
 0x5df   :  { %2179 = vst.msk [vmem:[#allocation3 + $0xa8] sm:$0xff] %vm250_vm1, %v4634_v22  ;;  %v4644_v52 = vmax.f32 %v4629_v42, %v1588_v59  ;;  %1702 = vperm.xlu0 %3335, %v4634_v22   ;;  %v853_v16 = vmul.f32 1.442695, %v5164_v18  ;;  %v4658_v59 = vld [vmem:[#allocation3 + $0xc8] sm:$0xff] }
 0x5e0   :  { %v1602_v47 = vpop.xlane.xlu1 %1601 }
 0x5e1   :  { %2178 = vst.msk [vmem:[#allocation3 + $0xa0] sm:$0xff] %vm250_vm1, %v4644_v52  ;;  %v4655_v30 = vmax.f32 %v4637_v20, %v1602_v47  ;;  %1697 = vperm.xlu1 %3334, %v4644_v52   ;;  %3407 = vpow2.f32 %v853_v16  ;;  %v4668_v47 = vld [vmem:[#allocation3 + $0xc0] sm:$0xff] }
 0x5e2   :  { %v1600_v33 = vpop.xlane.xlu0 %1599 }
 0x5e3   :  { %2185 = vst.msk [vmem:[#allocation3 + $0xd8] sm:$0xff] %vm250_vm1, %v4655_v30  ;;  %v4665_v27 = vmax.f32 %v4650_v19, %v1600_v33  ;;  %1732 = vperm.xlu0 %3335, %v4655_v30  }
 0x5e4   :  { %v1598_v0 = vpop.xlane.xlu1 %1597 }
 0x5e5   :  { %2184 = vst.msk [vmem:[#allocation3 + $0xd0] sm:$0xff] %vm250_vm1, %v4665_v27  ;;  %v4673_v18 = vmax.f32 %v4658_v59, %v1598_v0  ;;  %1727 = vperm.xlu1 %3334, %v4665_v27  }
 0x5e6   :  { %v1596_v14 = vpop.xlane.xlu0 %1595 }
 0x5e7   :  { %2183 = vst.msk [vmem:[#allocation3 + $0xc8] sm:$0xff] %vm250_vm1, %v4673_v18  ;;  %v4681_v16 = vmax.f32 %v4668_v47, %v1596_v14  ;;  %1722 = vperm.xlu0 %3335, %v4673_v18   ;;  %v4694_v14 = vld [vmem:[#allocation3 + $0xe0] sm:$0xff] }
 0x5e8   :  { %v2022_v33 = vpop.permute.xlu1 %2021 }
 0x5e9   :  { %2182 = vst.msk [vmem:[#allocation3 + $0xc0] sm:$0xff] %vm250_vm1, %v4681_v16  ;;  %3193 = vmatprep.subr.bf16.mxu1 %v2022_v33  ;;  %1717 = vperm.xlu1 %3334, %v4681_v16  }
 0x5ea   :  { %3194 = vmatpush3.bf16.msra.mxu1 %v2022_v33  ;;  %v1608_v0 = vpop.xlane.xlu0 %1607 }
 0x5eb   :  { %v4690_v43 = vmax.f32 %v4684_v7, %v1608_v0  ;;  %2035 = vrot.lane.b32.xlu0 %v5166_v17, %s3572_s20  ;;  %v4702_v50 = vpop.eup %3407 }
 0x5ec   :  { %v1014_v17 = vmul.f32 %v4702_v50, %v998_v26  ;;  %v2026_v23 = vpop.permute.xlu1 %2025  ;;  %v1627_v26 = vsub.f32 %v4583_v1, %v4596_v24  ;;  %v1576_v1 = vld [vmem:[#allocation3 + $0xe8] sm:$0xff] }
 0x5ed   :  { %2188 = vst.msk [vmem:[#allocation3 + $0xf0] sm:$0xff] %vm250_vm1, %v4690_v43  ;;  %2033 = vrot.lane.b32.xlu1 %v5167_v8, %s3572_s20 }
 0x5ee   :  { %v1604_v33 = vpop.xlane.xlu0 %1603 }
 0x5ef   :  { %v4705_v0 = vmax.f32 %v4694_v14, %v1604_v33 }
 0x5f1   :  { %2186 = vst.msk [vmem:[#allocation3 + $0xe0] sm:$0xff] %vm250_vm1, %v4705_v0  ;;  %1737 = vperm.xlu1 %3334, %v4705_v0  }
 0x5f2   :  { %v1046_v2 = vpop.xlane.xlu0 %1045 }
 0x5f3   :  { %v1062_v7 = vadd.f32 %v1046_v2, %v1014_v17  ;;  %v1629_v2 = vsub.f32 %v4576_v58, %v4581_v29  ;;  %v1637_v58 = vsub.f32 %v4650_v19, %v4665_v27  ;;  %v1639_v27 = vsub.f32 %v4694_v14, %v4705_v0 }
 0x5f5   :  { %1079 = vst.msk [vmem:[#allocation4 + $0x78] sm:$0xff] %vm250_vm1, %v1062_v7  ;;  %1747 = vperm.xlu1 %3334, %v4690_v43  }
 0x5f6   :  { %v2024_v8 = vpop.permute.xlu0 %2023 }
 0x5f7   :  { %3195 = vmatprep.subr.bf16.mxu1 %v2024_v8 }
 0x5f8   :  { %3196 = vmatpush3.bf16.msra.mxu1 %v2024_v8  ;;  %v1667_v8 = vmul.f32 1.442695, %v1639_v27 }
 0x5f9   :  { %1098 = vperm.xlu1 %3334, %v4360_v13   ;;  %3197 = vmatprep.subr.bf16.mxu1 %v2026_v23  ;;  %v1643_v13 = vmul.f32 1.442695, %v1627_v26 }
 0x5fa   :  { %v2028_v33 = vpop.permute.xlu0 %2027 }
 0x5fb   :  { %3409 = vpow2.f32 %v1643_v13 }
 0x5fc   :  { %3198 = vmatpush3.bf16.msra.mxu1 %v2026_v23  ;;  %v1647_v23 = vmul.f32 1.442695, %v1629_v2 }
 0x5fd   :  { %1108 = vperm.xlu1 %3334, %v4358_v12   ;;  %3199 = vmatprep.subr.bf16.mxu1 %v2028_v33  ;;  %v5168_v12 = vsub.f32 %v4578_v37, %v4588_v44  ;;  %v4737_v37 = vld [vmem:[#allocation3 + $0xf8] sm:$0xff] }
 0x5fe   :  { %3411 = vpow2.f32 %v1647_v23 }
 0x600   :  { %3200 = vmatpush3.bf16.msra.mxu1 %v2028_v33  ;;  %v2032_v33 = vpop.permute.xlu0 %2031 }
 0x601   :  { %1118 = vperm.xlu1 %3334, %v4395_v32   ;;  %v1631_v32 = vsub.f32 %v4629_v42, %v4644_v52 }
 0x603   :  { %v1651_v7 = vmul.f32 1.442695, %v1631_v32 }
 0x605   :  { %1128 = vperm.xlu1 %3334, %v4386_v25   ;;  %v1649_v25 = vmul.f32 1.442695, %v5168_v12 }
 0x607   :  { %3413 = vpow2.f32 %v1649_v25 }
 0x608   :  { %3415 = vpow2.f32 %v1651_v7 }
 0x609   :  { %1138 = vperm.xlu1 %3334, %v4431_v60   ;;  %v1633_v60 = vsub.f32 %v4609_v34, %v4626_v51  ;;  %v1635_v51 = vsub.f32 %v4668_v47, %v4681_v16 }
 0x60b   :  { %v1659_v34 = vmul.f32 1.442695, %v1635_v51 }
 0x60d   :  { %1148 = vperm.xlu1 %3334, %v4424_v9   ;;  %v4732_v9 = vpop.eup %3409 }
 0x60e   :  { %v4739_v29 = vpop.eup %3411 }
 0x611   :  { %1158 = vperm.xlu1 %3334, %v4442_v31   ;;  %v1655_v31 = vmul.f32 1.442695, %v1633_v60  ;;  %v4747_v44 = vpop.eup %3413 }
 0x612   :  { %v4756_v16 = vpop.eup %3415 }
 0x613   :  { %3417 = vpow2.f32 %v1655_v31 }
 0x615   :  { %1168 = vperm.xlu1 %3334, %v4437_v40   ;;  %v1663_v40 = vmul.f32 1.442695, %v1637_v58 }
 0x617   :  { %3419 = vpow2.f32 %v1663_v40 }
 0x618   :  { %3421 = vpow2.f32 %v1659_v34 }
 0x619   :  { %1919 = vperm.xlu1 %3334, %v4732_v9   ;;  %3423 = vpow2.f32 %v1667_v8 }
 0x61d   :  { %v1610_v52 = vpop.xlane.xlu1 %1609  ;;  %1929 = vperm.xlu1 %3334, %v4739_v29   ;;  %v4760_v26 = vpop.eup %3417 }
 0x61e   :  { %v4745_v42 = vmax.f32 %v4737_v37, %v1610_v52 }
 0x620   :  { %v1642_v19 = vsub.f32 %v4737_v37, %v4745_v42  ;;  %2189 = vst.msk [vmem:[#allocation3 + $0xf8] sm:$0xff] %vm250_vm1, %v4745_v42  ;;  %v5193_v37 = vld [vmem:[#allocation39_spill] sm:$0xff] }
 0x621   :  { %v1606_v24 = vpop.xlane.xlu1 %1605  ;;  %1934 = vperm.xlu1 %3334, %v4747_v44   ;;  %v4764_v14 = vpop.eup %3419 }
 0x622   :  { %v1624_v47 = vmax.f32 %v1576_v1, %v1606_v24  ;;  %v4768_v0 = vpop.eup %3421 }
 0x623   :  { %v4772_v2 = vpop.eup %3423 }
 0x624   :  { %2187 = vst.msk [vmem:[#allocation3 + $0xe8] sm:$0xff] %vm250_vm1, %v1624_v47  ;;  %1742 = vperm.xlu0 %3335, %v1624_v47  }
 0x625   :  { %v2030_v17 = vpop.permute.xlu1 %2029  ;;  %1939 = vperm.xlu1 %3334, %v4756_v16  }
 0x626   :  { %3201 = vmatprep.subr.bf16.mxu1 %v2030_v17 }
 0x627   :  { %3202 = vmatpush3.bf16.msra.mxu1 %v2030_v17 }
 0x628   :  { %1752 = vperm.xlu0 %3335, %v4745_v42   ;;  %3203 = vmatprep.subr.bf16.mxu1 %v2032_v33 }
 0x629   :  { %1949 = vperm.xlu1 %3334, %v4760_v26  }
 0x62b   :  { %3204 = vmatpush3.bf16.msra.mxu1 %v2032_v33 }
 0x62c   :  { %1103 = vperm.xlu0 %3335, %v4368_v10   ;;  %v5169_v10 = vsub.f32 %v4599_v56, %v4607_v39  ;;  %v1640_v56 = vsub.f32 %v1576_v1, %v1624_v47 }
 0x62d   :  { %1969 = vperm.xlu1 %3334, %v4764_v14  }
 0x62e   :  { %v1645_v13 = vmul.f32 1.442695, %v5169_v10 }
 0x630   :  { %1113 = vperm.xlu0 %3335, %v4363_v49   ;;  %3425 = vpow2.f32 %v1645_v13  ;;  %v5170_v49 = vsub.f32 %v4619_v45, %v4634_v22 }
 0x631   :  { %1959 = vperm.xlu1 %3334, %v4768_v0  }
 0x632   :  { %v1653_v23 = vmul.f32 1.442695, %v5170_v49 }
 0x634   :  { %1123 = vperm.xlu0 %3335, %v4411_v15   ;;  %v5171_v15 = vsub.f32 %v4604_v4, %v4616_v36  ;;  %3427 = vpow2.f32 %v1653_v23 }
 0x635   :  { %1979 = vperm.xlu1 %3334, %v4772_v2  }
 0x636   :  { %v1657_v12 = vmul.f32 1.442695, %v5171_v15 }
 0x638   :  { %1133 = vperm.xlu0 %3335, %v4403_v5   ;;  %3429 = vpow2.f32 %v1657_v12  ;;  %v5172_v5 = vsub.f32 %v4637_v20, %v4655_v30 }
 0x63c   :  { %1143 = vperm.xlu0 %3335, %v4428_v54   ;;  %v1665_v54 = vmul.f32 1.442695, %v5172_v5 }
 0x63e   :  { %3431 = vpow2.f32 %v1665_v54 }
 0x640   :  { %1153 = vperm.xlu0 %3335, %v4422_v57   ;;  %v4793_v57 = vpop.eup %3425 }
 0x641   :  { %v4799_v4 = vpop.eup %3427 }
 0x642   :  { %v4802_v36 = vpop.eup %3429 }
 0x644   :  { %1163 = vperm.xlu0 %3335, %v4448_v62   ;;  %v5173_v62 = vsub.f32 %v4658_v59, %v4673_v18 }
 0x646   :  { %v1661_v45 = vmul.f32 1.442695, %v5173_v62 }
 0x648   :  { %1173 = vperm.xlu0 %3335, %v4702_v50   ;;  %3433 = vpow2.f32 %v1661_v45  ;;  %v1669_v50 = vmul.f32 1.442695, %v1640_v56  ;;  %v4806_v25 = vpop.eup %3431 }
 0x64a   :  { %3435 = vpow2.f32 %v1669_v50 }
 0x64c   :  { %1924 = vperm.xlu0 %3335, %v4793_v57  }
 0x650   :  { %v1688_v39 = vpop.permute.xlu1 %1687  ;;  %1944 = vperm.xlu0 %3335, %v4799_v4  }
 0x651   :  { %v1757_v1 = vsub.f32 %v4485_v55, %v1688_v39 }
 0x652   :  { %v1693_v30 = vpop.permute.xlu0 %1692  ;;  %v4810_v7 = vpop.eup %3433 }
 0x653   :  { %v1758_v52 = vsub.f32 %v4489_v6, %v1693_v30 }
 0x654   :  { %v1678_v20 = vpop.permute.xlu1 %1677  ;;  %1954 = vperm.xlu0 %3335, %v4802_v36   ;;  %v4815_v51 = vpop.eup %3435 }
 0x655   :  { %v1755_v22 = vsub.f32 %v4494_v3, %v1678_v20  ;;  %v1777_v47 = vmul.f32 1.442695, %v1758_v52 }
 0x657   :  { %v1771_v59 = vmul.f32 1.442695, %v1755_v22 }
 0x658   :  { %v1683_v18 = vpop.permute.xlu1 %1682  ;;  %1974 = vperm.xlu0 %3335, %v4806_v25  }
 0x659   :  { %3437 = vpow2.f32 %v1771_v59  ;;  %v1756_v32 = vsub.f32 %v4500_v46, %v1683_v18 }
 0x65a   :  { %v1713_v60 = vpop.permute.xlu0 %1712 }
 0x65b   :  { %v1773_v31 = vmul.f32 1.442695, %v1756_v32  ;;  %v1762_v23 = vsub.f32 %v4504_v35, %v1713_v60 }
 0x65c   :  { %1964 = vperm.xlu0 %3335, %v4810_v7   ;;  %v1708_v58 = vpop.permute.xlu1 %1707 }
 0x65d   :  { %3439 = vpow2.f32 %v1773_v31  ;;  %v1761_v3 = vsub.f32 %v4509_v21, %v1708_v58  ;;  %v1775_v21 = vmul.f32 1.442695, %v1757_v1  ;;  %v1785_v62 = vmul.f32 1.442695, %v1762_v23  ;;  %v1086_v23 = vld [vmem:[#allocation5 + $0x30] sm:$0xff] }
 0x65e   :  { %v1703_v40 = vpop.permute.xlu0 %1702 }
 0x65f   :  { %v1783_v24 = vmul.f32 1.442695, %v1761_v3  ;;  %v1760_v46 = vsub.f32 %v4514_v11, %v1703_v40 }
 0x660   :  { %1984 = vperm.xlu0 %3335, %v4815_v51   ;;  %v1698_v34 = vpop.permute.xlu1 %1697 }
 0x661   :  { %3441 = vpow2.f32 %v1783_v24  ;;  %v1759_v27 = vsub.f32 %v4519_v53, %v1698_v34  ;;  %v1781_v6 = vmul.f32 1.442695, %v1760_v46  ;;  %v1082_v34 = vld [vmem:[#allocation5 + $0x10] sm:$0xff] }
 0x662   :  { %v1733_v17 = vpop.permute.xlu0 %1732 }
 0x663   :  { %v3438_v8 = vpop.eup %3437  ;;  %v1779_v33 = vmul.f32 1.442695, %v1759_v27  ;;  %v1766_v20 = vsub.f32 %v4524_v61, %v1733_v17  ;;  %v1080_v61 = vld [vmem:[#allocation5] sm:$0xff] }
 0x664   :  { %v1728_v10 = vpop.permute.xlu1 %1727  ;;  %1836 = vadd.xlane.f32.xlu1 %v3438_v8 }
 0x665   :  { %3443 = vpow2.f32 %v1779_v33  ;;  %v1765_v55 = vsub.f32 %v4529_v41, %v1728_v10  ;;  %v1793_v18 = vmul.f32 1.442695, %v1766_v20  ;;  %v1084_v33 = vld [vmem:[#allocation5 + $0x20] sm:$0xff] }
 0x666   :  { %3445 = vpow2.f32 %v1777_v47  ;;  %v1723_v13 = vpop.permute.xlu0 %1722  ;;  %v5174_v47 = vld [vmem:[#allocation26_spill] sm:$0xff] }
 0x667   :  { %v4822_v11 = vpop.eup %3439  ;;  %3447 = vpow2.f32 %v1775_v21  ;;  %v1791_v49 = vmul.f32 1.442695, %v1765_v55  ;;  %v1764_v12 = vsub.f32 %v4534_v48, %v1723_v13 }
 0x668   :  { %3449 = vpow2.f32 %v1781_v6  ;;  %v1718_v53 = vpop.permute.xlu1 %1717  ;;  %v2013_v15 = vpack.c.bf16 %v4822_v11, %v3438_v8  ;;  %v5175_v6 = vld [vmem:[#allocation25_spill] sm:$0xff] }
 0x669   :  { %3451 = vpow2.f32 %v1791_v49  ;;  %v1763_v5 = vsub.f32 %v4539_v28, %v1718_v53  ;;  %v1789_v56 = vmul.f32 1.442695, %v1764_v12 }
 0x66a   :  { %3209 = vmatprep.mubr.bf16.mxu1 %v2013_v15  ;;  %v2036_v39 = vpop.permute.xlu0 %2035  ;;  %v5176_v15 = vld [vmem:[#allocation30_spill] sm:$0xff] }
 0x66b   :  { %v3442_v54 = vpop.eup %3441  ;;  %v1787_v41 = vmul.f32 1.442695, %v1763_v5 }
 0x66c   :  { %v2034_v45 = vpop.permute.xlu1 %2033  ;;  %1848 = vadd.xlane.f32.xlu1 %v3442_v54 }
 0x66d   :  { %3453 = vpow2.f32 %v1787_v41  ;;  %3205 = vmatprep.subr.bf16.mxu1 %v2034_v45 }
 0x66e   :  { %3206 = vmatpush3.bf16.msra.mxu1 %v2034_v45  ;;  %3455 = vpow2.f32 %v1785_v62  ;;  %v1088_v62 = vld [vmem:[#allocation5 + $0x40] sm:$0xff] }
 0x66f   :  { %v3444_v35 = vpop.eup %3443  ;;  %3207 = vmatprep.subr.bf16.mxu1 %v2036_v39  ;;  %3457 = vpow2.f32 %v1789_v56  ;;  %v5177_v56 = vld [vmem:[#allocation29_spill] sm:$0xff] }
 0x670   :  { %v3446_v50 = vpop.eup %3445  ;;  %v1738_v48 = vpop.permute.xlu1 %1737  ;;  %1844 = vadd.xlane.f32.xlu1 %v3444_v35  ;;  %3459 = vpow2.f32 %v1793_v18 }
 0x671   :  { %v3448_v28 = vpop.eup %3447  ;;  %v1767_v31 = vsub.f32 %v4550_v63, %v1738_v48 }
 0x672   :  { %v4829_v22 = vpop.eup %3449  ;;  %3208 = vmatpush3.bf16.msra.mxu1 %v2036_v39  ;;  %v2014_v59 = vpack.c.bf16 %v3446_v50, %v3448_v28 }
 0x673   :  { %v3452_v30 = vpop.eup %3451  ;;  %v2015_v60 = vpack.c.bf16 %v4829_v22, %v3444_v35  ;;  %v1795_v1 = vmul.f32 1.442695, %v1767_v31  ;;  %v1092_v31 = vld [vmem:[#allocation5 + $0x60] sm:$0xff] }
 0x674   :  { %v1748_v32 = vpop.permute.xlu1 %1747  ;;  %1856 = vadd.xlane.f32.xlu1 %v3452_v30 }
 0x675   :  { %v1769_v58 = vsub.f32 %v4545_v38, %v1748_v32  ;;  %3210 = vmatmul.mubr.bf16.vlgmr.msra.gmra.mrb[16].mxu1 %v2014_v59  ;;  %v5180_v59 = vld [vmem:[#allocation34_spill] sm:$0xff] }
 0x676   :  { %3213 = vmatprep.mubr.bf16.mxu1 %v2015_v60 }
 0x677   :  { %v3454_v3 = vpop.eup %3453  ;;  %v1799_v52 = vmul.f32 1.442695, %v1769_v58 }
 0x678   :  { %v1099_v40 = vpop.permute.xlu1 %1098  ;;  %1852 = vadd.xlane.f32.xlu1 %v3454_v3  ;;  %v3456_v46 = vpop.eup %3455 }
 0x679   :  { %3461 = vpow2.f32 %v1799_v52  ;;  %v1176_v24 = vmul.f32 %v1099_v40, %v1080_v61  ;;  %v3458_v27 = vpop.eup %3457  ;;  %v2016_v8 = vpack.c.bf16 %v3456_v46, %v3442_v54  ;;  %v5182_v52 = vld [vmem:[#allocation38_spill] sm:$0xff] }
 0x67a   :  { %v2017_v21 = vpack.c.bf16 %v3458_v27, %v3454_v3  ;;  %3463 = vpow2.f32 %v1795_v1  ;;  %v3460_v49 = vpop.eup %3459 }
 0x67b   :  { %v1329_v17 = vadd.f32 %v5174_v47, %v1176_v24  ;;  %v2018_v5 = vpack.c.bf16 %v3460_v49, %v3452_v30  ;;  %v1090_v30 = vld [vmem:[#allocation5 + $0x50] sm:$0xff] }
 0x67c   :  { %v1109_v63 = vpop.permute.xlu1 %1108 }
 0x67d   :  { %1345 = vst.msk [vmem:[#allocation5] sm:$0xff] %vm315_vm2, %v1329_v17  ;;  %v1178_v38 = vmul.f32 %v1109_v63, %v1082_v34  ;;  %3214 = vmatmul.mubr.bf16.gmra.mrb[20].mxu1 %v2016_v8  ;;  %v5184_v17 = vld [vmem:[#allocation17_spill] sm:$0xff] }
 0x67e   :  { %3217 = vmatprep.mubr.bf16.mxu1 %v2017_v21 }
 0x67f   :  { %v1331_v10 = vadd.f32 %v5175_v6, %v1178_v38  ;;  %1840 = vadd.xlane.f32.xlu0 %v3448_v28  ;;  %v5185_v38 = vld [vmem:[#allocation16_spill] sm:$0xff] }
 0x680   :  { %v1119_v55 = vpop.permute.xlu1 %1118  ;;  %v1081_v6 = vld [vmem:[#allocation5 + $0x8] sm:$0xff] }
 0x681   :  { %1347 = vst.msk [vmem:[#allocation5 + $0x10] sm:$0xff] %vm315_vm2, %v1331_v10  ;;  %v1180_v13 = vmul.f32 %v1119_v55, %v1084_v33 }
 0x683   :  { %v4838_v53 = vpop.eup %3461  ;;  %v1333_v12 = vadd.f32 %v5176_v15, %v1180_v13  ;;  %1842 = vadd.xlane.f32.xlu0 %v3446_v50  ;;  %v5178_v50 = vld [vmem:[#allocation18_spill] sm:$0xff] }
 0x684   :  { %v1129_v54 = vpop.permute.xlu1 %1128  ;;  %1864 = vadd.xlane.f32.xlu1 %v4838_v53  ;;  %v3464_v45 = vpop.eup %3463  ;;  %v5179_v48 = vsub.f32 %v5178_v50, %v4690_v43  ;;  %v1094_v43 = vld [vmem:[#allocation5 + $0x70] sm:$0xff] }
 0x685   :  { %1349 = vst.msk [vmem:[#allocation5 + $0x20] sm:$0xff] %vm315_vm2, %v1333_v12  ;;  %v1182_v41 = vmul.f32 %v1129_v54, %v1086_v23  ;;  %3218 = vmatmul.mubr.bf16.gmra.mrb[24].mxu1 %v2018_v5  ;;  %v1085_v5 = vld [vmem:[#allocation5 + $0x28] sm:$0xff] }
 0x686   :  { %v1671_v28 = vmul.f32 1.442695, %v5179_v48  ;;  %v5188_v48 = vld [vmem:[#allocation32_spill] sm:$0xff] }
 0x687   :  { %v1335_v39 = vadd.f32 %v5177_v56, %v1182_v41  ;;  %1838 = vadd.xlane.f32.xlu0 %v4822_v11  ;;  %v5181_v11 = vld [vmem:[#allocation33_spill] sm:$0xff]  ;;  %v5187_v41 = vld [vmem:[#allocation27_spill] sm:$0xff] }
 0x688   :  { %v1139_v35 = vpop.permute.xlu1 %1138  ;;  %1860 = vadd.xlane.f32.xlu1 %v3464_v45  ;;  %3465 = vpow2.f32 %v1671_v28 }
 0x689   :  { %1351 = vst.msk [vmem:[#allocation5 + $0x30] sm:$0xff] %vm315_vm2, %v1335_v39  ;;  %v1184_v20 = vmul.f32 %v1139_v35, %v1088_v62 }
 0x68b   :  { %v1337_v18 = vadd.f32 %v5180_v59, %v1184_v20  ;;  %1850 = vadd.xlane.f32.xlu0 %v3456_v46  ;;  %v5183_v46 = vld [vmem:[#allocation37_spill] sm:$0xff]  ;;  %v1087_v20 = vld [vmem:[#allocation5 + $0x38] sm:$0xff] }
 0x68c   :  { %v1149_v32 = vpop.permute.xlu1 %1148 }
 0x68d   :  { %1353 = vst.msk [vmem:[#allocation5 + $0x40] sm:$0xff] %vm315_vm2, %v1337_v18  ;;  %v1186_v60 = vmul.f32 %v1149_v32, %v1090_v30  ;;  %v1089_v32 = vld [vmem:[#allocation5 + $0x48] sm:$0xff] }
 0x68f   :  { %v1339_v58 = vadd.f32 %v5181_v11, %v1186_v60  ;;  %1846 = vadd.xlane.f32.xlu0 %v4829_v22  ;;  %v5189_v60 = vld [vmem:[#allocation31_spill] sm:$0xff] }
 0x690   :  { %v1159_v61 = vpop.permute.xlu1 %1158 }
 0x691   :  { %1355 = vst.msk [vmem:[#allocation5 + $0x50] sm:$0xff] %vm315_vm2, %v1339_v58  ;;  %v1188_v3 = vmul.f32 %v1159_v61, %v1092_v31  ;;  %v1091_v58 = vld [vmem:[#allocation5 + $0x58] sm:$0xff]  ;;  %v5190_v61 = vld [vmem:[#allocation36_spill] sm:$0xff] }
 0x692   :  { %v4857_v47 = vpop.eup %3465 }
 0x693   :  { %v1341_v40 = vadd.f32 %v5182_v52, %v1188_v3  ;;  %1858 = vadd.xlane.f32.xlu0 %v3460_v49  ;;  %v5186_v49 = vld [vmem:[#allocation28_spill] sm:$0xff] }
 0x694   :  { %v1169_v1 = vpop.permute.xlu1 %1168 }
 0x695   :  { %1357 = vst.msk [vmem:[#allocation5 + $0x60] sm:$0xff] %vm315_vm2, %v1341_v40  ;;  %v1190_v24 = vmul.f32 %v1169_v1, %v1094_v43  ;;  %v1673_v40 = vmul.f32 1.442695, %v1642_v19  ;;  %v5191_v1 = vld [vmem:[#allocation35_spill] sm:$0xff] }
 0x697   :  { %v1343_v34 = vadd.f32 %v5183_v46, %v1190_v24  ;;  %1854 = vadd.xlane.f32.xlu0 %v3458_v27  ;;  %v1083_v27 = vld [vmem:[#allocation5 + $0x18] sm:$0xff] }
 0x698   :  { %v4878_v46 = vpop.permute.xlu1 %1919 }
 0x699   :  { %1359 = vst.msk [vmem:[#allocation5 + $0x70] sm:$0xff] %vm315_vm2, %v1343_v34  ;;  %1989 = vperm.xlu1 %3334, %v4857_v47  }
 0x6a3   :  { %v1743_v22 = vpop.permute.xlu0 %1742 }
 0x6a4   :  { %v1768_v8 = vsub.f32 %v5184_v17, %v1743_v22  ;;  %v1095_v17 = vld [vmem:[#allocation5 + $0x78] sm:$0xff] }
 0x6a6   :  { %v1797_v63 = vmul.f32 1.442695, %v1768_v8  ;;  %v5192_v8 = vld [vmem:[#allocation40_spill] sm:$0xff] }
 0x6a7   :  { %v1753_v21 = vpop.permute.xlu0 %1752 }
 0x6a8   :  { %3467 = vpow2.f32 %v1797_v63  ;;  %v1770_v33 = vsub.f32 %v5185_v38, %v1753_v21 }
 0x6aa   :  { %v1801_v10 = vmul.f32 1.442695, %v1770_v33  ;;  %v4883_v33 = vpop.permute.xlu1 %1929 }
 0x6ab   :  { %v1104_v55 = vpop.permute.xlu0 %1103 }
 0x6ac   :  { %3469 = vpow2.f32 %v1801_v10  ;;  %v1177_v13 = vmul.f32 %v1104_v55, %v1081_v6 }
 0x6ad   :  { %3471 = vpow2.f32 %v1673_v40 }
 0x6ae   :  { %v1330_v23 = vadd.f32 %v5186_v49, %v1177_v13  ;;  %v4887_v19 = vpop.permute.xlu1 %1934 }
 0x6af   :  { %v1114_v15 = vpop.permute.xlu0 %1113 }
 0x6b0   :  { %1346 = vst.msk [vmem:[#allocation5 + $0x8] sm:$0xff] %vm315_vm2, %v1330_v23  ;;  %v1179_v12 = vmul.f32 %v1114_v15, %v1083_v27  ;;  %v1804_v15 = vld [vmem:[#allocation4 + $0x80] sm:$0xff] }
 0x6b2   :  { %v3468_v54 = vpop.eup %3467  ;;  %v1332_v62 = vadd.f32 %v5187_v41, %v1179_v12  ;;  %v4892_v10 = vpop.permute.xlu1 %1939 }
 0x6b3   :  { %v1124_v56 = vpop.permute.xlu0 %1123  ;;  %v2019_v39 = vpack.c.bf16 %v3468_v54, %v3464_v45 }
 0x6b4   :  { %1348 = vst.msk [vmem:[#allocation5 + $0x18] sm:$0xff] %vm315_vm2, %v1332_v62  ;;  %v1181_v35 = vmul.f32 %v1124_v56, %v1085_v5  ;;  %v1820_v5 = vmul.f32 %v4732_v9, %v1804_v15  ;;  %v1810_v62 = vld [vmem:[#allocation4 + $0xb0] sm:$0xff] }
 0x6b5   :  { %3221 = vmatprep.mubr.bf16.mxu1 %v2019_v39  ;;  %v1826_v39 = vmul.f32 %v4760_v26, %v1810_v62  ;;  %v1814_v9 = vld [vmem:[#allocation4 + $0xd0] sm:$0xff]  ;;  %v1815_v62 = vld [vmem:[#allocation4 + $0xd8] sm:$0xff] }
 0x6b6   :  { %v3470_v50 = vpop.eup %3469  ;;  %v1334_v28 = vadd.f32 %v5188_v48, %v1181_v35  ;;  %v4894_v55 = vpop.permute.xlu1 %1949 }
 0x6b7   :  { %1866 = vadd.xlane.f32.xlu0 %v3470_v50  ;;  %v1134_v30 = vpop.permute.xlu0 %1133  ;;  %v2020_v59 = vpack.c.bf16 %v3470_v50, %v4838_v53  ;;  %v1093_v53 = vld [vmem:[#allocation5 + $0x68] sm:$0xff]  ;;  %v4889_v6 = vpop.eup %3471 }
 0x6b8   :  { %1350 = vst.msk [vmem:[#allocation5 + $0x28] sm:$0xff] %vm315_vm2, %v1334_v28  ;;  %v1183_v18 = vmul.f32 %v1134_v30, %v1087_v20  ;;  %v1808_v20 = vld [vmem:[#allocation4 + $0xa0] sm:$0xff] }
 0x6b9   :  { %3222 = vmatmul.mubr.bf16.gmra.mrb[28].mxu1 %v2020_v59  ;;  %v1824_v28 = vmul.f32 %v4756_v16, %v1808_v20  ;;  %v1806_v16 = vld [vmem:[#allocation4 + $0x90] sm:$0xff]  ;;  %v1813_v20 = vld [vmem:[#allocation4 + $0xc8] sm:$0xff] }
 0x6ba   :  { %v1336_v31 = vadd.f32 %v5189_v60, %v1183_v18  ;;  %v4896_v13 = vpop.permute.xlu1 %1969  ;;  %v1830_v18 = vmul.f32 %v4764_v14, %v1814_v9  ;;  %v1812_v60 = vld [vmem:[#allocation4 + $0xc0] sm:$0xff]  ;;  %v1807_v14 = vld [vmem:[#allocation4 + $0x98] sm:$0xff] }
 0x6bb   :  { %1862 = vadd.xlane.f32.xlu0 %v3468_v54  ;;  %v1144_v45 = vpop.permute.xlu0 %1143  ;;  %v1823_v40 = vmul.f32 %v4747_v44, %v1807_v14  ;;  %v1819_v9 = vld [vmem:[#allocation4 + $0xf8] sm:$0xff] }
 0x6bc   :  { %1352 = vst.msk [vmem:[#allocation5 + $0x38] sm:$0xff] %vm315_vm2, %v1336_v31  ;;  %v1185_v11 = vmul.f32 %v1144_v45, %v1089_v32  ;;  %v1828_v45 = vmul.f32 %v4768_v0, %v1812_v60  ;;  %v1901_v60 = vld [vmem:[#allocation5 + $0x80] sm:$0xff] }
 0x6be   :  { %v1338_v3 = vadd.f32 %v5190_v61, %v1185_v11  ;;  %v4898_v27 = vpop.permute.xlu1 %1959 }
 0x6bf   :  { %v1154_v43 = vpop.permute.xlu0 %1153 }
 0x6c0   :  { %1354 = vst.msk [vmem:[#allocation5 + $0x48] sm:$0xff] %vm315_vm2, %v1338_v3  ;;  %v1187_v52 = vmul.f32 %v1154_v43, %v1091_v58  ;;  %v1822_v3 = vmul.f32 %v4739_v29, %v1806_v16 }
 0x6c2   :  { %v1340_v24 = vadd.f32 %v5191_v1, %v1187_v52  ;;  %v4902_v23 = vpop.permute.xlu1 %1979 }
 0x6c3   :  { %v1164_v34 = vpop.permute.xlu0 %1163 }
 0x6c4   :  { %1356 = vst.msk [vmem:[#allocation5 + $0x58] sm:$0xff] %vm315_vm2, %v1340_v24  ;;  %v1189_v22 = vmul.f32 %v1164_v34, %v1093_v53  ;;  %v1818_v53 = vld [vmem:[#allocation4 + $0xf0] sm:$0xff]  ;;  %v1805_v24 = vld [vmem:[#allocation4 + $0x88] sm:$0xff] }
 0x6c5   :  { %v1834_v0 = vmul.f32 %v4857_v47, %v1818_v53  ;;  %v1821_v29 = vmul.f32 %v4793_v57, %v1805_v24  ;;  %v1905_v24 = vld [vmem:[#allocation5 + $0xa0] sm:$0xff] }
 0x6c6   :  { %v1342_v63 = vadd.f32 %v5192_v8, %v1189_v22 }
 0x6c7   :  { %v1174_v21 = vpop.permute.xlu0 %1173 }
 0x6c8   :  { %1358 = vst.msk [vmem:[#allocation5 + $0x68] sm:$0xff] %vm315_vm2, %v1342_v63  ;;  %v1191_v38 = vmul.f32 %v1174_v21, %v1095_v17  ;;  %v1816_v17 = vld [vmem:[#allocation4 + $0xe0] sm:$0xff] }
 0x6c9   :  { %v1832_v21 = vmul.f32 %v4772_v2, %v1816_v17 }
 0x6ca   :  { %v1344_v42 = vadd.f32 %v5193_v37, %v1191_v38  ;;  %v1811_v38 = vld [vmem:[#allocation4 + $0xb8] sm:$0xff] }
 0x6cb   :  { %v4900_v49 = vpop.permute.xlu0 %1924  ;;  %v1827_v47 = vmul.f32 %v4802_v36, %v1811_v38  ;;  %v1829_v36 = vmul.f32 %v4810_v7, %v1813_v20 }
 0x6cc   :  { %1360 = vst.msk [vmem:[#allocation5 + $0x78] sm:$0xff] %vm315_vm2, %v1344_v42 }
 0x6cf   :  { %v4904_v12 = vpop.permute.xlu0 %1944 }
 0x6d1   :  { %1994 = vperm.xlu0 %3335, %v4889_v6  }
 0x6d3   :  { %v4908_v56 = vpop.permute.xlu0 %1954 }
 0x6d7   :  { %v4911_v48 = vpop.permute.xlu0 %1974 }
 0x6db   :  { %v4917_v31 = vpop.permute.xlu0 %1964 }
 0x6df   :  { %v4921_v61 = vpop.permute.xlu0 %1984 }
 0x6f1   :  { %v1837_v54 = vpop.xlane.xlu1 %1836 }
 0x6f2   :  { %v1868_v41 = vadd.f32 %v1837_v54, %v1820_v5  ;;  %v1809_v5 = vld [vmem:[#allocation4 + $0xa8] sm:$0xff] }
 0x6f3   :  { %v1825_v57 = vmul.f32 %v4799_v4, %v1809_v5  ;;  %v1835_v4 = vmul.f32 %v4889_v6, %v1819_v9  ;;  %v1910_v5 = vld [vmem:[#allocation5 + $0xc8] sm:$0xff] }
 0x6f4   :  { %1884 = vst.msk [vmem:[#allocation4 + $0x80] sm:$0xff] %vm250_vm1, %v1868_v41  ;;  %v1914_v9 = vld [vmem:[#allocation5 + $0xe8] sm:$0xff] }
 0x6f9   :  { %v1849_v35 = vpop.xlane.xlu1 %1848 }
 0x6fa   :  { %v1874_v50 = vadd.f32 %v1849_v35, %v1826_v39  ;;  %v1831_v39 = vmul.f32 %v4806_v25, %v1815_v62  ;;  %v1904_v25 = vld [vmem:[#allocation5 + $0x98] sm:$0xff] }
 0x6fc   :  { %1890 = vst.msk [vmem:[#allocation4 + $0xb0] sm:$0xff] %vm250_vm1, %v1874_v50 }
 0x6fd   :  { %v1845_v30 = vpop.xlane.xlu1 %1844 }
 0x6fe   :  { %v1872_v59 = vadd.f32 %v1845_v30, %v1824_v28 }
 0x700   :  { %1888 = vst.msk [vmem:[#allocation4 + $0xa0] sm:$0xff] %vm250_vm1, %v1872_v59  ;;  %v1903_v59 = vld [vmem:[#allocation5 + $0x90] sm:$0xff] }
 0x701   :  { %v1857_v32 = vpop.xlane.xlu1 %1856 }
 0x702   :  { %v1878_v26 = vadd.f32 %v1857_v32, %v1830_v18  ;;  %v1817_v32 = vld [vmem:[#allocation4 + $0xe8] sm:$0xff] }
 0x703   :  { %v1833_v7 = vmul.f32 %v4815_v51, %v1817_v32  ;;  %v1907_v51 = vld [vmem:[#allocation5 + $0xb0] sm:$0xff] }
 0x704   :  { %1894 = vst.msk [vmem:[#allocation4 + $0xd0] sm:$0xff] %vm250_vm1, %v1878_v26 }
 0x705   :  { %v1853_v11 = vpop.xlane.xlu1 %1852 }
 0x706   :  { %v1876_v58 = vadd.f32 %v1853_v11, %v1828_v45  ;;  %v1999_v45 = vmul.f32 %v4883_v33, %v1903_v59  ;;  %v1902_v11 = vld [vmem:[#allocation5 + $0x88] sm:$0xff] }
 0x707   :  { %v1998_v53 = vmul.f32 %v4900_v49, %v1902_v11  ;;  %v2003_v49 = vmul.f32 %v4894_v55, %v1907_v51 }
 0x708   :  { %1892 = vst.msk [vmem:[#allocation4 + $0xc0] sm:$0xff] %vm250_vm1, %v1876_v58  ;;  %v1997_v58 = vmul.f32 %v4878_v46, %v1901_v60 }
 0x70c   :  { %v1841_v43 = vpop.xlane.xlu0 %1840 }
 0x70d   :  { %v1870_v52 = vadd.f32 %v1841_v43, %v1822_v3  ;;  %v2000_v43 = vmul.f32 %v4887_v19, %v1904_v25  ;;  %v1908_v19 = vld [vmem:[#allocation5 + $0xb8] sm:$0xff] }
 0x70f   :  { %1886 = vst.msk [vmem:[#allocation4 + $0x90] sm:$0xff] %vm250_vm1, %v1870_v52 }
 0x710   :  { %v1843_v1 = vpop.xlane.xlu0 %1842 }
 0x711   :  { %v1871_v34 = vadd.f32 %v1843_v1, %v1823_v40  ;;  %v1865_v22 = vpop.xlane.xlu1 %1864 }
 0x712   :  { %v1882_v8 = vadd.f32 %v1865_v22, %v1834_v0  ;;  %v2001_v22 = vmul.f32 %v4892_v10, %v1905_v24  ;;  %v1912_v10 = vld [vmem:[#allocation5 + $0xd8] sm:$0xff] }
 0x713   :  { %1887 = vst.msk [vmem:[#allocation4 + $0x98] sm:$0xff] %vm250_vm1, %v1871_v34  ;;  %v1906_v34 = vld [vmem:[#allocation5 + $0xa8] sm:$0xff] }
 0x714   :  { %1898 = vst.msk [vmem:[#allocation4 + $0xf0] sm:$0xff] %vm250_vm1, %v1882_v8  ;;  %v1839_v63 = vpop.xlane.xlu0 %1838  ;;  %v2004_v8 = vmul.f32 %v4908_v56, %v1908_v19 }
 0x715   :  { %v1869_v37 = vadd.f32 %v1839_v63, %v1821_v29  ;;  %v1861_v44 = vpop.xlane.xlu1 %1860 }
 0x716   :  { %v1880_v42 = vadd.f32 %v1861_v44, %v1832_v21  ;;  %v2002_v21 = vmul.f32 %v4904_v12, %v1906_v34 }
 0x717   :  { %1885 = vst.msk [vmem:[#allocation4 + $0x88] sm:$0xff] %vm250_vm1, %v1869_v37 }
 0x718   :  { %1896 = vst.msk [vmem:[#allocation4 + $0xe0] sm:$0xff] %vm250_vm1, %v1880_v42  ;;  %v1851_v15 = vpop.xlane.xlu0 %1850 }
 0x719   :  { %v1875_v54 = vadd.f32 %v1851_v15, %v1827_v47  ;;  %v1911_v47 = vld [vmem:[#allocation5 + $0xd0] sm:$0xff]  ;;  %v1909_v15 = vld [vmem:[#allocation5 + $0xc0] sm:$0xff] }
 0x71a   :  { %v2007_v56 = vmul.f32 %v4896_v13, %v1911_v47  ;;  %v2005_v12 = vmul.f32 %v4898_v27, %v1909_v15  ;;  %v1915_v13 = vld [vmem:[#allocation5 + $0xf0] sm:$0xff]  ;;  %v1990_v27 = vpop.permute.xlu1 %1989 }
 0x71b   :  { %1891 = vst.msk [vmem:[#allocation4 + $0xb8] sm:$0xff] %vm250_vm1, %v1875_v54 }
 0x71c   :  { %v1847_v41 = vpop.xlane.xlu0 %1846 }
 0x71d   :  { %v1873_v2 = vadd.f32 %v1847_v41, %v1825_v57  ;;  %v2008_v57 = vmul.f32 %v4911_v48, %v1912_v10  ;;  %v1913_v48 = vld [vmem:[#allocation5 + $0xe0] sm:$0xff] }
 0x71f   :  { %1889 = vst.msk [vmem:[#allocation4 + $0xa8] sm:$0xff] %vm250_vm1, %v1873_v2  ;;  %v2006_v2 = vmul.f32 %v4917_v31, %v1910_v5  ;;  %v2011_v31 = vmul.f32 %v1990_v27, %v1915_v13 }
 0x720   :  { %v1859_v35 = vpop.xlane.xlu0 %1858 }
 0x721   :  { %v1879_v50 = vadd.f32 %v1859_v35, %v1831_v39 }
 0x723   :  { %1895 = vst.msk [vmem:[#allocation4 + $0xd8] sm:$0xff] %vm250_vm1, %v1879_v50 }
 0x724   :  { %v1855_v28 = vpop.xlane.xlu0 %1854 }
 0x725   :  { %v1877_v30 = vadd.f32 %v1855_v28, %v1829_v36  ;;  %v1916_v28 = vld [vmem:[#allocation5 + $0xf8] sm:$0xff] }
 0x727   :  { %1893 = vst.msk [vmem:[#allocation4 + $0xc8] sm:$0xff] %vm250_vm1, %v1877_v30 }
 0x744   :  { %v1867_v18 = vpop.xlane.xlu0 %1866 }
 0x745   :  { %v1883_v26 = vadd.f32 %v1867_v18, %v1835_v4  ;;  %v2009_v4 = vmul.f32 %v4902_v23, %v1913_v48 }
 0x747   :  { %1899 = vst.msk [vmem:[#allocation4 + $0xf8] sm:$0xff] %vm250_vm1, %v1883_v26  ;;  %v2010_v26 = vmul.f32 %v4921_v61, %v1914_v9 }
 0x748   :  { %v3211_v16 = vpop.f32.mrb[16].mxu1  ;;  %v1863_v3 = vpop.xlane.xlu0 %1862 }
 0x749   :  { %v2144_v6 = vadd.f32 %v3211_v16, %v1999_v45  ;;  %v1881_v14 = vadd.f32 %v1863_v3, %v1833_v7  ;;  %v2079_v52 = vpop.f32.mrb[17].mxu1 }
 0x74a   :  { %v2142_v40 = vadd.f32 %v2079_v52, %v1997_v58  ;;  %v3212_v1 = vpop.f32.mrb[18].mxu1 }
 0x74b   :  { %2160 = vst.msk [vmem:[#allocation5 + $0x90] sm:$0xff] %vm315_vm2, %v2144_v6  ;;  %v2145_v33 = vadd.f32 %v3212_v1, %v2000_v43  ;;  %v2082_v0 = vpop.f32.mrb[19].mxu1 }
 0x74c   :  { %1897 = vst.msk [vmem:[#allocation4 + $0xe8] sm:$0xff] %vm250_vm1, %v1881_v14  ;;  %v2143_v46 = vadd.f32 %v2082_v0, %v1998_v53 }
 0x74d   :  { %2158 = vst.msk [vmem:[#allocation5 + $0x80] sm:$0xff] %vm315_vm2, %v2142_v40  ;;  %2161 = vst.msk [vmem:[#allocation5 + $0x98] sm:$0xff] %vm315_vm2, %v2145_v33 }
 0x74e   :  { %2159 = vst.msk [vmem:[#allocation5 + $0x88] sm:$0xff] %vm315_vm2, %v2143_v46 }
 0x750   :  { %v3215_v17 = vpop.f32.mrb[20].mxu1  ;;  %v1995_v30 = vpop.permute.xlu0 %1994 }
 0x751   :  { %v2148_v29 = vadd.f32 %v3215_v17, %v2003_v49  ;;  %v2095_v63 = vpop.f32.mrb[21].mxu1  ;;  %v2012_v18 = vmul.f32 %v1995_v30, %v1916_v28 }
 0x752   :  { %v2146_v38 = vadd.f32 %v2095_v63, %v2001_v22  ;;  %v3216_v37 = vpop.f32.mrb[22].mxu1 }
 0x753   :  { %2164 = vst.msk [vmem:[#allocation5 + $0xb0] sm:$0xff] %vm315_vm2, %v2148_v29  ;;  %v2149_v44 = vadd.f32 %v3216_v37, %v2004_v8  ;;  %v2098_v42 = vpop.f32.mrb[23].mxu1 }
 0x754   :  { %2162 = vst.msk [vmem:[#allocation5 + $0xa0] sm:$0xff] %vm315_vm2, %v2146_v38  ;;  %v2147_v55 = vadd.f32 %v2098_v42, %v2002_v21 }
 0x755   :  { %2165 = vst.msk [vmem:[#allocation5 + $0xb8] sm:$0xff] %vm315_vm2, %v2149_v44 }
 0x756   :  { %2163 = vst.msk [vmem:[#allocation5 + $0xa8] sm:$0xff] %vm315_vm2, %v2147_v55 }
 0x758   :  { %v3219_v54 = vpop.f32.mrb[24].mxu1 }
 0x759   :  { %v2152_v41 = vadd.f32 %v3219_v54, %v2007_v56  ;;  %v2111_v62 = vpop.f32.mrb[25].mxu1 }
 0x75a   :  { %v2150_v39 = vadd.f32 %v2111_v62, %v2005_v12  ;;  %v3220_v35 = vpop.f32.mrb[26].mxu1 }
 0x75b   :  { %2168 = vst.msk [vmem:[#allocation5 + $0xd0] sm:$0xff] %vm315_vm2, %v2152_v41  ;;  %v2153_v20 = vadd.f32 %v3220_v35, %v2008_v57  ;;  %v2114_v50 = vpop.f32.mrb[27].mxu1 }
 0x75c   :  { %2166 = vst.msk [vmem:[#allocation5 + $0xc0] sm:$0xff] %vm315_vm2, %v2150_v39  ;;  %v2151_v36 = vadd.f32 %v2114_v50, %v2006_v2 }
 0x75d   :  { %2169 = vst.msk [vmem:[#allocation5 + $0xd8] sm:$0xff] %vm315_vm2, %v2153_v20 }
 0x75e   :  { %2167 = vst.msk [vmem:[#allocation5 + $0xc8] sm:$0xff] %vm315_vm2, %v2151_v36 }
 0x78c   :  { %v3223_v59 = vpop.f32.mrb[28].mxu1 }
 0x78d   :  { %v2156_v32 = vadd.f32 %v3223_v59, %v2011_v31  ;;  %v2127_v60 = vpop.f32.mrb[29].mxu1 }
 0x78e   :  { %v2154_v25 = vadd.f32 %v2127_v60, %v2009_v4  ;;  %v3224_v45 = vpop.f32.mrb[30].mxu1 }
 0x78f   :  { %2172 = vst.msk [vmem:[#allocation5 + $0xf0] sm:$0xff] %vm315_vm2, %v2156_v32  ;;  %v2157_v11 = vadd.f32 %v3224_v45, %v2012_v18  ;;  %v2130_v7 = vpop.f32.mrb[31].mxu1 }
 0x790   :  { %2170 = vst.msk [vmem:[#allocation5 + $0xe0] sm:$0xff] %vm315_vm2, %v2154_v25  ;;  %v2155_v58 = vadd.f32 %v2130_v7, %v2010_v26 }
 0x791   :  { %2173 = vst.msk [vmem:[#allocation5 + $0xf8] sm:$0xff] %vm315_vm2, %v2157_v11 }
 0x792   :  { %2171 = vst.msk [vmem:[#allocation5 + $0xe8] sm:$0xff] %vm315_vm2, %v2155_v58 }
 0x793 PF:  { %v2203_v23 = vld [vmem:[#allocation4 + $0x10] sm:$0xff]  ;;  %v2201_v16 = vld [vmem:[#allocation4] sm:$0xff]  ;;  %v2204_v3 = vld [vmem:[#allocation4 + $0x18] sm:$0xff]  ;;  %v3573_v43 = vmov 0  }
 0x794   :  { %3474 = vset.pattern.permute.xlu1 %v3573_v43  ;;  %3473 = vset.pattern.permute.xlu0 %v3573_v43  ;;  %3479 = vrcp.f32 %v2203_v23  ;;  %v2202_v61 = vld [vmem:[#allocation4 + $0x8] sm:$0xff]  ;;  %v2508_v14 = vld [vmem:[#allocation4 + $0x80] sm:$0xff]  ;;  %v2511_v52 = vld [vmem:[#allocation4 + $0x98] sm:$0xff] }
 0x795   :  { %3481 = vrcp.f32 %v2201_v16  ;;  %v2509_v6 = vld [vmem:[#allocation4 + $0x88] sm:$0xff]  ;;  %v2510_v53 = vld [vmem:[#allocation4 + $0x90] sm:$0xff]  ;;  %v3475_v0 = vld [vmem:[%s5045_s8] sm:$0xff]  }
 0x796   :  { %3483 = vrcp.f32 %v2204_v3  ;;  %v2206_v33 = vld [vmem:[#allocation4 + $0x28] sm:$0xff]  ;;  %v2205_v46 = vld [vmem:[#allocation4 + $0x20] sm:$0xff]  ;;  %3225 = vmatprep.subr.bf16.mxu1 %v3475_v0  ;;  %v2208_v19 = vld [vmem:[#allocation4 + $0x38] sm:$0xff] }
 0x797   :  { %3485 = vrcp.f32 %v2202_v61  ;;  %3226 = vmatpush3.bf16.msra.mxu1 %v3475_v0  ;;  %v3476_v49 = vld [vmem:[%s5045_s8 + $0x8] sm:$0xff]   ;;  %v2207_v22 = vld [vmem:[#allocation4 + $0x30] sm:$0xff]  ;;  %v2512_v21 = vld [vmem:[#allocation4 + $0xa0] sm:$0xff] }
 0x798   :  { %3487 = vrcp.f32 %v2509_v6  ;;  %3227 = vmatprep.subr.bf16.mxu1 %v3476_v49  ;;  %v3477_v8 = vld [vmem:[%s5045_s8 + $0x10] sm:$0xff]   ;;  %v2513_v29 = vld [vmem:[#allocation4 + $0xa8] sm:$0xff]  ;;  %v3478_v37 = vld [vmem:[%s5045_s8 + $0x18] sm:$0xff]  }
 0x799   :  { %3489 = vrcp.f32 %v2508_v14  ;;  %3245 = vmatprep.subr.bf16.mxu0 %v3477_v8  ;;  %v2515_v44 = vld [vmem:[#allocation4 + $0xb8] sm:$0xff]  ;;  %v2514_v47 = vld [vmem:[#allocation4 + $0xb0] sm:$0xff]  ;;  %v2210_v15 = vld [vmem:[#allocation4 + $0x48] sm:$0xff] }
 0x79a   :  { %3491 = vrcp.f32 %v2511_v52  ;;  %3246 = vmatpush3.bf16.msra.mxu0 %v3477_v8  ;;  %v2209_v56 = vld [vmem:[#allocation4 + $0x40] sm:$0xff]  ;;  %v2212_v12 = vld [vmem:[#allocation4 + $0x58] sm:$0xff]  ;;  %v2211_v57 = vld [vmem:[#allocation4 + $0x50] sm:$0xff] }
 0x79b   :  { %3493 = vrcp.f32 %v2510_v53  ;;  %3228 = vmatpush3.bf16.msra.mxu1 %v3476_v49  ;;  %3247 = vmatprep.subr.bf16.mxu0 %v3478_v37  ;;  %v2517_v62 = vld [vmem:[#allocation4 + $0xc8] sm:$0xff]  ;;  %v2516_v39 = vld [vmem:[#allocation4 + $0xc0] sm:$0xff]  ;;  %v2519_v20 = vld [vmem:[#allocation4 + $0xd8] sm:$0xff] }
 0x79c   :  { %3495 = vrcp.f32 %v2206_v33  ;;  %v2518_v36 = vld [vmem:[#allocation4 + $0xd0] sm:$0xff]  ;;  %v2214_v27 = vld [vmem:[#allocation4 + $0x68] sm:$0xff]  ;;  %v2213_v28 = vld [vmem:[#allocation4 + $0x60] sm:$0xff] }
 0x79d   :  { %3497 = vrcp.f32 %v2205_v46  ;;  %v2216_v9 = vld [vmem:[#allocation4 + $0x78] sm:$0xff]  ;;  %v2215_v4 = vld [vmem:[#allocation4 + $0x70] sm:$0xff]  ;;  %v2521_v18 = vld [vmem:[#allocation4 + $0xe8] sm:$0xff] }
 0x79e   :  { %v3480_v40 = vpop.eup %3479  ;;  %3499 = vrcp.f32 %v2208_v19  ;;  %3248 = vmatpush3.bf16.msra.mxu0 %v3478_v37  ;;  %v2520_v60 = vld [vmem:[#allocation4 + $0xe0] sm:$0xff]  ;;  %v2523_v25 = vld [vmem:[#allocation4 + $0xf8] sm:$0xff]  ;;  %v2522_v11 = vld [vmem:[#allocation4 + $0xf0] sm:$0xff] }
 0x79f   :  { %v3482_v1 = vpop.eup %3481  ;;  %2261 = vperm.xlu1 %3474, %v3480_v40   ;;  %3501 = vrcp.f32 %v2207_v22  ;;  %v2235_v52 = vld [vmem:[#allocation5 + $0x10] sm:$0xff]  ;;  %v2236_v53 = vld [vmem:[#allocation5 + $0x18] sm:$0xff]  ;;  %v2233_v40 = vld [vmem:[#allocation5] sm:$0xff] }
 0x7a0   :  { %v3484_v51 = vpop.eup %3483  ;;  %2251 = vperm.xlu0 %3473, %v3482_v1   ;;  %3503 = vrcp.f32 %v2513_v29  ;;  %v2234_v1 = vld [vmem:[#allocation5 + $0x8] sm:$0xff]  ;;  %v2541_v22 = vld [vmem:[#allocation5 + $0x80] sm:$0xff]  ;;  %v2543_v37 = vld [vmem:[#allocation5 + $0x90] sm:$0xff] }
 0x7a1   :  { %v3486_v24 = vpop.eup %3485  ;;  %3505 = vrcp.f32 %v2512_v21  ;;  %v2542_v49 = vld [vmem:[#allocation5 + $0x88] sm:$0xff] }
 0x7a2   :  { %v3488_v34 = vpop.eup %3487  ;;  %3507 = vrcp.f32 %v2515_v44 }
 0x7a3   :  { %2266 = vperm.xlu1 %3474, %v3484_v51   ;;  %v3490_v17 = vpop.eup %3489  ;;  %3509 = vrcp.f32 %v2514_v47 }
 0x7a4   :  { %2256 = vperm.xlu0 %3473, %v3486_v24   ;;  %v3492_v63 = vpop.eup %3491  ;;  %3511 = vrcp.f32 %v2210_v15 }
 0x7a5   :  { %v3494_v38 = vpop.eup %3493  ;;  %3513 = vrcp.f32 %v2209_v56  ;;  %v2237_v56 = vld [vmem:[#allocation5 + $0x20] sm:$0xff] }
 0x7a6   :  { %v3496_v42 = vpop.eup %3495  ;;  %3515 = vrcp.f32 %v2212_v12 }
 0x7a7   :  { %2564 = vperm.xlu1 %3474, %v3488_v34   ;;  %v3498_v55 = vpop.eup %3497  ;;  %3517 = vrcp.f32 %v2211_v57 }
 0x7a8   :  { %2559 = vperm.xlu0 %3473, %v3490_v17   ;;  %v3500_v10 = vpop.eup %3499  ;;  %3519 = vrcp.f32 %v2517_v62  ;;  %v2240_v62 = vld [vmem:[#allocation5 + $0x38] sm:$0xff] }
 0x7a9   :  { %v3502_v5 = vpop.eup %3501  ;;  %3521 = vrcp.f32 %v2516_v39 }
 0x7aa   :  { %v3504_v54 = vpop.eup %3503  ;;  %3523 = vrcp.f32 %v2519_v20 }
 0x7ab   :  { %2574 = vperm.xlu1 %3474, %v3492_v63   ;;  %v3506_v41 = vpop.eup %3505  ;;  %3525 = vrcp.f32 %v2518_v36 }
 0x7ac   :  { %2569 = vperm.xlu0 %3473, %v3494_v38   ;;  %v3508_v2 = vpop.eup %3507  ;;  %3527 = vrcp.f32 %v2214_v27  ;;  %v2544_v38 = vld [vmem:[#allocation5 + $0x98] sm:$0xff]  ;;  %v2545_v27 = vld [vmem:[#allocation5 + $0xa0] sm:$0xff] }
 0x7ad   :  { %v3510_v35 = vpop.eup %3509  ;;  %3529 = vrcp.f32 %v2213_v28 }
 0x7ae   :  { %v3512_v50 = vpop.eup %3511  ;;  %3531 = vrcp.f32 %v2216_v9 }
 0x7af   :  { %2276 = vperm.xlu1 %3474, %v3496_v42   ;;  %v3514_v13 = vpop.eup %3513  ;;  %3533 = vrcp.f32 %v2215_v4  ;;  %v2548_v4 = vld [vmem:[#allocation5 + $0xb8] sm:$0xff] }
 0x7b0   :  { %2271 = vperm.xlu0 %3473, %v3498_v55   ;;  %v3516_v48 = vpop.eup %3515  ;;  %3535 = vrcp.f32 %v2521_v18 }
 0x7b1   :  { %v3518_v30 = vpop.eup %3517  ;;  %3537 = vrcp.f32 %v2520_v60 }
 0x7b2   :  { %v3520_v31 = vpop.eup %3519  ;;  %3539 = vrcp.f32 %v2523_v25 }
 0x7b3   :  { %2286 = vperm.xlu1 %3474, %v3500_v10   ;;  %v3522_v59 = vpop.eup %3521  ;;  %3541 = vrcp.f32 %v2522_v11  ;;  %v2238_v10 = vld [vmem:[#allocation5 + $0x28] sm:$0xff]  ;;  %v2241_v11 = vld [vmem:[#allocation5 + $0x40] sm:$0xff] }
 0x7b4   :  { %2281 = vperm.xlu0 %3473, %v3502_v5   ;;  %v3524_v32 = vpop.eup %3523 }
 0x7b5   :  { %v3526_v26 = vpop.eup %3525 }
 0x7b6   :  { %v3528_v45 = vpop.eup %3527 }
 0x7b7   :  { %2584 = vperm.xlu1 %3474, %v3504_v54   ;;  %v3530_v7 = vpop.eup %3529 }
 0x7b8   :  { %2579 = vperm.xlu0 %3473, %v3506_v41   ;;  %v3532_v58 = vpop.eup %3531 }
 0x7b9   :  { %v3534_v23 = vpop.eup %3533 }
 0x7ba   :  { %v3536_v16 = vpop.eup %3535 }
 0x7bb   :  { %2594 = vperm.xlu1 %3474, %v3508_v2   ;;  %v3538_v3 = vpop.eup %3537  ;;  %v2239_v2 = vld [vmem:[#allocation5 + $0x30] sm:$0xff] }
 0x7bc   :  { %2589 = vperm.xlu0 %3473, %v3510_v35   ;;  %v3540_v43 = vpop.eup %3539 }
 0x7bd   :  { %v3542_v61 = vpop.eup %3541 }
 0x7bf   :  { %2296 = vperm.xlu1 %3474, %v3512_v50  }
 0x7c0   :  { %2291 = vperm.xlu0 %3473, %v3514_v13   ;;  %v2546_v13 = vld [vmem:[#allocation5 + $0xa8] sm:$0xff] }
 0x7c3   :  { %2306 = vperm.xlu1 %3474, %v3516_v48  }
 0x7c4   :  { %2301 = vperm.xlu0 %3473, %v3518_v30  }
 0x7c7   :  { %2604 = vperm.xlu1 %3474, %v3520_v31  }
 0x7c8   :  { %2599 = vperm.xlu0 %3473, %v3522_v59   ;;  %v2547_v59 = vld [vmem:[#allocation5 + $0xb0] sm:$0xff] }
 0x7cb   :  { %2614 = vperm.xlu1 %3474, %v3524_v32  }
 0x7cc   :  { %2609 = vperm.xlu0 %3473, %v3526_v26  }
 0x7cf   :  { %2316 = vperm.xlu1 %3474, %v3528_v45   ;;  %v2242_v45 = vld [vmem:[#allocation5 + $0x48] sm:$0xff] }
 0x7d0   :  { %2311 = vperm.xlu0 %3473, %v3530_v7  }
 0x7d3   :  { %2326 = vperm.xlu1 %3474, %v3532_v58  }
 0x7d4   :  { %2321 = vperm.xlu0 %3473, %v3534_v23  }
 0x7d7   :  { %2624 = vperm.xlu1 %3474, %v3536_v16  }
 0x7d8   :  { %2619 = vperm.xlu0 %3473, %v3538_v3  }
 0x7db   :  { %2634 = vperm.xlu1 %3474, %v3540_v43   ;;  %v2244_v43 = vld [vmem:[#allocation5 + $0x58] sm:$0xff] }
 0x7dc   :  { %2629 = vperm.xlu0 %3473, %v3542_v61   ;;  %v2243_v61 = vld [vmem:[#allocation5 + $0x50] sm:$0xff] }
 0x81e   :  { %v2262_v6 = vpop.permute.xlu1 %2261 }
 0x81f   :  { %v2252_v14 = vpop.permute.xlu0 %2251  ;;  %v2331_v0 = vmul.f32 %v2262_v6, %v2235_v52 }
 0x820   :  { %v2329_v24 = vmul.f32 %v2252_v14, %v2233_v40 }
 0x822   :  { %v2267_v33 = vpop.permute.xlu1 %2266 }
 0x823   :  { %v2332_v51 = vmul.f32 %v2267_v33, %v2236_v53  ;;  %v2257_v46 = vpop.permute.xlu0 %2256  ;;  %v2549_v33 = vld [vmem:[#allocation5 + $0xc0] sm:$0xff] }
 0x824   :  { %v2330_v19 = vmul.f32 %v2257_v46, %v2234_v1  ;;  %v2550_v1 = vld [vmem:[#allocation5 + $0xc8] sm:$0xff] }
 0x825   :  { %v2346_v34 = vpack.c.bf16 %v2332_v51, %v2331_v0 }
 0x826   :  { %v2565_v17 = vpop.permute.xlu1 %2564  ;;  %v2345_v8 = vpack.c.bf16 %v2330_v19, %v2329_v24 }
 0x827   :  { %v2638_v29 = vmul.f32 %v2565_v17, %v2542_v49  ;;  %v2560_v63 = vpop.permute.xlu0 %2559  ;;  %v2552_v49 = vld [vmem:[#allocation5 + $0xd8] sm:$0xff] }
 0x828   :  { %v2637_v21 = vmul.f32 %v2560_v63, %v2541_v22  ;;  %3229 = vmatprep.mubr.msk.bf16.mxu1 %vm315_vm2, %v2345_v8 }
 0x829   :  { %3230 = vmatmul.mubr.msk.bf16.vlgmr.msra.gmra.mrb[0].mxu1 %vm315_vm2, %v2346_v34  ;;  %v2551_v34 = vld [vmem:[#allocation5 + $0xd0] sm:$0xff] }
 0x82a   :  { %v2575_v44 = vpop.permute.xlu1 %2574  ;;  %v2653_v42 = vpack.c.bf16 %v2638_v29, %v2637_v21  ;;  %v2246_v21 = vld [vmem:[#allocation5 + $0x68] sm:$0xff] }
 0x82b   :  { %v2640_v47 = vmul.f32 %v2575_v44, %v2544_v38  ;;  %v2570_v55 = vpop.permute.xlu0 %2569  ;;  %v2245_v38 = vld [vmem:[#allocation5 + $0x60] sm:$0xff] }
 0x82c   :  { %v2639_v15 = vmul.f32 %v2570_v55, %v2543_v37  ;;  %3249 = vmatprep.mubr.msk.bf16.mxu0 %vm315_vm2, %v2653_v42 }
 0x82e   :  { %v2654_v5 = vpack.c.bf16 %v2640_v47, %v2639_v15  ;;  %v2277_v12 = vpop.permute.xlu1 %2276  ;;  %v2248_v15 = vld [vmem:[#allocation5 + $0x78] sm:$0xff] }
 0x82f   :  { %v2334_v54 = vmul.f32 %v2277_v12, %v2238_v10  ;;  %v2272_v57 = vpop.permute.xlu0 %2271  ;;  %v2247_v10 = vld [vmem:[#allocation5 + $0x70] sm:$0xff] }
 0x830   :  { %v2333_v41 = vmul.f32 %v2272_v57, %v2237_v56  ;;  %3250 = vmatmul.mubr.msk.bf16.vlgmr.msra.gmra.mrb[0].mxu0 %vm315_vm2, %v2654_v5 }
 0x832   :  { %v2347_v39 = vpack.c.bf16 %v2334_v54, %v2333_v41  ;;  %v2287_v35 = vpop.permute.xlu1 %2286  ;;  %v2554_v41 = vld [vmem:[#allocation5 + $0xe8] sm:$0xff] }
 0x833   :  { %v2336_v20 = vmul.f32 %v2287_v35, %v2240_v62  ;;  %v2282_v50 = vpop.permute.xlu0 %2281  ;;  %v2553_v62 = vld [vmem:[#allocation5 + $0xe0] sm:$0xff] }
 0x834   :  { %v2335_v36 = vmul.f32 %v2282_v50, %v2239_v2  ;;  %3233 = vmatprep.mubr.msk.bf16.mxu1 %vm315_vm2, %v2347_v39 }
 0x836   :  { %v2348_v48 = vpack.c.bf16 %v2336_v20, %v2335_v36  ;;  %v2585_v28 = vpop.permute.xlu1 %2584  ;;  %v2556_v36 = vld [vmem:[#allocation5 + $0xf8] sm:$0xff] }
 0x837   :  { %v2642_v30 = vmul.f32 %v2585_v28, %v2546_v13  ;;  %v2580_v9 = vpop.permute.xlu0 %2579  ;;  %v2555_v13 = vld [vmem:[#allocation5 + $0xf0] sm:$0xff] }
 0x838   :  { %v2641_v31 = vmul.f32 %v2580_v9, %v2545_v27  ;;  %3234 = vmatmul.mubr.msk.bf16.gmra.mrb[4].mxu1 %vm315_vm2, %v2348_v48 }
 0x83a   :  { %v2655_v18 = vpack.c.bf16 %v2642_v30, %v2641_v31  ;;  %v2595_v32 = vpop.permute.xlu1 %2594 }
 0x83b   :  { %v2644_v60 = vmul.f32 %v2595_v32, %v2548_v4  ;;  %v2590_v26 = vpop.permute.xlu0 %2589  ;;  %v5007_v32 = vld [vmem:[%s5046_s9] ss:$0 sm:$0xff]  ;;  %s3574_s9 = smov [#allocation8]  }
 0x83c   :  { %v2643_v25 = vmul.f32 %v2590_v26, %v2547_v59  ;;  %3253 = vmatprep.mubr.msk.bf16.mxu0 %vm315_vm2, %v2655_v18  ;;  %s2835_s2 = sshll.u32 %s3574_s9, 4  ;;  %s2836_s2 = int_to_ptr.vmem [resolvable:$true] %s2835_s2 }
 0x83d   :  { %s3543_s7 = scalar_lea.vmem %s2836_s2, 2048  ;;  %p3548_p2 = scmp.lt.s32.totalorder %s2836_s2, %s2836_s2 }
 0x83e   :  { %v2656_v7 = vpack.c.bf16 %v2644_v60, %v2643_v25  ;;  %v2297_v58 = vpop.permute.xlu1 %2296  ;;  %p3544_p1 = scmp.ne.s32.totalorder %s2836_s2, %s3543_s7  ;;  %p3549_p3 = scmp.lt.s32.totalorder %s3543_s7, %s3543_s7 }
 0x83f   :  { %v2338_v23 = vmul.f32 %v2297_v58, %v2242_v45  ;;  %v2292_v16 = vpop.permute.xlu0 %2291 }
 0x840   :  { %v2337_v3 = vmul.f32 %v2292_v16, %v2241_v11  ;;  %3254 = vmatmul.mubr.msk.bf16.gmra.mrb[4].mxu0 %vm315_vm2, %v2656_v7  ;;  %p3550_p4 = por %p3549_p3, %p3548_p2 }
 0x842   :  { %v2349_v6 = vpack.c.bf16 %v2338_v23, %v2337_v3  ;;  %v2307_v14 = vpop.permute.xlu1 %2306  ;;  %p3551_p5 = pnand %p3550_p4, %p3544_p1 }
 0x843   :  { %v2340_v52 = vmul.f32 %v2307_v14, %v2244_v43  ;;  %v2302_v53 = vpop.permute.xlu0 %2301 }
 0x844   :  { %v2339_v40 = vmul.f32 %v2302_v53, %v2243_v61  ;;  %3237 = vmatprep.mubr.msk.bf16.mxu1 %vm315_vm2, %v2349_v6 }
 0x846   :  { %v2350_v0 = vpack.c.bf16 %v2340_v52, %v2339_v40  ;;  %v2605_v51 = vpop.permute.xlu1 %2604 }
 0x847   :  { %v2646_v46 = vmul.f32 %v2605_v51, %v2550_v1  ;;  %v2600_v24 = vpop.permute.xlu0 %2599 }
 0x848   :  { %v2645_v19 = vmul.f32 %v2600_v24, %v2549_v33  ;;  %3238 = vmatmul.mubr.msk.bf16.gmra.mrb[8].mxu1 %vm315_vm2, %v2350_v0 }
 0x84a   :  { %v2657_v22 = vpack.c.bf16 %v2646_v46, %v2645_v19  ;;  %v2615_v17 = vpop.permute.xlu1 %2614 }
 0x84b   :  { %v2648_v8 = vmul.f32 %v2615_v17, %v2552_v49  ;;  %v2610_v29 = vpop.permute.xlu0 %2609 }
 0x84c   :  { %v2647_v63 = vmul.f32 %v2610_v29, %v2551_v34  ;;  %3257 = vmatprep.mubr.msk.bf16.mxu0 %vm315_vm2, %v2657_v22 }
 0x84e   :  { %v2658_v37 = vpack.c.bf16 %v2648_v8, %v2647_v63  ;;  %v2317_v44 = vpop.permute.xlu1 %2316 }
 0x84f   :  { %v2342_v42 = vmul.f32 %v2317_v44, %v2246_v21  ;;  %v2312_v47 = vpop.permute.xlu0 %2311 }
 0x850   :  { %v2341_v55 = vmul.f32 %v2312_v47, %v2245_v38  ;;  %3258 = vmatmul.mubr.msk.bf16.gmra.mrb[8].mxu0 %vm315_vm2, %v2658_v37 }
 0x852   :  { %v2351_v56 = vpack.c.bf16 %v2342_v42, %v2341_v55  ;;  %v2327_v5 = vpop.permute.xlu1 %2326 }
 0x853   :  { %v2344_v12 = vmul.f32 %v2327_v5, %v2248_v15  ;;  %v2322_v54 = vpop.permute.xlu0 %2321 }
 0x854   :  { %v2343_v57 = vmul.f32 %v2322_v54, %v2247_v10  ;;  %3241 = vmatprep.mubr.msk.bf16.mxu1 %vm315_vm2, %v2351_v56 }
 0x856   :  { %v2352_v2 = vpack.c.bf16 %v2344_v12, %v2343_v57  ;;  %v2625_v39 = vpop.permute.xlu1 %2624 }
 0x857   :  { %v2650_v35 = vmul.f32 %v2625_v39, %v2554_v41  ;;  %v2620_v20 = vpop.permute.xlu0 %2619 }
 0x858   :  { %v2649_v50 = vmul.f32 %v2620_v20, %v2553_v62  ;;  %3242 = vmatmul.mubr.msk.bf16.gmra.mrb[12].mxu1 %vm315_vm2, %v2352_v2 }
 0x85a   :  { %v2659_v27 = vpack.c.bf16 %v2650_v35, %v2649_v50  ;;  %v2635_v48 = vpop.permute.xlu1 %2634 }
 0x85b   :  { %v2652_v28 = vmul.f32 %v2635_v48, %v2556_v36  ;;  %v2630_v30 = vpop.permute.xlu0 %2629 }
 0x85c   :  { %v2651_v9 = vmul.f32 %v2630_v30, %v2555_v13  ;;  %3261 = vmatprep.mubr.msk.bf16.mxu0 %vm315_vm2, %v2659_v27 }
 0x85e   :  { %v2660_v31 = vpack.c.bf16 %v2652_v28, %v2651_v9 }
 0x860   :  { %3262 = vmatmul.mubr.msk.bf16.gmra.mrb[12].mxu0 %vm315_vm2, %v2660_v31 }
 0x8fc   :  { %v3231_v4 = vpop.f32.mrb[0].mxu1 }
 0x8fd   :  { %v2428_v59 = vpop.f32.mrb[1].mxu1  ;;  %v2493_v26 = vadd.f32 %v3231_v4, %v5007_v32 }
 0x8fe   :  { %v3232_v18 = vpop.f32.mrb[2].mxu1  ;;  %v2491_v25 = vadd.f32 %v5007_v32, %v2428_v59 }
 0x8ff   :  { %v2431_v60 = vpop.f32.mrb[3].mxu1  ;;  %v2494_v11 = vadd.f32 %v3232_v18, %v5007_v32 }
 0x900   :  { %v2492_v23 = vadd.f32 %v5007_v32, %v2431_v60 }
 0x903   :  { %v3251_v45 = vpop.f32.mrb[0].mxu0 }
 0x904   :  { %v2800_v7 = vadd.f32 %v3251_v45, %v2493_v26  ;;  %v2735_v58 = vpop.f32.mrb[1].mxu0 }
 0x905   :  { %v2798_v16 = vadd.f32 %v2735_v58, %v2491_v25  ;;  %v3252_v3 = vpop.f32.mrb[2].mxu0 }
 0x906   :  { %2816 = vst [vmem:[#allocation8 + $0x10] sm:$0xff] %v2800_v7  ;;  %v2801_v43 = vadd.f32 %v3252_v3, %v2494_v11  ;;  %v2738_v61 = vpop.f32.mrb[3].mxu0 }
 0x907   :  { %2814 = vst [vmem:[#allocation8] sm:$0xff] %v2798_v16  ;;  %v2799_v6 = vadd.f32 %v2738_v61, %v2492_v23 }
 0x908   :  { %2817 = vst [vmem:[#allocation8 + $0x18] sm:$0xff] %v2801_v43 }
 0x909   :  { %2815 = vst [vmem:[#allocation8 + $0x8] sm:$0xff] %v2799_v6 }
 0x90b   :  { %v3235_v14 = vpop.f32.mrb[4].mxu1 }
 0x90c   :  { %v2444_v52 = vpop.f32.mrb[5].mxu1  ;;  %v2497_v1 = vadd.f32 %v3235_v14, %v5007_v32 }
 0x90d   :  { %v3236_v53 = vpop.f32.mrb[6].mxu1  ;;  %v2495_v33 = vadd.f32 %v5007_v32, %v2444_v52 }
 0x90e   :  { %v2447_v40 = vpop.f32.mrb[7].mxu1  ;;  %v2498_v51 = vadd.f32 %v3236_v53, %v5007_v32 }
 0x90f   :  { %v2496_v19 = vadd.f32 %v5007_v32, %v2447_v40 }
 0x913   :  { %v3255_v0 = vpop.f32.mrb[4].mxu0 }
 0x914   :  { %v2804_v46 = vadd.f32 %v3255_v0, %v2497_v1  ;;  %v2751_v24 = vpop.f32.mrb[5].mxu0 }
 0x915   :  { %v2802_v49 = vadd.f32 %v2751_v24, %v2495_v33  ;;  %v3256_v34 = vpop.f32.mrb[6].mxu0 }
 0x916   :  { %2820 = vst [vmem:[#allocation8 + $0x30] sm:$0xff] %v2804_v46  ;;  %v2805_v22 = vadd.f32 %v3256_v34, %v2498_v51  ;;  %v2754_v17 = vpop.f32.mrb[7].mxu0 }
 0x917   :  { %2818 = vst [vmem:[#allocation8 + $0x20] sm:$0xff] %v2802_v49  ;;  %v2803_v8 = vadd.f32 %v2754_v17, %v2496_v19 }
 0x918   :  { %2821 = vst [vmem:[#allocation8 + $0x38] sm:$0xff] %v2805_v22 }
 0x919   :  { %2819 = vst [vmem:[#allocation8 + $0x28] sm:$0xff] %v2803_v8 }
 0x91b   :  { %v3239_v29 = vpop.f32.mrb[8].mxu1 }
 0x91c   :  { %v2460_v63 = vpop.f32.mrb[9].mxu1  ;;  %v2501_v37 = vadd.f32 %v3239_v29, %v5007_v32 }
 0x91d   :  { %v3240_v21 = vpop.f32.mrb[10].mxu1  ;;  %v2499_v44 = vadd.f32 %v5007_v32, %v2460_v63 }
 0x91e   :  { %v2463_v38 = vpop.f32.mrb[11].mxu1  ;;  %v2502_v47 = vadd.f32 %v3240_v21, %v5007_v32 }
 0x91f   :  { %v2500_v10 = vadd.f32 %v5007_v32, %v2463_v38 }
 0x923   :  { %v3259_v42 = vpop.f32.mrb[8].mxu0 }
 0x924   :  { %v2808_v55 = vadd.f32 %v3259_v42, %v2501_v37  ;;  %v2767_v15 = vpop.f32.mrb[9].mxu0 }
 0x925   :  { %v2806_v56 = vadd.f32 %v2767_v15, %v2499_v44  ;;  %v3260_v5 = vpop.f32.mrb[10].mxu0 }
 0x926   :  { %2824 = vst [vmem:[#allocation8 + $0x50] sm:$0xff] %v2808_v55  ;;  %v2809_v12 = vadd.f32 %v3260_v5, %v2502_v47  ;;  %v2770_v54 = vpop.f32.mrb[11].mxu0 }
 0x927   :  { %2822 = vst [vmem:[#allocation8 + $0x40] sm:$0xff] %v2806_v56  ;;  %v2807_v57 = vadd.f32 %v2770_v54, %v2500_v10 }
 0x928   :  { %2825 = vst [vmem:[#allocation8 + $0x58] sm:$0xff] %v2809_v12 }
 0x929   :  { %2823 = vst [vmem:[#allocation8 + $0x48] sm:$0xff] %v2807_v57 }
 0x92b   :  { %v3243_v41 = vpop.f32.mrb[12].mxu1 }
 0x92c   :  { %v2476_v62 = vpop.f32.mrb[13].mxu1  ;;  %v2505_v35 = vadd.f32 %v3243_v41, %v5007_v32 }
 0x92d   :  { %v3244_v2 = vpop.f32.mrb[14].mxu1  ;;  %v2503_v20 = vadd.f32 %v5007_v32, %v2476_v62 }
 0x92e   :  { %v2479_v39 = vpop.f32.mrb[15].mxu1  ;;  %v2506_v36 = vadd.f32 %v3244_v2, %v5007_v32 }
 0x92f   :  { %v2504_v48 = vadd.f32 %v5007_v32, %v2479_v39 }
 0x933   :  { %v3263_v50 = vpop.f32.mrb[12].mxu0 }
 0x934   :  { %v2812_v13 = vadd.f32 %v3263_v50, %v2505_v35  ;;  %v2783_v27 = vpop.f32.mrb[13].mxu0 }
 0x935   :  { %v2810_v28 = vadd.f32 %v2783_v27, %v2503_v20  ;;  %v3264_v30 = vpop.f32.mrb[14].mxu0 }
 0x936   :  { %2828 = vst [vmem:[#allocation8 + $0x70] sm:$0xff] %v2812_v13  ;;  %v2813_v9 = vadd.f32 %v3264_v30, %v2506_v36  ;;  %v2786_v31 = vpop.f32.mrb[15].mxu0 }
 0x937   :  { %2826 = vst [vmem:[#allocation8 + $0x60] sm:$0xff] %v2810_v28  ;;  %v2811_v4 = vadd.f32 %v2786_v31, %v2504_v48 }
 0x938   :  { %2829 = vst [vmem:[#allocation8 + $0x78] sm:$0xff] %v2813_v9 }
 0x939   :  { %2827 = vst [vmem:[#allocation8 + $0x68] sm:$0xff] %v2811_v4 }
 0x93a   :  { %3554 = shalt.err (!%p3551_p5)
}
 0x93b   :  { %s3555_s30 = scalar_lea.hbm %s5047_s10, 2048 }
 0x93c   :  { %p3556_p6 = scmp.ne.s32.totalorder %s5047_s10, %s3555_s30  ;;  %p3559_p7 = scmp.lt.u32.totalorder %s3555_s30, %s5047_s10 }
 0x93e   :  { %p3561_p8 = pnand %p3559_p7, %p3556_p6 }
 0x940   :  { %3564 = shalt.err (!%p3561_p8)
}
 0x941   :  { %s3575_s14 = smov 128   ;;  %s3576_s15 = smov 8  }
 0x942   :  { %2841 = dma.vmem_to_hbm [thread:$0]  %s2836_s2, 2048, %s5047_s10, [#allocation9], %s3575_s14, %s3575_s14, %s3576_s15  }
 0x943   :  { %3565 = dma.done.wait [#allocation9], 2048  }
 0x944   :  { %3566 = vsyncadd [#allocation9], 4294965248 }
 0x945   :  { %2845 = vsyncpa [#allocation9], 1 }

</bundles_post_ra>
